<compile_context>
chip_gen: v7x
topology: tpu7x:2x2x1
jax: 0.10.0
libtpu: 0.0.40
codegen_flags: <defaults>
</compile_context>

<pallas_src>
import functools

import jax
import jax.numpy as jnp
from jax import lax
from jax.experimental import pallas as pl
from jax.experimental.pallas import tpu as pltpu


# ----------------------------- Pallas kernel -------------------------------


def _inverted_residual_kernel(x_ref, w1_ref, b1_ref, band_ref, b2_ref,
                              w3_ref, b3_ref, o_ref, pad_ref, dw_ref, *,
                              stride, ksize, use_res, Nb, H, Hout, Rpad,
                              Kdw, Ndw):
    # x_ref:    (Nb, H, P*W*Cin)       packed activations (P images on lanes)
    # w1_ref:   (P*W*Cin, Kdw)         expand weight, W zero-padding folded in
    # b1_ref:   (1, Kdw)               expand bias (0 in the W-halo lanes)
    # band_ref: (k, Kdw, Ndw)          per-dy banded depthwise weights
    #                                  (dx taps + horizontal stride folded in)
    # b2_ref:   (1, Ndw)
    # w3_ref:   (Ndw, P*Wout*Cout)     block-diagonal project weight
    # b3_ref:   (1, P*Wout*Cout)
    # o_ref:    (Nb, Hout, P*Wout*Cout)
    # pad_ref:  (Nb*Rpad, Kdw)   f32 scratch: per-image H-padded activations
    # dw_ref:   (Nb*Hout, Ndw)   f32 scratch: depthwise output slab
    k = ksize
    p = k // 2
    PWCin = x_ref.shape[-1]
    Nout = o_ref.shape[-1]

    # ---- 1x1 expand + BN + ReLU6: one block-diag MXU matmul, M = Nb*H ----
    x = x_ref[...].reshape(Nb * H, PWCin)
    h = jnp.dot(x, w1_ref[...], preferred_element_type=jnp.float32)
    h = jnp.clip(h + b1_ref[...], 0.0, 6.0)      # (Nb*H, Kdw); W-halos are 0

    # ---- scatter rows into the per-image padded scratch ----
    # Only the 2*p vertical halo rows need zeroing (lane-aligned, start at 0);
    # the W halos are already zero because they were folded into w1/b1.
    for b in range(Nb):
        base = b * Rpad
        pad_ref[base:base + p, :] = jnp.zeros((p, Kdw), jnp.float32)
        pad_ref[base + p + H:base + 2 * p + H, :] = jnp.zeros((p, Kdw),
                                                              jnp.float32)
        pad_ref[base + p:base + p + H, :] = h[b * H:(b + 1) * H, :]

    # ---- kxk depthwise + BN + ReLU6 as k banded MXU matmuls per image ----
    # Every read starts at lane 0 of the scratch row -> no lane rotates.
    accs = [jnp.zeros((Hout, Ndw), jnp.float32) for _ in range(Nb)]
    for dy in range(k):
        band_dy = band_ref[dy]                   # (Kdw, Ndw), read once per dy
        for b in range(Nb):
            base = b * Rpad
            if stride == 1:
                rows = pad_ref[base + dy:base + dy + Hout, :]
            else:
                rows = pad_ref[pl.ds(base + dy, Hout, stride=stride), :]
            accs[b] = accs[b] + jnp.dot(rows, band_dy,
                                        preferred_element_type=jnp.float32)
    for b in range(Nb):
        dw_ref[b * Hout:(b + 1) * Hout, :] = jnp.clip(
            accs[b] + b2_ref[...], 0.0, 6.0)

    # ---- 1x1 project + BN: one matmul over all Nb*Hout rows ----
    y = jnp.dot(dw_ref[...], w3_ref[...], preferred_element_type=jnp.float32)
    y = y + b3_ref[...]                          # (Nb*Hout, P*Wout*Cout)

    if use_res:
        y = y + x                                # packed layouts match

    o_ref[...] = y.reshape(Nb, Hout, Nout).astype(o_ref.dtype)


# ---------------- weight preparation (hoisted, once per params) -------------


def prepare_params(params, *, W, stride, kernel, P):
    """Once-per-parameter-set preparation (NOT in the forward path):
    folds the W zero-padding into the expand weight, the dx taps + horizontal
    stride into k block-banded depthwise matrices, and lane-packs P images."""
    w1, b1, wdw, b2, w3, b3 = params
    Cin, Cexp = w1.shape
    Cout = w3.shape[1]
    k = kernel
    p = k // 2
    Wp = W + 2 * p
    Wout = (Wp - k) // stride + 1

    # expand: (P*W*Cin, P*Wp*Cexp); halo output columns are all-zero
    w1_img = jnp.zeros((W, Cin, Wp, Cexp), w1.dtype)
    w1_img = w1_img.at[jnp.arange(W), :, jnp.arange(W) + p, :].set(w1[None])
    w1_img = w1_img.reshape(W * Cin, Wp * Cexp)
    w1_pad = jnp.kron(jnp.eye(P, dtype=w1.dtype), w1_img)

    b1_img = jnp.zeros((Wp, Cexp), b1.dtype).at[p:p + W, :].set(b1[None])
    b1_pad = jnp.tile(b1_img.reshape(-1), P).reshape(1, P * Wp * Cexp)

    # depthwise bands: band[dy, (j, wout*stride+dx, c), (j, wout, c)] = wdw[dy,dx,c]
    wo = jnp.arange(Wout)
    band_img = jnp.zeros((k, Wp, Wout, Cexp), wdw.dtype)
    for dy in range(k):
        for dx in range(k):
            band_img = band_img.at[dy, wo * stride + dx, wo, :].set(
                wdw[dy, dx][None, :])
    eye_c = jnp.eye(Cexp, dtype=wdw.dtype)
    band_flat = jnp.einsum("dwoc,ce->dwcoe", band_img, eye_c).reshape(
        k, Wp * Cexp, Wout * Cexp)
    eye_p = jnp.eye(P, dtype=wdw.dtype)
    band = jnp.stack([jnp.kron(eye_p, band_flat[d]) for d in range(k)])

    b2_t = jnp.tile(b2, P * Wout).reshape(1, P * Wout * Cexp)

    # project: plain block-diagonal (stride already handled inside the band)
    w3_blk = jnp.kron(jnp.eye(P * Wout, dtype=w3.dtype), w3)
    b3_t = jnp.tile(b3, P * Wout).reshape(1, P * Wout * Cout)

    return (w1_pad, b1_pad, band, b2_t, w3_blk, b3_t)


# ------------------------------- wrapper ------------------------------------


def inverted_residual(x_nchw, prepared, *, stride, kernel, P, Nb):
    """x_nchw: (N, Cin, H, W) -> (N, Cout, Hout, Wout) using prepared weights."""
    w1_pad, b1_pad, band, b2_t, w3_blk, b3_t = prepared
    N, Cin, H, W = x_nchw.shape
    k = kernel
    p = k // 2
    Hout = (H + 2 * p - k) // stride + 1
    Wout = (W + 2 * p - k) // stride + 1
    Kdw = band.shape[1]              # P*(W+2p)*Cexp
    Ndw = band.shape[2]              # P*Wout*Cexp
    Nout = w3_blk.shape[1]           # P*Wout*Cout
    Cout = Nout // (P * Wout)
    PWCin = P * W * Cin
    use_res = (stride == 1) and (Cin == Cout)
    if use_res:
        # residual reuses the packed input slab; layouts must line up exactly
        assert Hout == H and Wout == W and PWCin == Nout, "residual packing mismatch"

    assert N % (Nb * P) == 0, "batch must be divisible by Nb*P"
    G = N // (Nb * P)                # grid steps (keep >= 2 for v7x megacore)

    # pack: image n = (g*Nb + b)*P + j  ->  row g*Nb+b, lane block j
    x_nhwc = jnp.transpose(x_nchw, (0, 2, 3, 1))
    x_packed = x_nhwc.reshape(G * Nb, P, H, W, Cin)
    x_packed = x_packed.transpose(0, 2, 1, 3, 4).reshape(G * Nb, H, PWCin)

    Rpad = ((H + 2 * p + 7) // 8) * 8    # sublane-aligned per-image row stride

    kern = functools.partial(
        _inverted_residual_kernel,
        stride=stride, ksize=k, use_res=use_res, Nb=Nb, H=H, Hout=Hout,
        Rpad=Rpad, Kdw=Kdw, Ndw=Ndw)

    out_packed = pl.pallas_call(
        kern,
        out_shape=jax.ShapeDtypeStruct((G * Nb, Hout, Nout), x_nchw.dtype),
        grid_spec=pltpu.PrefetchScalarGridSpec(
            num_scalar_prefetch=0,
            grid=(G,),
            in_specs=[
                pl.BlockSpec((Nb, H, PWCin), lambda g: (g, 0, 0)),
                pl.BlockSpec(w1_pad.shape, lambda g: (0, 0)),
                pl.BlockSpec(b1_pad.shape, lambda g: (0, 0)),
                pl.BlockSpec(band.shape, lambda g: (0, 0, 0)),
                pl.BlockSpec(b2_t.shape, lambda g: (0, 0)),
                pl.BlockSpec(w3_blk.shape, lambda g: (0, 0)),
                pl.BlockSpec(b3_t.shape, lambda g: (0, 0)),
            ],
            out_specs=pl.BlockSpec((Nb, Hout, Nout), lambda g: (g, 0, 0)),
            scratch_shapes=[
                pltpu.VMEM((Nb * Rpad, Kdw), jnp.float32),
                pltpu.VMEM((Nb * Hout, Ndw), jnp.float32),
            ]),
        compiler_params=pltpu.CompilerParams(
            dimension_semantics=("parallel",)),
    )(x_packed, w1_pad, b1_pad, band, b2_t, w3_blk, b3_t)

    # unpack lanes -> images, back to NCHW
    out = out_packed.reshape(G * Nb, Hout, P, Wout, Cout)
    out = out.transpose(0, 2, 1, 3, 4).reshape(N, Hout, Wout, Cout)
    return jnp.transpose(out, (0, 3, 1, 2))


# --------------------- deterministic parameter synthesis --------------------


def make_params(key, inp, oup, expand_ratio, kernel):
    """Folded (conv ⊗ eval-mode BN) parameters matching InvertedResidual.__init__."""
    cexp = inp * expand_ratio
    eps = 1e-5
    ks = jax.random.split(key, 12)

    def bn(kg, kb, km, kv, c):
        gamma = 1.0 + 0.1 * jax.random.normal(kg, (c,), jnp.float32)
        beta = 0.1 * jax.random.normal(kb, (c,), jnp.float32)
        mean = 0.1 * jax.random.normal(km, (c,), jnp.float32)
        var = 1.0 + 0.1 * jnp.abs(jax.random.normal(kv, (c,), jnp.float32))
        scale = gamma / jnp.sqrt(var + eps)
        bias = beta - mean * scale
        return scale, bias

    # conv1: (cexp, inp, 1, 1) pointwise
    w1_t = 0.2 * jax.random.normal(ks[0], (cexp, inp), jnp.float32)
    s1, b1 = bn(ks[1], ks[2], ks[3], ks[4], cexp)
    w1 = w1_t.T * s1[None, :]                                  # (inp, cexp)

    # conv_dw: (cexp, 1, k, k) depthwise
    wdw_t = 0.2 * jax.random.normal(ks[5], (cexp, kernel, kernel), jnp.float32)
    s2, b2 = bn(ks[6], ks[7], ks[8], ks[9], cexp)
    wdw = jnp.transpose(wdw_t, (1, 2, 0)) * s2[None, None, :]  # (k, k, cexp)

    # conv3: (oup, cexp, 1, 1) pointwise
    w3_t = 0.2 * jax.random.normal(ks[10], (oup, cexp), jnp.float32)
    s3, b3 = bn(ks[11], ks[0], ks[1], ks[2], oup)
    w3 = w3_t.T * s3[None, :]                                  # (cexp, oup)

    return (w1, b1, wdw, b2, w3, b3)


# ------------------------------ reference -----------------------------------


def reference(x_nchw, params, *, stride, kernel):
    w1, b1, wdw, b2, w3, b3 = params
    Cexp = w1.shape[1]
    use_res = (stride == 1) and (x_nchw.shape[1] == w3.shape[1])
    p = kernel // 2
    x = jnp.transpose(x_nchw, (0, 2, 3, 1))
    h = jnp.clip(jnp.einsum("nhwc,ce->nhwe", x, w1) + b1, 0.0, 6.0)
    dw = lax.conv_general_dilated(
        h, wdw.reshape(kernel, kernel, 1, Cexp),
        window_strides=(stride, stride), padding=[(p, p), (p, p)],
        dimension_numbers=("NHWC", "HWIO", "NHWC"),
        feature_group_count=Cexp)
    dw = jnp.clip(dw + b2, 0.0, 6.0)
    y = jnp.einsum("nhwe,eo->nhwo", dw, w3) + b3
    if use_res:
        y = y + x
    return jnp.transpose(y, (0, 3, 1, 2))


# --------------------------------- main --------------------------------------


if __name__ == "__main__":
    key = jax.random.PRNGKey(0)
    N, H, W = 8, 16, 16
    # (inp, oup, stride, expand_ratio, kernel, P, Nb)
    #   P  : images lane-packed per block  -> output lanes P*Wout*Cout >= 128
    #   Nb : images row-batched per step   -> matmul M = Nb*H ; grid = N/(P*Nb)
    configs = [
        (4, 4, 1, 3, 3, 2, 2),   # residual path (stride=1, Cin==Cout)
        (4, 4, 2, 3, 3, 4, 1),   # strided path (strided row reads, no residual)
        (4, 4, 1, 3, 5, 2, 2),   # 5x5 depthwise path
    ]
    for idx, (inp, oup, stride, er, ksz, P, Nb) in enumerate(configs):
        kx, kp, key = jax.random.split(key, 3)
        x = jax.random.normal(kx, (N, inp, H, W), jnp.float32)   # NCHW like PyTorch
        params = make_params(kp, inp, oup, er, ksz)
        prepared = prepare_params(params, W=W, stride=stride, kernel=ksz, P=P)

        out = inverted_residual(x, prepared, stride=stride, kernel=ksz, P=P, Nb=Nb)
        out = jax.block_until_ready(out)

        ref = reference(x, params, stride=stride, kernel=ksz)
        assert out.shape == ref.shape, (idx, out.shape, ref.shape)
        err = float(jnp.max(jnp.abs(out - ref)))
        assert jnp.allclose(out, ref, rtol=2e-4, atol=2e-4), (idx, err)

    print("KERNEL_OK")
</pallas_src>

<mosaic_0001>
module attributes {stable_mosaic.version = 11 : i64} {
  func.func @_inverted_residual_kernel(%arg0: i32, %arg1: memref<2x16x128xf32, #tpu.memory_space<vmem>>, %arg2: memref<128x432xf32, #tpu.memory_space<vmem>>, %arg3: memref<1x432xf32, #tpu.memory_space<vmem>>, %arg4: memref<3x432x384xf32, #tpu.memory_space<vmem>>, %arg5: memref<1x384xf32, #tpu.memory_space<vmem>>, %arg6: memref<384x128xf32, #tpu.memory_space<vmem>>, %arg7: memref<1x128xf32, #tpu.memory_space<vmem>>, %arg8: memref<2x16x128xf32, #tpu.memory_space<vmem>>, %arg9: memref<48x432xf32, #tpu.memory_space<vmem>>, %arg10: memref<32x384xf32, #tpu.memory_space<vmem>>) attributes {dimension_semantics = [#tpu.dimension_semantics<parallel>], iteration_bounds = array<i64: 2>, scalar_prefetch = 0 : i64, scratch_operands = 2 : i64, tpu.core_type = #tpu.core_type<tc>, window_params = [{transform_indices = @transform_0, window_bounds = array<i64: 2, 16, 128>}, {pipeline_mode = #tpu.pipeline_mode<synchronous>, transform_indices = @transform_1, window_bounds = array<i64: 128, 432>}, {pipeline_mode = #tpu.pipeline_mode<synchronous>, transform_indices = @transform_2, window_bounds = array<i64: 1, 432>}, {pipeline_mode = #tpu.pipeline_mode<synchronous>, transform_indices = @transform_3, window_bounds = array<i64: 3, 432, 384>}, {pipeline_mode = #tpu.pipeline_mode<synchronous>, transform_indices = @transform_4, window_bounds = array<i64: 1, 384>}, {pipeline_mode = #tpu.pipeline_mode<synchronous>, transform_indices = @transform_5, window_bounds = array<i64: 384, 128>}, {pipeline_mode = #tpu.pipeline_mode<synchronous>, transform_indices = @transform_6, window_bounds = array<i64: 1, 128>}, {transform_indices = @transform_7, window_bounds = array<i64: 2, 16, 128>}]} {
    %c0 = arith.constant 0 : index
    %c0_0 = arith.constant 0 : index
    %c0_1 = arith.constant 0 : index
    %0 = vector.load %arg1[%c0, %c0_0, %c0_1] : memref<2x16x128xf32, #tpu.memory_space<vmem>>, vector<2x16x128xf32>
    %1 = vector.shape_cast %0 : vector<2x16x128xf32> to vector<32x128xf32>
    %c0_2 = arith.constant 0 : index
    %c0_3 = arith.constant 0 : index
    %2 = vector.load %arg2[%c0_2, %c0_3] : memref<128x432xf32, #tpu.memory_space<vmem>>, vector<128x432xf32>
    %cst = arith.constant dense<0.000000e+00> : vector<32x432xf32>
    %3 = tpu.matmul %1, %2, %cst {dimension_numbers = #tpu.dot_dimension_numbers<[1], [0], [0], [1], [0, 0, 1, 1], [], []>} : vector<32x128xf32>, vector<128x432xf32>, vector<32x432xf32> -> vector<32x432xf32>
    %c0_4 = arith.constant 0 : index
    %c0_5 = arith.constant 0 : index
    %4 = vector.load %arg3[%c0_4, %c0_5] : memref<1x432xf32, #tpu.memory_space<vmem>>, vector<1x432xf32>
    %5 = vector.broadcast %4 : vector<1x432xf32> to vector<32x432xf32>
    %6 = arith.addf %3, %5 : vector<32x432xf32>
    %cst_6 = arith.constant 0.000000e+00 : f32
    %cst_7 = arith.constant 6.000000e+00 : f32
    %7 = vector.broadcast %cst_6 : f32 to vector<32x432xf32>
    %8 = arith.maximumf %7, %6 : vector<32x432xf32>
    %9 = vector.broadcast %cst_7 : f32 to vector<32x432xf32>
    %10 = arith.minimumf %9, %8 : vector<32x432xf32>
    %cst_8 = arith.constant 0.000000e+00 : f32
    %11 = vector.broadcast %cst_8 : f32 to vector<1x432xf32>
    %c0_9 = arith.constant 0 : index
    %c0_10 = arith.constant 0 : index
    %12 = vector.load %arg9[%c0_9, %c0_10] : memref<48x432xf32, #tpu.memory_space<vmem>>, vector<1x432xf32>
    tpu.vector_store %arg9[%c0_9, %c0_10], %11 {strides = array<i32>} : memref<48x432xf32, #tpu.memory_space<vmem>>, vector<1x432xf32>,
    %cst_11 = arith.constant 0.000000e+00 : f32
    %13 = vector.broadcast %cst_11 : f32 to vector<1x432xf32>
    %c17 = arith.constant 17 : index
    %c0_12 = arith.constant 0 : index
    %14 = vector.load %arg9[%c17, %c0_12] : memref<48x432xf32, #tpu.memory_space<vmem>>, vector<1x432xf32>
    tpu.vector_store %arg9[%c17, %c0_12], %13 {strides = array<i32>} : memref<48x432xf32, #tpu.memory_space<vmem>>, vector<1x432xf32>,
    %15 = vector.extract_strided_slice %10 {offsets = [0, 0], sizes = [16, 432], strides = [1, 1]} : vector<32x432xf32> to vector<16x432xf32>
    %c1 = arith.constant 1 : index
    %c0_13 = arith.constant 0 : index
    %16 = vector.load %arg9[%c1, %c0_13] : memref<48x432xf32, #tpu.memory_space<vmem>>, vector<16x432xf32>
    tpu.vector_store %arg9[%c1, %c0_13], %15 {strides = array<i32>} : memref<48x432xf32, #tpu.memory_space<vmem>>, vector<16x432xf32>,
    %cst_14 = arith.constant 0.000000e+00 : f32
    %17 = vector.broadcast %cst_14 : f32 to vector<1x432xf32>
    %c24 = arith.constant 24 : index
    %c0_15 = arith.constant 0 : index
    %18 = vector.load %arg9[%c24, %c0_15] : memref<48x432xf32, #tpu.memory_space<vmem>>, vector<1x432xf32>
    tpu.vector_store %arg9[%c24, %c0_15], %17 {strides = array<i32>} : memref<48x432xf32, #tpu.memory_space<vmem>>, vector<1x432xf32>,
    %cst_16 = arith.constant 0.000000e+00 : f32
    %19 = vector.broadcast %cst_16 : f32 to vector<1x432xf32>
    %c41 = arith.constant 41 : index
    %c0_17 = arith.constant 0 : index
    %20 = vector.load %arg9[%c41, %c0_17] : memref<48x432xf32, #tpu.memory_space<vmem>>, vector<1x432xf32>
    tpu.vector_store %arg9[%c41, %c0_17], %19 {strides = array<i32>} : memref<48x432xf32, #tpu.memory_space<vmem>>, vector<1x432xf32>,
    %21 = vector.extract_strided_slice %10 {offsets = [16, 0], sizes = [16, 432], strides = [1, 1]} : vector<32x432xf32> to vector<16x432xf32>
    %c25 = arith.constant 25 : index
    %c0_18 = arith.constant 0 : index
    %22 = vector.load %arg9[%c25, %c0_18] : memref<48x432xf32, #tpu.memory_space<vmem>>, vector<16x432xf32>
    tpu.vector_store %arg9[%c25, %c0_18], %21 {strides = array<i32>} : memref<48x432xf32, #tpu.memory_space<vmem>>, vector<16x432xf32>,
    %cst_19 = arith.constant 0.000000e+00 : f32
    %23 = vector.broadcast %cst_19 : f32 to vector<16x384xf32>
    %cst_20 = arith.constant 0.000000e+00 : f32
    %24 = vector.broadcast %cst_20 : f32 to vector<16x384xf32>
    %c0_21 = arith.constant 0 : index
    %c0_22 = arith.constant 0 : index
    %c0_23 = arith.constant 0 : index
    %25 = vector.load %arg4[%c0_21, %c0_22, %c0_23] : memref<3x432x384xf32, #tpu.memory_space<vmem>>, vector<1x432x384xf32>
    %26 = vector.shape_cast %25 : vector<1x432x384xf32> to vector<432x384xf32>
    %c0_24 = arith.constant 0 : index
    %c0_25 = arith.constant 0 : index
    %27 = vector.load %arg9[%c0_24, %c0_25] : memref<48x432xf32, #tpu.memory_space<vmem>>, vector<16x432xf32>
    %cst_26 = arith.constant dense<0.000000e+00> : vector<16x384xf32>
    %28 = tpu.matmul %27, %26, %cst_26 {dimension_numbers = #tpu.dot_dimension_numbers<[1], [0], [0], [1], [0, 0, 1, 1], [], []>} : vector<16x432xf32>, vector<432x384xf32>, vector<16x384xf32> -> vector<16x384xf32>
    %29 = arith.addf %23, %28 : vector<16x384xf32>
    %c24_27 = arith.constant 24 : index
    %c0_28 = arith.constant 0 : index
    %30 = vector.load %arg9[%c24_27, %c0_28] : memref<48x432xf32, #tpu.memory_space<vmem>>, vector<16x432xf32>
    %cst_29 = arith.constant dense<0.000000e+00> : vector<16x384xf32>
    %31 = tpu.matmul %30, %26, %cst_29 {dimension_numbers = #tpu.dot_dimension_numbers<[1], [0], [0], [1], [0, 0, 1, 1], [], []>} : vector<16x432xf32>, vector<432x384xf32>, vector<16x384xf32> -> vector<16x384xf32>
    %32 = arith.addf %24, %31 : vector<16x384xf32>
    %c1_30 = arith.constant 1 : index
    %c0_31 = arith.constant 0 : index
    %c0_32 = arith.constant 0 : index
    %33 = vector.load %arg4[%c1_30, %c0_31, %c0_32] : memref<3x432x384xf32, #tpu.memory_space<vmem>>, vector<1x432x384xf32>
    %34 = vector.shape_cast %33 : vector<1x432x384xf32> to vector<432x384xf32>
    %c1_33 = arith.constant 1 : index
    %c0_34 = arith.constant 0 : index
    %35 = vector.load %arg9[%c1_33, %c0_34] : memref<48x432xf32, #tpu.memory_space<vmem>>, vector<16x432xf32>
    %cst_35 = arith.constant dense<0.000000e+00> : vector<16x384xf32>
    %36 = tpu.matmul %35, %34, %cst_35 {dimension_numbers = #tpu.dot_dimension_numbers<[1], [0], [0], [1], [0, 0, 1, 1], [], []>} : vector<16x432xf32>, vector<432x384xf32>, vector<16x384xf32> -> vector<16x384xf32>
    %37 = arith.addf %29, %36 : vector<16x384xf32>
    %c25_36 = arith.constant 25 : index
    %c0_37 = arith.constant 0 : index
    %38 = vector.load %arg9[%c25_36, %c0_37] : memref<48x432xf32, #tpu.memory_space<vmem>>, vector<16x432xf32>
    %cst_38 = arith.constant dense<0.000000e+00> : vector<16x384xf32>
    %39 = tpu.matmul %38, %34, %cst_38 {dimension_numbers = #tpu.dot_dimension_numbers<[1], [0], [0], [1], [0, 0, 1, 1], [], []>} : vector<16x432xf32>, vector<432x384xf32>, vector<16x384xf32> -> vector<16x384xf32>
    %40 = arith.addf %32, %39 : vector<16x384xf32>
    %c2 = arith.constant 2 : index
    %c0_39 = arith.constant 0 : index
    %c0_40 = arith.constant 0 : index
    %41 = vector.load %arg4[%c2, %c0_39, %c0_40] : memref<3x432x384xf32, #tpu.memory_space<vmem>>, vector<1x432x384xf32>
    %42 = vector.shape_cast %41 : vector<1x432x384xf32> to vector<432x384xf32>
    %c2_41 = arith.constant 2 : index
    %c0_42 = arith.constant 0 : index
    %43 = vector.load %arg9[%c2_41, %c0_42] : memref<48x432xf32, #tpu.memory_space<vmem>>, vector<16x432xf32>
    %cst_43 = arith.constant dense<0.000000e+00> : vector<16x384xf32>
    %44 = tpu.matmul %43, %42, %cst_43 {dimension_numbers = #tpu.dot_dimension_numbers<[1], [0], [0], [1], [0, 0, 1, 1], [], []>} : vector<16x432xf32>, vector<432x384xf32>, vector<16x384xf32> -> vector<16x384xf32>
    %45 = arith.addf %37, %44 : vector<16x384xf32>
    %c26 = arith.constant 26 : index
    %c0_44 = arith.constant 0 : index
    %46 = vector.load %arg9[%c26, %c0_44] : memref<48x432xf32, #tpu.memory_space<vmem>>, vector<16x432xf32>
    %cst_45 = arith.constant dense<0.000000e+00> : vector<16x384xf32>
    %47 = tpu.matmul %46, %42, %cst_45 {dimension_numbers = #tpu.dot_dimension_numbers<[1], [0], [0], [1], [0, 0, 1, 1], [], []>} : vector<16x432xf32>, vector<432x384xf32>, vector<16x384xf32> -> vector<16x384xf32>
    %48 = arith.addf %40, %47 : vector<16x384xf32>
    %c0_46 = arith.constant 0 : index
    %c0_47 = arith.constant 0 : index
    %49 = vector.load %arg5[%c0_46, %c0_47] : memref<1x384xf32, #tpu.memory_space<vmem>>, vector<1x384xf32>
    %50 = vector.broadcast %49 : vector<1x384xf32> to vector<16x384xf32>
    %51 = arith.addf %45, %50 : vector<16x384xf32>
    %cst_48 = arith.constant 0.000000e+00 : f32
    %cst_49 = arith.constant 6.000000e+00 : f32
    %52 = vector.broadcast %cst_48 : f32 to vector<16x384xf32>
    %53 = arith.maximumf %52, %51 : vector<16x384xf32>
    %54 = vector.broadcast %cst_49 : f32 to vector<16x384xf32>
    %55 = arith.minimumf %54, %53 : vector<16x384xf32>
    %c0_50 = arith.constant 0 : index
    %c0_51 = arith.constant 0 : index
    %56 = vector.load %arg10[%c0_50, %c0_51] : memref<32x384xf32, #tpu.memory_space<vmem>>, vector<16x384xf32>
    tpu.vector_store %arg10[%c0_50, %c0_51], %55 {strides = array<i32>} : memref<32x384xf32, #tpu.memory_space<vmem>>, vector<16x384xf32>,
    %c0_52 = arith.constant 0 : index
    %c0_53 = arith.constant 0 : index
    %57 = vector.load %arg5[%c0_52, %c0_53] : memref<1x384xf32, #tpu.memory_space<vmem>>, vector<1x384xf32>
    %58 = vector.broadcast %57 : vector<1x384xf32> to vector<16x384xf32>
    %59 = arith.addf %48, %58 : vector<16x384xf32>
    %cst_54 = arith.constant 0.000000e+00 : f32
    %cst_55 = arith.constant 6.000000e+00 : f32
    %60 = vector.broadcast %cst_54 : f32 to vector<16x384xf32>
    %61 = arith.maximumf %60, %59 : vector<16x384xf32>
    %62 = vector.broadcast %cst_55 : f32 to vector<16x384xf32>
    %63 = arith.minimumf %62, %61 : vector<16x384xf32>
    %c16 = arith.constant 16 : index
    %c0_56 = arith.constant 0 : index
    %64 = vector.load %arg10[%c16, %c0_56] : memref<32x384xf32, #tpu.memory_space<vmem>>, vector<16x384xf32>
    tpu.vector_store %arg10[%c16, %c0_56], %63 {strides = array<i32>} : memref<32x384xf32, #tpu.memory_space<vmem>>, vector<16x384xf32>,
    %c0_57 = arith.constant 0 : index
    %c0_58 = arith.constant 0 : index
    %65 = vector.load %arg10[%c0_57, %c0_58] : memref<32x384xf32, #tpu.memory_space<vmem>>, vector<32x384xf32>
    %c0_59 = arith.constant 0 : index
    %c0_60 = arith.constant 0 : index
    %66 = vector.load %arg6[%c0_59, %c0_60] : memref<384x128xf32, #tpu.memory_space<vmem>>, vector<384x128xf32>
    %cst_61 = arith.constant dense<0.000000e+00> : vector<32x128xf32>
    %67 = tpu.matmul %65, %66, %cst_61 {dimension_numbers = #tpu.dot_dimension_numbers<[1], [0], [0], [1], [0, 0, 1, 1], [], []>} : vector<32x384xf32>, vector<384x128xf32>, vector<32x128xf32> -> vector<32x128xf32>
    %c0_62 = arith.constant 0 : index
    %c0_63 = arith.constant 0 : index
    %68 = vector.load %arg7[%c0_62, %c0_63] : memref<1x128xf32, #tpu.memory_space<vmem>>, vector<1x128xf32>
    %69 = vector.broadcast %68 : vector<1x128xf32> to vector<32x128xf32>
    %70 = arith.addf %67, %69 : vector<32x128xf32>
    %71 = arith.addf %70, %1 : vector<32x128xf32>
    %72 = vector.shape_cast %71 : vector<32x128xf32> to vector<2x16x128xf32>
    %c0_64 = arith.constant 0 : index
    %c0_65 = arith.constant 0 : index
    %c0_66 = arith.constant 0 : index
    %73 = vector.load %arg8[%c0_64, %c0_65, %c0_66] : memref<2x16x128xf32, #tpu.memory_space<vmem>>, vector<2x16x128xf32>
    tpu.vector_store %arg8[%c0_64, %c0_65, %c0_66], %72 {strides = array<i32>} : memref<2x16x128xf32, #tpu.memory_space<vmem>>, vector<2x16x128xf32>,
    return
  }
  func.func @transform_0(%arg0: i32) -> (i32, i32, i32) {
    %c0_i32 = arith.constant 0 : i32
    %c0_i32_0 = arith.constant 0 : i32
    %c0_i32_1 = arith.constant 0 : i32
    return %arg0, %c0_i32, %c0_i32_0 : i32, i32, i32
  }
  func.func @transform_1(%arg0: i32) -> (i32, i32) {
    %c0_i32 = arith.constant 0 : i32
    %c0_i32_0 = arith.constant 0 : i32
    %c0_i32_1 = arith.constant 0 : i32
    return %c0_i32, %c0_i32_0 : i32, i32
  }
  func.func @transform_2(%arg0: i32) -> (i32, i32) {
    %c0_i32 = arith.constant 0 : i32
    %c0_i32_0 = arith.constant 0 : i32
    %c0_i32_1 = arith.constant 0 : i32
    return %c0_i32, %c0_i32_0 : i32, i32
  }
  func.func @transform_3(%arg0: i32) -> (i32, i32, i32) {
    %c0_i32 = arith.constant 0 : i32
    %c0_i32_0 = arith.constant 0 : i32
    %c0_i32_1 = arith.constant 0 : i32
    %c0_i32_2 = arith.constant 0 : i32
    return %c0_i32, %c0_i32_0, %c0_i32_1 : i32, i32, i32
  }
  func.func @transform_4(%arg0: i32) -> (i32, i32) {
    %c0_i32 = arith.constant 0 : i32
    %c0_i32_0 = arith.constant 0 : i32
    %c0_i32_1 = arith.constant 0 : i32
    return %c0_i32, %c0_i32_0 : i32, i32
  }
  func.func @transform_5(%arg0: i32) -> (i32, i32) {
    %c0_i32 = arith.constant 0 : i32
    %c0_i32_0 = arith.constant 0 : i32
    %c0_i32_1 = arith.constant 0 : i32
    return %c0_i32, %c0_i32_0 : i32, i32
  }
  func.func @transform_6(%arg0: i32) -> (i32, i32) {
    %c0_i32 = arith.constant 0 : i32
    %c0_i32_0 = arith.constant 0 : i32
    %c0_i32_1 = arith.constant 0 : i32
    return %c0_i32, %c0_i32_0 : i32, i32
  }
  func.func @transform_7(%arg0: i32) -> (i32, i32, i32) {
    %c0_i32 = arith.constant 0 : i32
    %c0_i32_0 = arith.constant 0 : i32
    %c0_i32_1 = arith.constant 0 : i32
    return %arg0, %c0_i32, %c0_i32_0 : i32, i32, i32
  }
}

</mosaic_0001>

<bundles_post_ra>
// kernel: tpu_custom_call.1
= control target key start
LH: loop header
LB: loop body
LE: loop exit
PB: predicated region body
PF: predicated region fallthrough
CT: control target
= control target key end

     0   :  { %12 = vsyncpa [#allocation5], 0  ;;  %s7630_s0 = inlined_call_operand.hbm [shape: f32[4,16,128], index: 0, kind: input, shape index: {}]   ;;  %s7631_s1 = inlined_call_operand.vmem [shape: f32[128,432], index: 1, kind: input, shape index: {}]   ;;  %s7632_s2 = inlined_call_operand.hbm [shape: f32[1,432], index: 2, kind: input, shape index: {}]   ;;  %s7633_s3 = inlined_call_operand.hbm [shape: f32[3,432,384], index: 3, kind: input, shape index: {}]   ;;  %s7634_s4 = inlined_call_operand.hbm [shape: f32[1,384], index: 4, kind: input, shape index: {}]   ;;  %s7635_s5 = inlined_call_operand.hbm [shape: f32[384,128], index: 5, kind: input, shape index: {}]   ;;  %s7636_s6 = inlined_call_operand.hbm [shape: f32[1,128], index: 6, kind: input, shape index: {}]   ;;  %s7637_s7 = inlined_call_operand.hbm [shape: f32[4,16,128], index: 7, kind: output, shape index: {}]  }
   0x1   :  { %14 = vsyncpa [#allocation5 + $0x1], 0 }
   0x2   :  { %15 = vsyncpa [#allocation8], 0 }
   0x3   :  { %16 = vsyncpa [#allocation11], 0 }
   0x4   :  { %17 = vsyncpa [#allocation14], 0 }
   0x5   :  { %18 = vsyncpa [#allocation6], 0 }
   0x6   :  { %20 = vsyncpa [#allocation6 + $0x1], 0  ;;  %s5801_s24 = smov 0   ;;  %s5803_s25 = smov 0  }
   0x7   :  { %s5805_s26 = smov 0   ;;  %s5807_s27 = smov 0  }
   0x8 LB: > { %s5746_s28 = smov [#allocation7]   ;;  %s5822_s30 = sadd.s32 4294967295, %s5744_s27   ;;  %s5744_s27 = sphi %s5807_s27, %s8112_s27   ;;  %s5740_s26 = sphi %s5805_s26, %s8111_s26   ;;  %s5736_s25 = sphi %s5803_s25, %s8110_s25   ;;  %s5732_s24 = sphi %s5801_s24, %s8109_s24  }
   0x9   : > { %s225_s29 = sshll.u32 %s5746_s28, 4  ;;  %p3787_p0 = scmp.ge.s32.totalorder %s5744_s27, 1  ;;  %s226_s29 = int_to_ptr.vmem [resolvable:$true] %s225_s29 }
   0xa   : > { %p7638_p1 = scmp.eq.s32.totalorder %s5822_s30, 0  ;;  %p209_p2 = scmp.lt.s32.totalorder %s5744_s27, 3 }
   0xb   : > { %s5747_s9 = smov [#allocation10]   ;;  %s5748_s11 = smov [#allocation9]  }
   0xc   : > { %p5827_p3 = pnand %p3787_p0, %p209_p2  ;;  %s249_s10 = sshll.u32 %s5747_s9, 4  ;;  %s5834_s10 = int_to_ptr.vmem [resolvable:$true] %s249_s10 }
   0xd   : > { %s235_s12 = sshll.u32 %s5748_s11, 4  ;;  %s5496_s16 = scalar_lea.hbm %s7632_s2, 64  ;;  %s5842_s12 = int_to_ptr.vmem [resolvable:$true] %s235_s12 }
   0xe   : > { %s7795_s8 = scalar_select %p5827_p3, 1, 0 }
   0xf   : > { %p5401_p5 = pneg %p5827_p3  ;;  %p5497_p7 = scmp.ne.s32.totalorder %s7632_s2, %s5496_s16 }
  0x10   : > { %p5503_p11 = scmp.lt.u32.totalorder %s5496_s16, %s7632_s2 }
  0x11   : > { %p5838_p6 = pnand %p5401_p5, %p7638_p1 }
  0x13   : > { %p5852_p8 = pneg %p5838_p6 }
  0x15   : > { %p5499_p9 = pnand %p5852_p8, %p5497_p7 }
  0x17   : > { %p5500_p10 = pneg %p5499_p9 }
  0x19   : > { %p5505_p12 = pnand %p5503_p11, %p5500_p10 }
  0x1b   : > { %5508 = shalt.err (!%p5505_p12)
}
  0x1c   : > { %s5509_s22 = scalar_lea.vmem %s226_s29, 64  ;;  %p5517_p5 = scmp.lt.s32.totalorder %s226_s29, %s226_s29 }
  0x1d   : > { %p5510_p13 = scmp.ne.s32.totalorder %s226_s29, %s5509_s22  ;;  %p5518_p4 = scmp.lt.s32.totalorder %s5509_s22, %s5509_s22 }
  0x1f   : > { %p5512_p0 = pnand %p5510_p13, %p5852_p8  ;;  %p5519_p1 = por %p5518_p4, %p5517_p5 }
  0x21   : > { %p5513_p2 = pneg %p5512_p0 }
  0x23   : > { %p5520_p3 = pnand %p5519_p1, %p5513_p2 }
  0x25   : > { %5523 = shalt.err (!%p5520_p3)
}
  0x26   : > { %5404 = dma.hbm_to_vmem [thread:$0]  (!%p5838_p6), %s7632_s2, 64, %s226_s29, [#allocation8]  }
  0x27   : > { %s5524_s14 = scalar_lea.hbm %s7634_s4, 48 }
  0x28   : > { %p5525_p7 = scmp.ne.s32.totalorder %s7634_s4, %s5524_s14  ;;  %p5531_p1 = scmp.lt.u32.totalorder %s5524_s14, %s7634_s4 }
  0x2a   : > { %p5527_p9 = pnand %p5525_p7, %p5852_p8 }
  0x2c   : > { %p5528_p4 = pneg %p5527_p9 }
  0x2e   : > { %p5533_p3 = pnand %p5531_p1, %p5528_p4 }
  0x30   : > { %5536 = shalt.err (!%p5533_p3)
}
  0x31   : > { %s5537_s29 = scalar_lea.vmem %s5834_s10, 48  ;;  %s5544_s20 = scalar_lea.vmem %s5834_s10, 64 }
  0x32   : > { %p5538_p10 = scmp.ne.s32.totalorder %s5834_s10, %s5537_s29  ;;  %p5545_p13 = scmp.lt.s32.totalorder %s5834_s10, %s5834_s10 }
  0x33   : > { %p5546_p0 = scmp.lt.s32.totalorder %s5544_s20, %s5537_s29 }
  0x34   : > { %p5540_p11 = pnand %p5538_p10, %p5852_p8 }
  0x35   : > { %p5547_p2 = por %p5546_p0, %p5545_p13 }
  0x36   : > { %p5541_p12 = pneg %p5540_p11 }
  0x38   : > { %p5548_p5 = pnand %p5547_p2, %p5541_p12 }
  0x3a   : > { %5551 = shalt.err (!%p5548_p5)
}
  0x3b   : > { %5410 = dma.hbm_to_vmem [thread:$0]  (!%p5838_p6), %s7634_s4, 48, %s5834_s10, [#allocation11]  }
  0x3c   : > { %s5552_s9 = scalar_lea.hbm %s7633_s3, 62208 }
  0x3d   : > { %p5553_p7 = scmp.ne.s32.totalorder %s7633_s3, %s5552_s9  ;;  %p5559_p1 = scmp.lt.u32.totalorder %s5552_s9, %s7633_s3 }
  0x3f   : > { %p5555_p9 = pnand %p5553_p7, %p5852_p8 }
  0x41   : > { %p5556_p4 = pneg %p5555_p9 }
  0x43   : > { %p5561_p3 = pnand %p5559_p1, %p5556_p4 }
  0x45   : > { %5564 = shalt.err (!%p5561_p3)
}
  0x46   : > { %s5565_s10 = scalar_lea.vmem %s5842_s12, 62208  ;;  %p5573_p13 = scmp.lt.s32.totalorder %s5842_s12, %s5842_s12 }
  0x47   : > { %p5566_p10 = scmp.ne.s32.totalorder %s5842_s12, %s5565_s10  ;;  %p5574_p0 = scmp.lt.s32.totalorder %s5565_s10, %s5565_s10 }
  0x49   : > { %p5568_p11 = pnand %p5566_p10, %p5852_p8  ;;  %p5575_p2 = por %p5574_p0, %p5573_p13 }
  0x4b   : > { %p5569_p12 = pneg %p5568_p11 }
  0x4d   : > { %p5576_p5 = pnand %p5575_p2, %p5569_p12 }
  0x4f   : > { %5579 = shalt.err (!%p5576_p5)
}
  0x50   : > { %s5749_s17 = smov 384   ;;  %s5750_s18 = smov 24  }
  0x51   : > { %5407 = dma.hbm_to_vmem [thread:$0]  (!%p5838_p6), %s7633_s3, 62208, %s5842_s12, [#allocation8], %s5749_s17, %s5749_s17, %s5750_s18  }
  0x52   : > { %s5751_s21 = smov [#allocation12]   ;;  %s5580_s9 = scalar_lea.hbm %s7635_s5, 6144 }
  0x53   : > { %s259_s22 = sshll.u32 %s5751_s21, 4  ;;  %p5581_p7 = scmp.ne.s32.totalorder %s7635_s5, %s5580_s9  ;;  %s260_s22 = int_to_ptr.vmem [resolvable:$true] %s259_s22 }
  0x54   : > { %p5587_p1 = scmp.lt.u32.totalorder %s5580_s9, %s7635_s5 }
  0x55   : > { %p5583_p9 = pnand %p5581_p7, %p5852_p8 }
  0x57   : > { %p5584_p4 = pneg %p5583_p9 }
  0x59   : > { %p5589_p3 = pnand %p5587_p1, %p5584_p4 }
  0x5b   : > { %5592 = shalt.err (!%p5589_p3)
}
  0x5c   : > { %s5593_s12 = scalar_lea.vmem %s260_s22, 6144  ;;  %p5601_p13 = scmp.lt.s32.totalorder %s260_s22, %s260_s22 }
  0x5d   : > { %p5594_p10 = scmp.ne.s32.totalorder %s260_s22, %s5593_s12  ;;  %p5602_p0 = scmp.lt.s32.totalorder %s5593_s12, %s5593_s12 }
  0x5f   : > { %p5596_p11 = pnand %p5594_p10, %p5852_p8  ;;  %p5603_p2 = por %p5602_p0, %p5601_p13 }
  0x61   : > { %p5597_p12 = pneg %p5596_p11 }
  0x63   : > { %p5604_p5 = pnand %p5603_p2, %p5597_p12 }
  0x65   : > { %5607 = shalt.err (!%p5604_p5)
}
  0x66   : > { %s7640_s10 = smov 128   ;;  %s5753_s17 = smov 8  }
  0x67   : > { %5413 = dma.hbm_to_vmem [thread:$0]  (!%p5838_p6), %s7635_s5, 6144, %s260_s22, [#allocation11], %s7640_s10, %s7640_s10, %s5753_s17  }
  0x68   : > { %s5754_s20 = smov [#allocation13]   ;;  %s5608_s9 = scalar_lea.hbm %s7636_s6, 16 }
  0x69   : > { %s273_s21 = sshll.u32 %s5754_s20, 4  ;;  %p5609_p7 = scmp.ne.s32.totalorder %s7636_s6, %s5608_s9  ;;  %s274_s21 = int_to_ptr.vmem [resolvable:$true] %s273_s21 }
  0x6a   : > { %p5615_p1 = scmp.lt.u32.totalorder %s5608_s9, %s7636_s6 }
  0x6b   : > { %p5611_p9 = pnand %p5609_p7, %p5852_p8 }
  0x6d   : > { %p5612_p4 = pneg %p5611_p9 }
  0x6f   : > { %p5617_p3 = pnand %p5615_p1, %p5612_p4 }
  0x71   : > { %5620 = shalt.err (!%p5617_p3)
}
  0x72   : > { %s5621_s22 = scalar_lea.vmem %s274_s21, 16  ;;  %s5628_s12 = scalar_lea.vmem %s274_s21, 32 }
  0x73   : > { %p5622_p10 = scmp.ne.s32.totalorder %s274_s21, %s5621_s22  ;;  %p5629_p13 = scmp.lt.s32.totalorder %s274_s21, %s274_s21 }
  0x74   : > { %p5630_p0 = scmp.lt.s32.totalorder %s5628_s12, %s5621_s22 }
  0x75   : > { %p5624_p11 = pnand %p5622_p10, %p5852_p8 }
  0x76   : > { %p5631_p2 = por %p5630_p0, %p5629_p13 }
  0x77   : > { %p5625_p12 = pneg %p5624_p11 }
  0x79   : > { %p5632_p5 = pnand %p5631_p2, %p5625_p12 }
  0x7b   : > { %5635 = shalt.err (!%p5632_p5)
}
  0x7c   : > { %5416 = dma.hbm_to_vmem [thread:$0]  (!%p5838_p6), %s7636_s6, 16, %s274_s21, [#allocation14]  }
  0x7d   : > { %s3786_s19 = sadd.s32 4294967294, %s5744_s27   ;;  %s5956_s13 = sadd.s32 1, %s5744_s27  }
  0x7e   : > { %s33_s20 = sadd.s32 1, %s5740_s26  ;;  %s30_s23 = ssub.s32 %s5744_s27, %s5956_s13 }
  0x7f   : > { %p40_p8 = scmp.ne.s32.totalorder %s5740_s26, %s5736_s25  ;;  %p31_p7 = scmp.eq.s32.totalorder %s30_s23, 0 }
  0x80   : > { %p41_p9 = scmp.eq.s32.totalorder %s5744_s27, 0  ;;  %p46_p4 = scmp.ne.s32.totalorder %s5736_s25, %s5732_s24 }
  0x81   : > { %p196_p1 = scmp.eq.s32.totalorder %s5822_s30, 1  ;;  %p7798_p10 = scmp.eq.s32.totalorder %s5822_s30, 0 }
  0x82   : > { %s5968_s28 = scalar_select %p31_p7, %s5740_s26, %s33_s20  }
  0x83   : > { %p42_p3 = por %p41_p9, %p40_p8  ;;  %p5972_p11 = por %p7798_p10, %p46_p4 }
  0x84   : > { %p5976_p6 = por %p196_p1, %p40_p8  ;;  %p202_p12 = scmp.eq.s32.totalorder %s3786_s19, 1 }
  0x85   : > { %p5430_p13 = scmp.lt.s32.totalorder %s5744_s27, 2  ;;  %s284_s11 = sand.u32 1, %s5740_s26  }
  0x86   : > { %s7800_s21 = scalar_select %p5976_p6, 1, 0 }
  0x87   : > { %p5982_p0 = por %p202_p12, %p46_p4  ;;  %s3794_s15 = sshll.u32 %s284_s11, 5 }
  0x88   : > { %s3838_s16 = sshll.u32 %s5744_s27, 9  ;;  %s288_s29 = scalar_lea.vmem [#allocation4], %s3794_s15 }
  0x89   : > { %s7801_s14 = scalar_select %p5982_p0, 1, 0 }
  0x8a   : > { %s5990_s18 = scalar_lea.hbm %s7630_s0, %s3838_s16  ;;  %s296_s20 = sshll.u32 %s288_s29, 4  ;;  %s5996_s20 = int_to_ptr.vmem [resolvable:$true] %s296_s20 }
  0x8b   : > { %p5992_p2 = pnand %p5430_p13, %p42_p3  ;;  %s5998_s23 = scalar_lea.sflag [#allocation5], %s284_s11 }
  0x8c   : > { %s5636_s10 = scalar_lea.hbm %s5990_s18, 512  ;;  %s5641_s22 = scalar_lea.hbm %s7630_s0, 1024 }
  0x8d   : > { %p5637_p5 = scmp.ne.s32.totalorder %s5990_s18, %s5636_s10  ;;  %p5638_p8 = pneg %p5992_p2 }
  0x8e   : > { %p5642_p4 = scmp.lt.u32.totalorder %s5990_s18, %s7630_s0  ;;  %p5643_p1 = scmp.lt.u32.totalorder %s5641_s22, %s5636_s10 }
  0x8f   : > { %p5639_p7 = pnand %p5638_p8, %p5637_p5  ;;  %p5645_p10 = scmp.lt.u32.totalorder %s5636_s10, %s5990_s18 }
  0x90   : > { %p5644_p3 = por %p5643_p1, %p5642_p4 }
  0x91   : > { %p5640_p9 = pneg %p5639_p7 }
  0x92   : > { %p5646_p12 = por %p5645_p10, %p5644_p3 }
  0x94   : > { %p5647_p13 = pnand %p5646_p12, %p5640_p9 }
  0x96   : > { %5650 = shalt.err (!%p5647_p13)
}
  0x97   : > { %s5651_s11 = scalar_lea.vmem %s5996_s20, 512  ;;  %s5755_s15 = smov [#allocation4]  }
  0x98   : > { %p5652_p5 = scmp.ne.s32.totalorder %s5996_s20, %s5651_s11  ;;  %s5656_s16 = sshll.u32 %s5755_s15, 4  ;;  %s5657_s16 = int_to_ptr.vmem [resolvable:$false] %s5656_s16 }
  0x99   : > { %s5658_s12 = scalar_lea.vmem %s5657_s16, 1024  ;;  %p5659_p6 = scmp.lt.s32.totalorder %s5996_s20, %s5657_s16 }
  0x9a   : > { %p5654_p7 = pnand %p5652_p5, %p5638_p8  ;;  %p5660_p4 = scmp.lt.s32.totalorder %s5658_s12, %s5651_s11 }
  0x9c   : > { %p5655_p0 = pneg %p5654_p7  ;;  %p5661_p1 = por %p5660_p4, %p5659_p6 }
  0x9e   : > { %p5662_p3 = pnand %p5661_p1, %p5655_p0 }
  0xa0   : > { %5665 = shalt.err (!%p5662_p3)
}
  0xa1   : > { %s7803_s10 = smov 128   ;;  %p7804_p8 = scmp.ne.s32.totalorder %s7795_s8, 0 }
  0xa2   : > { %5420 = dma.hbm_to_vmem [thread:$0]  (!%p5992_p2), %s5990_s18, 512, %s5996_s20, %s5998_s23, %s7803_s10, %s7803_s10, %s5753_s17  }
  0xa3   : > { %308 = sbr.rel (%p7804_p8) target bundleno = 1438 (0x59e), region = 48 }
  0xaa   : > { %s6032_s22 = sand.u32 1, %s5736_s25  }
  0xab   : > { %s7642_s29 = sshll.u32 %s6032_s22, 5  ;;  %s311_s11 = scalar_lea.sflag [#allocation5], %s6032_s22 }
  0xac   : > { %s6038_s19 = scalar_lea.vmem [#allocation4], %s7642_s29 }
  0xad   : > { %5711 = dma.done.wait (%p5972_p11), %s311_s11, 512  }
  0xae   : > { %5713 = vsyncadd (%p5972_p11), %s311_s11, 4294966784  ;;  %p7805_p6 = scmp.eq.s32.totalorder %s5822_s30, 0 }
  0xb0   : > { %5715 = dma.done.wait (%p7805_p6), [#allocation8], 62272   ;;  %p7806_p0 = pmov %p7805_p6 }
  0xb2   : > { %5717 = vsyncadd (%p7806_p0), [#allocation8], 4294905024  ;;  %p7807_p2 = pmov %p7806_p0 }
  0xb3   : > { %p7808_p9 = pmov %p7806_p0 }
  0xb4   : > { %5719 = dma.done.wait (%p7807_p2), [#allocation11], 6192  }
  0xb5   : > { %5721 = vsyncadd (%p7808_p9), [#allocation11], 4294961104  ;;  %p7809_p10 = pmov %p7806_p0 }
  0xb6   : > { %p7810_p12 = pmov %p7806_p0 }
  0xb7   : > { %5723 = dma.done.wait (%p7809_p10), [#allocation14], 16  }
  0xb8   : > { %5725 = vsyncadd (%p7810_p12), [#allocation14], 4294967280  ;;  %v5756_v0 = vmov 0.0   ;;  %v372_v1 = vld [vmem:[%s7631_s1 + $0x8] sm:$0xff]  ;;  %v371_v3 = vld [vmem:[%s7631_s1] sm:$0xff]  ;;  %vm684_vm1 = vcmask 1040384  }
  0xb9   : > { %521 = vmatprep.mubr.f32.mxu0 %v5756_v0  ;;  %610 = vmatprep.mubr.f32.mxu1 %v5756_v0  ;;  %v376_v2 = vld [vmem:[%s7631_s1 + $0x28] sm:$0xff]  ;;  %v375_v5 = vld [vmem:[%s7631_s1 + $0x20] sm:$0xff]  ;;  %v374_v28 = vld [vmem:[%s7631_s1 + $0x18] sm:$0xff]  ;;  %vm1135_vm2 = vcmask 1046528   ;;  %vm712_vm3 = vcmask 392193   ;;  %vm722_vm4 = vcmask 385024  }
  0xba   : > { %v4171_v4 = vpack.c.bf16 %v376_v2, %v372_v1  ;;  %v380_v6 = vld [vmem:[%s7631_s1 + $0x48] sm:$0xff]  ;;  %v4173_v8 = vpack.c.bf16 %v375_v5, %v371_v3  ;;  %v379_v10 = vld [vmem:[%s7631_s1 + $0x40] sm:$0xff]  ;;  %v378_v29 = vld [vmem:[%s7631_s1 + $0x38] sm:$0xff]  ;;  %vm717_vm5 = vcmask 392192   ;;  %vm2626_vm6 = vcmask 1045504   ;;  %s8105_s11 = sshll.u32 %s6032_s22, 5 }
  0xbb   : > { %v384_v7 = vld [vmem:[%s7631_s1 + $0x68] sm:$0xff]  ;;  %v383_v11 = vld [vmem:[%s7631_s1 + $0x60] sm:$0xff]  ;;  %v4203_v32 = vpack.c.bf16 %v378_v29, %v374_v28  ;;  %v373_v33 = vld [vmem:[%s7631_s1 + $0x10] sm:$0xff]  ;;  %s364_s8 = scalar_lea.vmem [#allocation15], %s8105_s11  ;;  %s3840_s9 = sshll.u32 %s5822_s30, 9 }
  0xbc   : > { %v4175_v9 = vpack.c.bf16 %v384_v7, %v380_v6  ;;  %v388_v12 = vld [vmem:[%s7631_s1 + $0x88] sm:$0xff]  ;;  %4172 = vmatprep.subr.bf16.mxu0 %v4171_v4  ;;  %v4177_v14 = vpack.c.bf16 %v383_v11, %v379_v10  ;;  %v387_v16 = vld [vmem:[%s7631_s1 + $0x80] sm:$0xff]  ;;  %v377_v34 = vld [vmem:[%s7631_s1 + $0x30] sm:$0xff]  ;;  %s3665_s17 = sshll.u32 %s364_s8, 4  ;;  %s7585_s20 = scalar_lea.hbm %s7637_s7, %s3840_s9  ;;  %s7580_s17 = int_to_ptr.vmem [resolvable:$true] %s3665_s17 }
  0xbd   : > { %v392_v13 = vld [vmem:[%s7631_s1 + $0xa8] sm:$0xff]  ;;  %4174 = vmatpush1.bf16.msra.mxu0 %v4173_v8  ;;  %v391_v17 = vld [vmem:[%s7631_s1 + $0xa0] sm:$0xff]  ;;  %v382_v35 = vld [vmem:[%s7631_s1 + $0x58] sm:$0xff]  ;;  %v4205_v37 = vpack.c.bf16 %v377_v34, %v373_v33  ;;  %4204 = vmatprep.subr.bf16.mxu1 %v4203_v32  ;;  %s3651_s23 = scalar_lea.sflag [#allocation6], %s6032_s22  ;;  %s5666_s15 = scalar_lea.vmem %s7580_s17, 512 }
  0xbe   : > { %4176 = vmatprep.subr.bf16.mxu0 %v4175_v9  ;;  %v4179_v15 = vpack.c.bf16 %v392_v13, %v388_v12  ;;  %v396_v18 = vld [vmem:[%s7631_s1 + $0xc8] sm:$0xff]  ;;  %v4181_v20 = vpack.c.bf16 %v391_v17, %v387_v16  ;;  %v395_v22 = vld [vmem:[%s7631_s1 + $0xc0] sm:$0xff]  ;;  %v386_v38 = vld [vmem:[%s7631_s1 + $0x78] sm:$0xff]  ;;  %p5667_p11 = scmp.ne.s32.totalorder %s7580_s17, %s5666_s15  ;;  %p8106_p13 = scmp.ne.s32.totalorder %s7800_s21, 0 }
  0xbf   : > { %v400_v19 = vld [vmem:[%s7631_s1 + $0xe8] sm:$0xff]  ;;  %v399_v23 = vld [vmem:[%s7631_s1 + $0xe0] sm:$0xff]  ;;  %v381_v39 = vld [vmem:[%s7631_s1 + $0x50] sm:$0xff]  ;;  %v4207_v42 = vpack.c.bf16 %v386_v38, %v382_v35  ;;  %4206 = vmatpush1.bf16.msra.mxu1 %v4205_v37  ;;  %s5758_s30 = smov [#allocation15]  }
  0xc0   : > { %v4183_v21 = vpack.c.bf16 %v400_v19, %v396_v18  ;;  %v404_v24 = vld [vmem:[%s7631_s1 + $0x108] sm:$0xff]  ;;  %v403_v26 = vld [vmem:[%s7631_s1 + $0x100] sm:$0xff]  ;;  %v4185_v30 = vpack.c.bf16 %v399_v23, %v395_v22  ;;  %v385_v40 = vld [vmem:[%s7631_s1 + $0x70] sm:$0xff]  ;;  %p5668_p5 = pnand %p5667_p11, %p8106_p13  ;;  %s5670_s16 = sshll.u32 %s5758_s30, 4  ;;  %s5671_s16 = int_to_ptr.vmem [resolvable:$false] %s5670_s16 }
  0xc1   : > { %4178 = vmatpush1.bf16.msra.mxu0 %v4177_v14  ;;  %v408_v25 = vld [vmem:[%s7631_s1 + $0x128] sm:$0xff]  ;;  %v407_v27 = vld [vmem:[%s7631_s1 + $0x120] sm:$0xff]  ;;  %v390_v43 = vld [vmem:[%s7631_s1 + $0x98] sm:$0xff]  ;;  %v4209_v45 = vpack.c.bf16 %v385_v40, %v381_v39  ;;  %4208 = vmatprep.subr.bf16.mxu1 %v4207_v42  ;;  %s5672_s12 = scalar_lea.vmem %s5671_s16, 1024  ;;  %p5673_p4 = scmp.lt.s32.totalorder %s7580_s17, %s5671_s16 }
  0xc2   : > { %4180 = vmatprep.subr.bf16.mxu0 %v4179_v15  ;;  %v412_v31 = vld [vmem:[%s7631_s1 + $0x148] sm:$0xff]  ;;  %v4187_v36 = vpack.c.bf16 %v408_v25, %v404_v24  ;;  %v394_v44 = vld [vmem:[%s7631_s1 + $0xb8] sm:$0xff]  ;;  %v4189_v46 = vpack.c.bf16 %v407_v27, %v403_v26  ;;  %v411_v47 = vld [vmem:[%s7631_s1 + $0x140] sm:$0xff]  ;;  %p5669_p7 = pneg %p5668_p5  ;;  %p5674_p1 = scmp.lt.s32.totalorder %s5672_s12, %s5666_s15 }
  0xc3   : > { %v416_v41 = vld [vmem:[%s7631_s1 + $0x168] sm:$0xff]  ;;  %v4211_v48 = vpack.c.bf16 %v394_v44, %v390_v43  ;;  %v389_v49 = vld [vmem:[%s7631_s1 + $0x90] sm:$0xff]  ;;  %v415_v52 = vld [vmem:[%s7631_s1 + $0x160] sm:$0xff]  ;;  %4210 = vmatpush1.bf16.msra.mxu1 %v4209_v45 }
  0xc4   : > { %v393_v50 = vld [vmem:[%s7631_s1 + $0xb0] sm:$0xff]  ;;  %v4191_v51 = vpack.c.bf16 %v416_v41, %v412_v31  ;;  %v398_v53 = vld [vmem:[%s7631_s1 + $0xd8] sm:$0xff]  ;;  %v420_v55 = vld [vmem:[%s7631_s1 + $0x188] sm:$0xff]  ;;  %v4193_v58 = vpack.c.bf16 %v415_v52, %v411_v47  ;;  %p5675_p3 = por %p5674_p1, %p5673_p4 }
  0xc5   : > { %4182 = vmatpush1.bf16.msra.mxu0 %v4181_v20  ;;  %v402_v54 = vld [vmem:[%s7631_s1 + $0xf8] sm:$0xff]  ;;  %v424_v56 = vld [vmem:[%s7631_s1 + $0x1a8] sm:$0xff]  ;;  %v4213_v57 = vpack.c.bf16 %v393_v50, %v389_v49  ;;  %v419_v59 = vld [vmem:[%s7631_s1 + $0x180] sm:$0xff]  ;;  %4212 = vmatprep.subr.bf16.mxu1 %v4211_v48 }
  0xc6   : > { %4184 = vmatprep.subr.bf16.mxu0 %v4183_v21  ;;  %v4215_v60 = vpack.c.bf16 %v402_v54, %v398_v53  ;;  %v397_v61 = vld [vmem:[%s7631_s1 + $0xd0] sm:$0xff]  ;;  %v4195_v63 = vpack.c.bf16 %v424_v56, %v420_v55  ;;  %v423_v1 = vld [vmem:[%s7631_s1 + $0x1a0] sm:$0xff]  ;;  %v406_v2 = vld [vmem:[%s7631_s1 + $0x118] sm:$0xff]  ;;  %p5676_p8 = pnand %p5675_p3, %p5669_p7 }
  0xc7   : > { %v401_v62 = vld [vmem:[%s7631_s1 + $0xf0] sm:$0xff]  ;;  %v410_v3 = vld [vmem:[%s7631_s1 + $0x138] sm:$0xff]  ;;  %v428_v4 = vld [vmem:[%s7631_s1 + $0x1c8] sm:$0xff]  ;;  %4214 = vmatpush1.bf16.msra.mxu1 %v4213_v57  ;;  %v4197_v7 = vpack.c.bf16 %v423_v1, %v419_v59 }
  0xc8   : > { %v432_v5 = vld [vmem:[%s7631_s1 + $0x1e8] sm:$0xff]  ;;  %v4217_v6 = vpack.c.bf16 %v401_v62, %v397_v61  ;;  %v427_v8 = vld [vmem:[%s7631_s1 + $0x1c0] sm:$0xff]  ;;  %4216 = vmatprep.subr.bf16.mxu1 %v4215_v60  ;;  %v4219_v9 = vpack.c.bf16 %v410_v3, %v406_v2  ;;  %v405_v10 = vld [vmem:[%s7631_s1 + $0x110] sm:$0xff] }
  0xc9   : > { %4186 = vmatpush1.bf16.msra.mxu0 %v4185_v30  ;;  %v409_v11 = vld [vmem:[%s7631_s1 + $0x130] sm:$0xff]  ;;  %v4199_v12 = vpack.c.bf16 %v432_v5, %v428_v4  ;;  %v431_v13 = vld [vmem:[%s7631_s1 + $0x1e0] sm:$0xff]  ;;  %v414_v14 = vld [vmem:[%s7631_s1 + $0x158] sm:$0xff] }
  0xca   : > { %4188 = vmatprep.subr.bf16.mxu0 %v4187_v36  ;;  %v418_v15 = vld [vmem:[%s7631_s1 + $0x178] sm:$0xff]  ;;  %v4221_v18 = vpack.c.bf16 %v409_v11, %v405_v10  ;;  %v4201_v19 = vpack.c.bf16 %v431_v13, %v427_v8  ;;  %v413_v21 = vld [vmem:[%s7631_s1 + $0x150] sm:$0xff]  ;;  %v963_v30 = vld [vmem:[#allocation9 + $0x560] sm:$0xff] }
  0xcb   : > { %v954_v16 = vld [vmem:[#allocation9 + $0x518] sm:$0xff]  ;;  %v957_v17 = vld [vmem:[#allocation9 + $0x530] sm:$0xff]  ;;  %4218 = vmatpush1.bf16.msra.mxu1 %v4217_v6  ;;  %v4223_v20 = vpack.c.bf16 %v418_v15, %v414_v14  ;;  %v956_v27 = vld [vmem:[#allocation9 + $0x528] sm:$0xff] }
  0xcc   : > { %4220 = vmatprep.subr.bf16.mxu1 %v4219_v9  ;;  %v417_v22 = vld [vmem:[%s7631_s1 + $0x170] sm:$0xff]  ;;  %v422_v23 = vld [vmem:[%s7631_s1 + $0x198] sm:$0xff]  ;;  %v6232_v25 = vpack.c.bf16 %v957_v17, %v954_v16  ;;  %v367_v31 = vld [vmem:[%s6038_s19] sm:$0xff] }
  0xcd   : > { %4190 = vmatpush1.bf16.msra.mxu0 %v4189_v46  ;;  %v426_v24 = vld [vmem:[%s7631_s1 + $0x1b8] sm:$0xff]  ;;  %v4225_v28 = vpack.c.bf16 %v417_v22, %v413_v21  ;;  %v960_v29 = vld [vmem:[#allocation9 + $0x548] sm:$0xff]  ;;  %v959_v39 = vld [vmem:[#allocation9 + $0x540] sm:$0xff] }
  0xce   : > { %4192 = vmatprep.subr.bf16.mxu0 %v4191_v51  ;;  %v953_v26 = vld [vmem:[#allocation9 + $0x510] sm:$0xff]  ;;  %v4227_v32 = vpack.c.bf16 %v426_v24, %v422_v23  ;;  %v6250_v38 = vpack.c.bf16 %v963_v30, %v960_v29  ;;  %v962_v40 = vld [vmem:[#allocation9 + $0x558] sm:$0xff]  ;;  %v368_v44 = vld [vmem:[%s6038_s19 + $0x8] sm:$0xff] }
  0xcf   : > { %4222 = vmatpush1.bf16.msra.mxu1 %v4221_v18  ;;  %v421_v33 = vld [vmem:[%s7631_s1 + $0x190] sm:$0xff]  ;;  %v430_v35 = vld [vmem:[%s7631_s1 + $0x1d8] sm:$0xff]  ;;  %v6248_v37 = vpack.c.bf16 %v956_v27, %v953_v26  ;;  %v6261_v48 = vpack.c.bf16 %v962_v40, %v959_v39  ;;  %v1003_v49 = vld [vmem:[#allocation9 + $0x6a0] sm:$0xff] }
  0xd0   : > { %4224 = vmatprep.subr.bf16.mxu1 %v4223_v20  ;;  %v425_v34 = vld [vmem:[%s7631_s1 + $0x1b0] sm:$0xff]  ;;  %v434_v36 = vld [vmem:[%s7631_s1 + $0x1f8] sm:$0xff]  ;;  %v975_v56 = vld [vmem:[#allocation9 + $0x5c0] sm:$0xff] }
  0xd1   : > { %4194 = vmatpush1.bf16.msra.mxu0 %v4193_v58  ;;  %v4229_v41 = vpack.c.bf16 %v425_v34, %v421_v33  ;;  %v966_v42 = vld [vmem:[#allocation9 + $0x578] sm:$0xff]  ;;  %v969_v43 = vld [vmem:[#allocation9 + $0x590] sm:$0xff]  ;;  %v4231_v45 = vpack.c.bf16 %v434_v36, %v430_v35  ;;  %v968_v53 = vld [vmem:[#allocation9 + $0x588] sm:$0xff] }
  0xd2   : > { %4196 = vmatprep.subr.bf16.mxu0 %v4195_v63  ;;  %v429_v46 = vld [vmem:[%s7631_s1 + $0x1d0] sm:$0xff]  ;;  %v1006_v50 = vld [vmem:[#allocation9 + $0x6b8] sm:$0xff]  ;;  %v6264_v51 = vpack.c.bf16 %v969_v43, %v966_v42  ;;  %v971_v60 = vld [vmem:[#allocation9 + $0x5a0] sm:$0xff] }
  0xd3   : > { %4226 = vmatpush1.bf16.msra.mxu1 %v4225_v28  ;;  %v433_v47 = vld [vmem:[%s7631_s1 + $0x1f0] sm:$0xff]  ;;  %v6268_v58 = vpack.c.bf16 %v1006_v50, %v1003_v49  ;;  %v955_v61 = vld [vmem:[#allocation9 + $0x520] sm:$0xff]  ;;  %v958_v62 = vld [vmem:[#allocation9 + $0x538] sm:$0xff] }
  0xd4   : > { %4228 = vmatprep.subr.bf16.mxu1 %v4227_v32  ;;  %v965_v52 = vld [vmem:[#allocation9 + $0x570] sm:$0xff]  ;;  %v4233_v54 = vpack.c.bf16 %v433_v47, %v429_v46  ;;  %v972_v55 = vld [vmem:[#allocation9 + $0x5a8] sm:$0xff]  ;;  %v974_v1 = vld [vmem:[#allocation9 + $0x5b8] sm:$0xff] }
  0xd5   : > { %4198 = vmatpush1.bf16.msra.mxu0 %v4197_v7  ;;  %v369_v57 = vld [vmem:[%s6038_s19 + $0x10] sm:$0xff]  ;;  %v6271_v59 = vpack.c.bf16 %v968_v53, %v965_v52  ;;  %v6274_v63 = vpack.c.bf16 %v975_v56, %v972_v55  ;;  %v978_v4 = vld [vmem:[#allocation9 + $0x5d8] sm:$0xff]  ;;  %v6279_v7 = vpack.c.bf16 %v958_v62, %v955_v61  ;;  %v6282_v8 = vpack.c.bf16 %v974_v1, %v971_v60  ;;  %v987_v16 = vld [vmem:[#allocation9 + $0x620] sm:$0xff] }
  0xd6   : > { %4200 = vmatprep.subr.bf16.mxu0 %v4199_v12  ;;  %v1009_v2 = vld [vmem:[#allocation9 + $0x6d0] sm:$0xff]  ;;  %v1012_v3 = vld [vmem:[#allocation9 + $0x6e8] sm:$0xff]  ;;  %v983_v20 = vld [vmem:[#allocation9 + $0x600] sm:$0xff] }
  0xd7   : > { %4230 = vmatpush1.bf16.msra.mxu1 %v4229_v41  ;;  %v981_v5 = vld [vmem:[#allocation9 + $0x5f0] sm:$0xff]  ;;  %v6284_v9 = vpack.c.bf16 %v1012_v3, %v1009_v2  ;;  %v964_v11 = vld [vmem:[#allocation9 + $0x568] sm:$0xff]  ;;  %v986_v21 = vld [vmem:[#allocation9 + $0x618] sm:$0xff] }
  0xd8   : > { %4232 = vmatprep.subr.bf16.mxu1 %v4231_v45  ;;  %v370_v6 = vld [vmem:[%s6038_s19 + $0x18] sm:$0xff]  ;;  %v6287_v12 = vpack.c.bf16 %v981_v5, %v978_v4  ;;  %v980_v14 = vld [vmem:[#allocation9 + $0x5e8] sm:$0xff]  ;;  %v6303_v24 = vpack.c.bf16 %v986_v21, %v983_v20  ;;  %v999_v30 = vld [vmem:[#allocation9 + $0x680] sm:$0xff] }
  0xd9   : > { %4202 = vmatpush1.bf16.msra.mxu0 %v4201_v19  ;;  %v961_v10 = vld [vmem:[#allocation9 + $0x550] sm:$0xff]  ;;  %v984_v15 = vld [vmem:[#allocation9 + $0x608] sm:$0xff]  ;;  %v990_v22 = vld [vmem:[#allocation9 + $0x638] sm:$0xff] }
  0xda   : > { %4236 = vmatprep.subr.bf16.mxu0 %v6232_v25  ;;  %v977_v13 = vld [vmem:[#allocation9 + $0x5d0] sm:$0xff]  ;;  %v6291_v17 = vpack.c.bf16 %v964_v11, %v961_v10  ;;  %v6298_v19 = vpack.c.bf16 %v987_v16, %v984_v15  ;;  %v992_v28 = vld [vmem:[#allocation9 + $0x648] sm:$0xff]  ;;  %v995_v33 = vld [vmem:[#allocation9 + $0x660] sm:$0xff] }
  0xdb   : > { %4234 = vmatpush1.bf16.msra.mxu1 %v4233_v54  ;;  %v6294_v18 = vpack.c.bf16 %v980_v14, %v977_v13  ;;  %v993_v23 = vld [vmem:[#allocation9 + $0x650] sm:$0xff]  ;;  %v996_v29 = vld [vmem:[#allocation9 + $0x668] sm:$0xff]  ;;  %v998_v34 = vld [vmem:[#allocation9 + $0x678] sm:$0xff] }
  0xdc   : > { %522 = vmatmul.mubr.f32.vlgmr.msra.gmra.mrb[0].mxu0 %v367_v31  ;;  %4344 = vmatprep.subr.bf16.mxu1 %v6268_v58  ;;  %v6306_v26 = vpack.c.bf16 %v993_v23, %v990_v22  ;;  %v989_v27 = vld [vmem:[#allocation9 + $0x630] sm:$0xff]  ;;  %v6313_v32 = vpack.c.bf16 %v999_v30, %v996_v29  ;;  %v1002_v35 = vld [vmem:[#allocation9 + $0x698] sm:$0xff]  ;;  %v6316_v39 = vpack.c.bf16 %v998_v34, %v995_v33  ;;  %v1004_v42 = vld [vmem:[#allocation9 + $0x6a8] sm:$0xff]  ;;  %v437_v29 = vlaneseq }
  0xdd   : > { %527 = vmatprep.mubr.f32.mxu0 %v5756_v0  ;;  %4238 = vmatpush1.bf16.msra.mxu0 %v6248_v37  ;;  %v1005_v36 = vld [vmem:[#allocation9 + $0x6b0] sm:$0xff]  ;;  %v1008_v43 = vld [vmem:[#allocation9 + $0x6c8] sm:$0xff]  ;;  %v1007_v47 = vld [vmem:[#allocation9 + $0x6c0] sm:$0xff] }
  0xde   : > { %4240 = vmatprep.subr.bf16.mxu0 %v6250_v38  ;;  %611 = vmatmul.mubr.f32.vlgmr.msra.gmra.mrb[0].mxu1 %v367_v31  ;;  %v6310_v31 = vpack.c.bf16 %v992_v28, %v989_v27  ;;  %v6319_v40 = vpack.c.bf16 %v1005_v36, %v1002_v35  ;;  %v1001_v41 = vld [vmem:[#allocation9 + $0x690] sm:$0xff]  ;;  %v1010_v49 = vld [vmem:[#allocation9 + $0x6d8] sm:$0xff]  ;;  %v1015_v54 = vld [vmem:[#allocation9 + $0x700] sm:$0xff]  ;;  %vm669_vm0 = vcmp.lt.s32.totalorder %v437_v29, 432 }
  0xdf   : > { %616 = vmatprep.mubr.f32.mxu1 %v5756_v0  ;;  %4346 = vmatpush3.bf16.msra.mxu1 %v6279_v7  ;;  %v6322_v45 = vpack.c.bf16 %v1004_v42, %v1001_v41  ;;  %v6328_v50 = vpack.c.bf16 %v1010_v49, %v1007_v47  ;;  %v1014_v52 = vld [vmem:[#allocation9 + $0x6f8] sm:$0xff]  ;;  %v1017_v53 = vld [vmem:[#allocation9 + $0x710] sm:$0xff]  ;;  %v1016_v60 = vld [vmem:[#allocation9 + $0x708] sm:$0xff]  ;;  %671 = vst.msk [vmem:[#allocation2] ss:$8 sm:$0xf] %vm669_vm0, %v5756_v0 }
  0xe0   : > { %528 = vmatmul.mubr.f32.gmra.mrb[2].mxu0 %v368_v44  ;;  %4348 = vmatprep.subr.bf16.mxu1 %v6284_v9  ;;  %v6332_v55 = vpack.c.bf16 %v1017_v53, %v1014_v52  ;;  %v1018_v56 = vld [vmem:[#allocation9 + $0x718] sm:$0xff]  ;;  %v967_v1 = vld [vmem:[#allocation9 + $0x580] sm:$0xff]  ;;  %v1020_v4 = vld [vmem:[#allocation9 + $0x728] sm:$0xff]  ;;  %674 = vst.msk [vmem:[#allocation2 + $0x41] ss:$8 sm:$0xf] %vm669_vm0, %v5756_v0 }
  0xe1   : > { %533 = vmatprep.mubr.f32.mxu0 %v5756_v0  ;;  %4242 = vmatpush1.bf16.msra.mxu0 %v6261_v48  ;;  %v6334_v61 = vpack.c.bf16 %v1018_v56, %v1015_v54  ;;  %v970_v2 = vld [vmem:[#allocation9 + $0x598] sm:$0xff]  ;;  %v1023_v5 = vld [vmem:[#allocation9 + $0x740] sm:$0xff]  ;;  %v1024_v11 = vld [vmem:[#allocation9 + $0x748] sm:$0xff]  ;;  %725 = vst.msk [vmem:[#allocation2 + $0x60] ss:$8 sm:$0xf] %vm669_vm0, %v5756_v0 }
  0xe2   : > { %4244 = vmatprep.subr.bf16.mxu0 %v6264_v51  ;;  %617 = vmatmul.mubr.f32.gmra.mrb[2].mxu1 %v368_v44  ;;  %v1011_v44 = vld [vmem:[#allocation9 + $0x6e0] sm:$0xff]  ;;  %v6339_v3 = vpack.c.bf16 %v970_v2, %v967_v1  ;;  %v6344_v10 = vpack.c.bf16 %v1023_v5, %v1020_v4  ;;  %v1022_v14 = vld [vmem:[#allocation9 + $0x738] sm:$0xff]  ;;  %v973_v20 = vld [vmem:[#allocation9 + $0x5b0] sm:$0xff]  ;;  %728 = vst.msk [vmem:[#allocation2 + $0xa1] ss:$8 sm:$0xf] %vm669_vm0, %v5756_v0 }
  0xe3   : > { %622 = vmatprep.mubr.f32.mxu1 %v5756_v0  ;;  %4350 = vmatpush3.bf16.msra.mxu1 %v6291_v17  ;;  %v6325_v46 = vpack.c.bf16 %v1011_v44, %v1008_v43  ;;  %v1019_v13 = vld [vmem:[#allocation9 + $0x720] sm:$0xff]  ;;  %v976_v21 = vld [vmem:[#allocation9 + $0x5c8] sm:$0xff]  ;;  %v1026_v23 = vld [vmem:[#allocation9 + $0x758] sm:$0xff] }
  0xe4   : > { %534 = vmatmul.mubr.f32.gmra.mrb[4].mxu0 %v369_v57  ;;  %4352 = vmatprep.subr.bf16.mxu1 %v6334_v61  ;;  %v6348_v16 = vpack.c.bf16 %v1022_v14, %v1019_v13  ;;  %v6351_v22 = vpack.c.bf16 %v976_v21, %v973_v20  ;;  %v1029_v27 = vld [vmem:[#allocation9 + $0x770] sm:$0xff]  ;;  %v1027_v28 = vld [vmem:[#allocation9 + $0x760] sm:$0xff]  ;;  %v1030_v33 = vld [vmem:[#allocation9 + $0x778] sm:$0xff] }
  0xe5   : > { %539 = vmatprep.mubr.f32.mxu0 %v5756_v0  ;;  %4246 = vmatpush1.bf16.msra.mxu0 %v6271_v59  ;;  %v6356_v30 = vpack.c.bf16 %v1029_v27, %v1026_v23  ;;  %v1025_v34 = vld [vmem:[#allocation9 + $0x750] sm:$0xff]  ;;  %v1028_v35 = vld [vmem:[#allocation9 + $0x768] sm:$0xff]  ;;  %v6358_v36 = vpack.c.bf16 %v1030_v33, %v1027_v28  ;;  %v979_v42 = vld [vmem:[#allocation9 + $0x5e0] sm:$0xff] }
  0xe6   : > { %4248 = vmatprep.subr.bf16.mxu0 %v6274_v63  ;;  %623 = vmatmul.mubr.f32.gmra.mrb[4].mxu1 %v369_v57  ;;  %v1013_v57 = vld [vmem:[#allocation9 + $0x6f0] sm:$0xff]  ;;  %7811 = vst [vmem:[#allocation21_spill] sm:$0xff] %v6348_v16  ;;  %v6360_v41 = vpack.c.bf16 %v1028_v35, %v1025_v34  ;;  %v982_v43 = vld [vmem:[#allocation9 + $0x5f8] sm:$0xff]  ;;  %v1032_v47 = vld [vmem:[#allocation9 + $0x788] sm:$0xff] }
  0xe7   : > { %628 = vmatprep.mubr.f32.mxu1 %v5756_v0  ;;  %v6336_v62 = vpack.c.bf16 %v1016_v60, %v1013_v57  ;;  %4354 = vmatpush3.bf16.msra.mxu1 %v6339_v3  ;;  %7812 = vst [vmem:[#allocation22_spill] sm:$0xff] %v6356_v30  ;;  %7813 = vst [vmem:[#allocation23_spill] sm:$0xff] %v6358_v36  ;;  %v6364_v44 = vpack.c.bf16 %v982_v43, %v979_v42  ;;  %v1035_v49 = vld [vmem:[#allocation9 + $0x7a0] sm:$0xff]  ;;  %v1033_v52 = vld [vmem:[#allocation9 + $0x790] sm:$0xff] }
  0xe8   : > { %540 = vmatmul.mubr.f32.gmra.mrb[6].mxu0 %v370_v6  ;;  %7814 = vst [vmem:[#allocation24_spill] sm:$0xff] %v6360_v41  ;;  %v6373_v53 = vpack.c.bf16 %v1035_v49, %v1032_v47  ;;  %v1036_v54 = vld [vmem:[#allocation9 + $0x7a8] sm:$0xff]  ;;  %v1031_v56 = vld [vmem:[#allocation9 + $0x780] sm:$0xff]  ;;  %v1034_v57 = vld [vmem:[#allocation9 + $0x798] sm:$0xff] }
  0xe9   : > { %4250 = vmatpush1.bf16.msra.mxu0 %v6282_v8  ;;  %7815 = vst [vmem:[#allocation25_spill] sm:$0xff] %v6364_v44  ;;  %v6375_v60 = vpack.c.bf16 %v1036_v54, %v1033_v52  ;;  %v6377_v1 = vpack.c.bf16 %v1034_v57, %v1031_v56  ;;  %v985_v2 = vld [vmem:[#allocation9 + $0x610] sm:$0xff]  ;;  %v988_v0 = vld [vmem:[#allocation9 + $0x628] sm:$0xff]  ;;  %v1038_v5 = vld [vmem:[#allocation9 + $0x7b8] sm:$0xff] }
  0xea   : > { %4252 = vmatprep.subr.bf16.mxu0 %v6287_v12  ;;  %629 = vmatmul.mubr.f32.gmra.mrb[6].mxu1 %v370_v6  ;;  %v1021_v6 = vld [vmem:[#allocation9 + $0x730] sm:$0xff]  ;;  %7816 = vst [vmem:[#allocation26_spill] sm:$0xff] %v6373_v53  ;;  %v6380_v4 = vpack.c.bf16 %v988_v0, %v985_v2  ;;  %v1042_v14 = vld [vmem:[#allocation9 + $0x7d8] sm:$0xff]  ;;  %v1040_v21 = vld [vmem:[#allocation9 + $0x7c8] sm:$0xff] }
  0xeb   : > { %v6346_v15 = vpack.c.bf16 %v1024_v11, %v1021_v6  ;;  %7817 = vst [vmem:[#allocation27_spill] sm:$0xff] %v6375_v60  ;;  %7818 = vst [vmem:[#allocation28_spill] sm:$0xff] %v6377_v1  ;;  %v1041_v6 = vld [vmem:[#allocation9 + $0x7d0] sm:$0xff]  ;;  %v1039_v11 = vld [vmem:[#allocation9 + $0x7c0] sm:$0xff] }
  0xec   : > { %7819 = vst [vmem:[#allocation29_spill] sm:$0xff] %v6380_v4  ;;  %v6385_v13 = vpack.c.bf16 %v1041_v6, %v1038_v5  ;;  %v1037_v20 = vld [vmem:[#allocation9 + $0x7b0] sm:$0xff]  ;;  %v6387_v23 = vpack.c.bf16 %v1042_v14, %v1039_v11  ;;  %v991_v28 = vld [vmem:[#allocation9 + $0x640] sm:$0xff]  ;;  %v994_v33 = vld [vmem:[#allocation9 + $0x658] sm:$0xff] }
  0xed   : > { %4254 = vmatpush1.bf16.msra.mxu0 %v6294_v18  ;;  %4356 = vmatprep.subr.bf16.mxu1 %v6346_v15  ;;  %v6389_v27 = vpack.c.bf16 %v1040_v21, %v1037_v20  ;;  %v6392_v34 = vpack.c.bf16 %v994_v33, %v991_v28  ;;  %v1044_v35 = vld [vmem:[#allocation9 + $0x7e8] sm:$0xff]  ;;  %v1047_v42 = vld [vmem:[#allocation9 + $0x800] sm:$0xff]  ;;  %v1045_v43 = vld [vmem:[#allocation9 + $0x7f0] sm:$0xff]  ;;  %v7643_v20 = vmov 0.0|0.0   ;;  %v438_v21 = vshrl.u32 %v437_v29, 7 }
  0xee   : > { %4256 = vmatprep.subr.bf16.mxu0 %v6298_v19  ;;  %4358 = vmatpush3.bf16.msra.mxu1 %v6351_v22  ;;  %7820 = vst [vmem:[#allocation30_spill] sm:$0xff] %v6385_v13  ;;  %7821 = vst [vmem:[#allocation31_spill] sm:$0xff] %v6387_v23  ;;  %v6397_v47 = vpack.c.bf16 %v1047_v42, %v1044_v35  ;;  %v1048_v49 = vld [vmem:[#allocation9 + $0x808] sm:$0xff]  ;;  %v1043_v52 = vld [vmem:[#allocation9 + $0x7e0] sm:$0xff] }
  0xef   : > { %4360 = vmatprep.subr.bf16.mxu1 %v6358_v36  ;;  %7822 = vst [vmem:[#allocation32_spill] sm:$0xff] %v6389_v27  ;;  %7823 = vst [vmem:[#allocation33_spill] sm:$0xff] %v6392_v34  ;;  %v1046_v54 = vld [vmem:[#allocation9 + $0x7f8] sm:$0xff]  ;;  %v6399_v56 = vpack.c.bf16 %v1048_v49, %v1045_v43  ;;  %v997_v2 = vld [vmem:[#allocation9 + $0x670] sm:$0xff]  ;;  %v6414_v28 = vsub.s32 0, %v438_v21  ;;  %v6416_v35 = vsub.s32 1, %v438_v21 }
  0xf0   : > { %7824 = vst [vmem:[#allocation34_spill] sm:$0xff] %v6397_v47  ;;  %v6401_v57 = vpack.c.bf16 %v1046_v54, %v1043_v52  ;;  %v1000_v0 = vld [vmem:[#allocation9 + $0x688] sm:$0xff]  ;;  %v1050_v6 = vld [vmem:[#allocation9 + $0x818] sm:$0xff]  ;;  %v1053_v11 = vld [vmem:[#allocation9 + $0x830] sm:$0xff] }
  0xf1   : > { %4258 = vmatpush1.bf16.msra.mxu0 %v6303_v24  ;;  %7825 = vst [vmem:[#allocation35_spill] sm:$0xff] %v6399_v56  ;;  %v6404_v5 = vpack.c.bf16 %v1000_v0, %v997_v2  ;;  %v6409_v14 = vpack.c.bf16 %v1053_v11, %v1050_v6  ;;  %7829 = vst [vmem:[#allocation39_spill] sm:$0xff] %v6414_v28  ;;  %v435_v33 = vld [vmem:[#allocation7] sm:$0xf]  ;;  %v6426_v11 = vsub.s32 2, %v438_v21  ;;  %v1057_v36 = vld [vmem:[#allocation9 + $0x850] sm:$0xff] }
  0xf2   : > { %4260 = vmatprep.subr.bf16.mxu0 %v6306_v26  ;;  %4362 = vmatpush3.bf16.msra.mxu1 %v6364_v44  ;;  %7826 = vst [vmem:[#allocation36_spill] sm:$0xff] %v6401_v57  ;;  %7830 = vst [vmem:[#allocation40_spill] sm:$0xff] %v6416_v35  ;;  %v6419_v42 = vrot.slane %v435_v33, %v6414_v28  ;;  %v6422_v43 = vrot.slane %v435_v33, %v6416_v35  ;;  %v451_v28 = vsub.s32 3, %v438_v21 }
  0xf3   : > { %4364 = vmatprep.subr.bf16.mxu1 %v6375_v60  ;;  %7827 = vst [vmem:[#allocation37_spill] sm:$0xff] %v6404_v5  ;;  %7828 = vst [vmem:[#allocation38_spill] sm:$0xff] %v6409_v14 }
  0xf4   : > { %7831 = vst [vmem:[#allocation41_spill] sm:$0xff] %v6426_v11 }
  0xf5   : > { %4262 = vmatpush1.bf16.msra.mxu0 %v6310_v31 }
  0xf6   : > { %4264 = vmatprep.subr.bf16.mxu0 %v6313_v32  ;;  %4366 = vmatpush3.bf16.msra.mxu1 %v6380_v4 }
  0xf7   : > { %4368 = vmatprep.subr.bf16.mxu1 %v6387_v23 }
  0xf9   : > { %4266 = vmatpush1.bf16.msra.mxu0 %v6316_v39 }
  0xfa   : > { %4268 = vmatprep.subr.bf16.mxu0 %v6319_v40  ;;  %4370 = vmatpush3.bf16.msra.mxu1 %v6392_v34  ;;  %v6431_v34 = vrot.slane %v435_v33, %v6426_v11 }
  0xfb   : > { %4372 = vmatprep.subr.bf16.mxu1 %v6399_v56 }
  0xfd   : > { %4270 = vmatpush1.bf16.msra.mxu0 %v6322_v45 }
  0xfe   : > { %4272 = vmatprep.subr.bf16.mxu0 %v6325_v46  ;;  %4374 = vmatpush3.bf16.msra.mxu1 %v6404_v5 }
  0xff   : > { %4375 = vmatprep.subr.bf16.mxu1 %v7643_v20 }
 0x101   : > { %4274 = vmatpush1.bf16.msra.mxu0 %v6328_v50 }
 0x102   : > { %4276 = vmatprep.subr.bf16.mxu0 %v6332_v55 }
 0x105   : > { %4278 = vmatpush1.bf16.msra.mxu0 %v6336_v62 }
 0x106   : > { %4280 = vmatprep.subr.bf16.mxu0 %v6344_v10 }
 0x109   : > { %4282 = vmatpush1.bf16.msra.mxu0 %v6348_v16  ;;  %v1065_v16 = vld [vmem:[#allocation9 + $0x890] sm:$0xff] }
 0x10a   : > { %4284 = vmatprep.subr.bf16.mxu0 %v6356_v30 }
 0x10d   : > { %4286 = vmatpush1.bf16.msra.mxu0 %v6360_v41  ;;  %v1058_v41 = vld [vmem:[#allocation9 + $0x858] sm:$0xff] }
 0x10e   : > { %4288 = vmatprep.subr.bf16.mxu0 %v6373_v53 }
 0x111   : > { %4290 = vmatpush1.bf16.msra.mxu0 %v6377_v1  ;;  %v1059_v1 = vld [vmem:[#allocation9 + $0x860] sm:$0xff] }
 0x112   : > { %4292 = vmatprep.subr.bf16.mxu0 %v6385_v13 }
 0x115   : > { %4294 = vmatpush1.bf16.msra.mxu0 %v6389_v27 }
 0x116   : > { %4296 = vmatprep.subr.bf16.mxu0 %v6397_v47 }
 0x119   : > { %4298 = vmatpush1.bf16.msra.mxu0 %v6401_v57 }
 0x11a   : > { %4300 = vmatprep.subr.bf16.mxu0 %v6409_v14 }
 0x1af   : > { %v523_v49 = vpop.f32.mrb[0].mxu0 }
 0x1b0   : > { %v524_v52 = vadd.f32 %v523_v49, %v6419_v42  ;;  %v525_v54 = vpop.f32.mrb[1].mxu0 }
 0x1b1   : > { %v526_v2 = vadd.f32 %v525_v54, %v6422_v43  ;;  %v6433_v54 = vrot.slane %v435_v33, %v451_v28  ;;  %v1051_v33 = vld [vmem:[#allocation9 + $0x820] sm:$0xff] }
 0x1b2   : > { %v635_v0 = vmax.f32 %v524_v52, 0.0 }
 0x1b3   : > { %v636_v6 = vmax.f32 %v526_v2, 0.0  ;;  %v529_v29 = vpop.f32.mrb[2].mxu0 }
 0x1b4   : > { %v651_v20 = vmin.f32 %v635_v0, 6.0  ;;  %v530_v14 = vadd.f32 %v529_v29, %v6419_v42  ;;  %v531_v57 = vpop.f32.mrb[3].mxu0  ;;  %v612_v29 = vpop.f32.mrb[0].mxu1 }
 0x1b5   : > { %v652_v5 = vmin.f32 %v636_v6, 6.0  ;;  %v532_v35 = vadd.f32 %v531_v57, %v6422_v43  ;;  %v613_v6 = vadd.f32 %v612_v29, %v6431_v34  ;;  %v614_v57 = vpop.f32.mrb[1].mxu1  ;;  %v1056_v29 = vld [vmem:[#allocation9 + $0x848] sm:$0xff] }
 0x1b6   : > { %v685_v47 = vrot.slane %v651_v20, 7  ;;  %v639_v56 = vmax.f32 %v530_v14, 0.0  ;;  %v1052_v20 = vld [vmem:[#allocation9 + $0x828] sm:$0xff]  ;;  %v6454_v30 = vpack.c.bf16 %v1059_v1, %v1056_v29 }
 0x1b7   : > { %v686_v27 = vrot.slane %v652_v5, 7  ;;  %v640_v49 = vmax.f32 %v532_v35, 0.0  ;;  %v1049_v5 = vld [vmem:[#allocation9 + $0x810] sm:$0xff]  ;;  %v615_v35 = vadd.f32 %v614_v57, %v6433_v54  ;;  %v637_v28 = vmax.f32 %v613_v6, 0.0 }
 0x1b8   : > { %709 = vst [vmem:[#allocation2] sm:$0xfe] %v685_v47  ;;  %v655_v52 = vmin.f32 %v639_v56, 6.0  ;;  %7834 = vst [vmem:[#allocation44_spill] sm:$0xff] %v6454_v30 }
 0x1b9   : > { %710 = vst [vmem:[#allocation2 + $0x8] sm:$0xfe] %v686_v27  ;;  %v656_v2 = vmin.f32 %v640_v49, 6.0  ;;  %v638_v49 = vmax.f32 %v615_v35, 0.0  ;;  %v653_v11 = vmin.f32 %v637_v28, 6.0  ;;  %v1055_v28 = vld [vmem:[#allocation9 + $0x840] sm:$0xff] }
 0x1ba   : > { %v689_v0 = vrot.slane %v655_v52, 7  ;;  %v618_v52 = vpop.f32.mrb[2].mxu1 }
 0x1bb   : > { %v691_v21 = vrot.slane %v656_v2, 7  ;;  %v6445_v2 = vpack.c.bf16 %v1052_v20, %v1049_v5  ;;  %v619_v57 = vadd.f32 %v618_v52, %v6431_v34  ;;  %v620_v13 = vpop.f32.mrb[3].mxu1  ;;  %v687_v53 = vrot.slane %v653_v11, 7 }
 0x1bc   : > { %v6437_v14 = vsel %vm684_vm1, %v685_v47, %v689_v0  ;;  %719 = vst [vmem:[#allocation2 + $0x40] sm:$0x1] %v689_v0  ;;  %v1054_v0 = vld [vmem:[#allocation9 + $0x838] sm:$0xff]  ;;  %v621_v6 = vadd.f32 %v620_v13, %v6433_v54  ;;  %v1060_v13 = vld [vmem:[#allocation9 + $0x868] sm:$0xff] }
 0x1bd   : > { %714 = vst [vmem:[#allocation2 + $0x20] sm:$0xff] %v6437_v14  ;;  %v6442_v56 = vsel %vm684_vm1, %v686_v27, %v691_v21  ;;  %720 = vst [vmem:[#allocation2 + $0x48] sm:$0x1] %v691_v21  ;;  %v654_v21 = vmin.f32 %v638_v49, 6.0  ;;  %v641_v60 = vmax.f32 %v619_v57, 0.0  ;;  %v1137_v5 = vrot.slane %v6437_v14, 1 }
 0x1be   : > { %715 = vst [vmem:[#allocation2 + $0x28] sm:$0xff] %v6442_v56  ;;  %7832 = vst [vmem:[#allocation42_spill] sm:$0xff] %v6445_v2  ;;  %v1140_v35 = vrot.slane %v6442_v56, 1  ;;  %v6451_v20 = vpack.c.bf16 %v1054_v0, %v1051_v33  ;;  %v642_v44 = vmax.f32 %v621_v6, 0.0  ;;  %v1062_v0 = vld [vmem:[#allocation9 + $0x878] sm:$0xff]  ;;  %v6462_v29 = vpack.c.bf16 %v1060_v13, %v1057_v36 }
 0x1bf   : > { %v1115_v47 = vld [vmem:[#allocation2] sm:$0xfe]  ;;  %v688_v52 = vrot.slane %v654_v21, 7  ;;  %711 = vst [vmem:[#allocation2 + $0x10] sm:$0xfe] %v687_v53 }
 0x1c0   : > { %v1116_v23 = vld [vmem:[#allocation2 + $0x8] sm:$0xfe]  ;;  %v1136_v27 = vrot.slane %v1115_v47, 1  ;;  %7833 = vst [vmem:[#allocation43_spill] sm:$0xff] %v6451_v20  ;;  %v658_v21 = vmin.f32 %v642_v44, 6.0  ;;  %7836 = vst [vmem:[#allocation46_spill] sm:$0xff] %v6462_v29 }
 0x1c1   : > { %v1139_v4 = vrot.slane %v1116_v23, 1  ;;  %v657_v23 = vmin.f32 %v641_v60, 6.0  ;;  %713 = vst.msk [vmem:[#allocation2 + $0x18] sm:$0xfe] %vm712_vm3, %v688_v52  ;;  %v6460_v60 = vpack.c.bf16 %v1058_v41, %v1055_v28  ;;  %v7837_v44 = vmov 0.0|0.0   ;;  %v1068_v41 = vld [vmem:[#allocation9 + $0x8a8] sm:$0xff] }
 0x1c2   : > { %v1138_v11 = vsel %vm1135_vm2, %v1136_v27, %v1137_v5  ;;  %v1061_v27 = vld [vmem:[#allocation9 + $0x870] sm:$0xff]  ;;  %v695_v6 = vrot.slane %v658_v21, 7  ;;  %v1071_v28 = vld [vmem:[#allocation9 + $0x8c0] sm:$0xff]  ;;  %v1070_v13 = vld [vmem:[#allocation9 + $0x8b8] sm:$0xff] }
 0x1c3   : > { %v1141_v47 = vsel %vm1135_vm2, %v1139_v4, %v1140_v35  ;;  %v1119_v49 = vld [vmem:[#allocation2 + $0x40] sm:$0x1]  ;;  %v693_v4 = vrot.slane %v657_v23, 7  ;;  %7835 = vst [vmem:[#allocation45_spill] sm:$0xff] %v6460_v60  ;;  %v1064_v23 = vld [vmem:[#allocation9 + $0x888] sm:$0xff] }
 0x1c4   : > { %1230 = vmatprep.mubr.f32.mxu0 %v1141_v47  ;;  %1384 = vmatprep.mubr.f32.mxu1 %v1141_v47  ;;  %v1120_v57 = vld [vmem:[#allocation2 + $0x48] sm:$0x1]  ;;  %v1148_v33 = vrot.slane %v1119_v49, 1  ;;  %v6467_v49 = vpack.c.bf16 %v1065_v16, %v1062_v0  ;;  %723 = vst.msk [vmem:[#allocation2 + $0x58] sm:$0x1] %vm722_vm4, %v695_v6  ;;  %v6479_v16 = vpack.c.bf16 %v1064_v23, %v1061_v27  ;;  %v1072_v0 = vld [vmem:[#allocation9 + $0x8c8] sm:$0xff] }
 0x1c5   : > { %1231 = vmatmul.mubr.f32.vlgmr.msra.gmra.mrb[8].mxu0 %v1138_v11  ;;  %1385 = vmatmul.mubr.f32.vlgmr.msra.gmra.mrb[8].mxu1 %v1138_v11  ;;  %v1150_v1 = vrot.slane %v1120_v57, 1  ;;  %v1063_v11 = vld [vmem:[#allocation9 + $0x880] sm:$0xff]  ;;  %v1066_v57 = vld [vmem:[#allocation9 + $0x898] sm:$0xff]  ;;  %721 = vst [vmem:[#allocation2 + $0x50] sm:$0x1] %v693_v4 }
 0x1c6   : > { %4302 = vmatpush1.bf16.msra.mxu0 %v6445_v2  ;;  %4377 = vmatpush1.bf16.msra.mxu1 %v6451_v20  ;;  %7838 = vst [vmem:[#allocation47_spill] sm:$0xff] %v6467_v49  ;;  %v6470_v20 = vsel %vm684_vm1, %v687_v53, %v693_v4  ;;  %v1149_v36 = vsel %vm1135_vm2, %v1137_v5, %v1148_v33  ;;  %7839 = vst [vmem:[#allocation48_spill] sm:$0xff] %v6479_v16  ;;  %v1067_v5 = vld [vmem:[#allocation9 + $0x8a0] sm:$0xff]  ;;  %v1069_v33 = vld [vmem:[#allocation9 + $0x8b0] sm:$0xff] }
 0x1c7   : > { %v1151_v47 = vsel %vm1135_vm2, %v1140_v35, %v1150_v1  ;;  %4304 = vmatprep.subr.bf16.mxu0 %v6454_v30  ;;  %4378 = vmatprep.subr.bf16.mxu1 %v7837_v44  ;;  %716 = vst [vmem:[#allocation2 + $0x30] sm:$0xff] %v6470_v20  ;;  %v696_v35 = vsel %vm684_vm1, %v688_v52, %v695_v6  ;;  %v1074_v21 = vld [vmem:[#allocation9 + $0x8d8] sm:$0xff]  ;;  %v1077_v1 = vld [vmem:[#allocation9 + $0x8f0] sm:$0xff] }
 0x1c8   : > { %1236 = vmatprep.mubr.f32.mxu0 %v1151_v47  ;;  %1389 = vmatprep.mubr.f32.mxu1 %v1151_v47  ;;  %718 = vst.msk [vmem:[#allocation2 + $0x38] sm:$0xff] %vm717_vm5, %v696_v35  ;;  %v6481_v53 = vpack.c.bf16 %v1066_v57, %v1063_v11  ;;  %v6485_v52 = vpack.c.bf16 %v1071_v28, %v1068_v41  ;;  %v1118_v4 = vld [vmem:[#allocation2 + $0x18] sm:$0xfe]  ;;  %v1076_v11 = vld [vmem:[#allocation9 + $0x8e8] sm:$0xff]  ;;  %v1075_v57 = vld [vmem:[#allocation9 + $0x8e0] sm:$0xff] }
 0x1c9   : > { %1237 = vmatmul.mubr.f32.gmra.mrb[10].mxu0 %v1149_v36  ;;  %1390 = vmatmul.mubr.f32.gmra.mrb[10].mxu1 %v1149_v36  ;;  %v6489_v27 = vpack.c.bf16 %v1070_v13, %v1067_v5  ;;  %v6491_v6 = vpack.c.bf16 %v1072_v0, %v1069_v33  ;;  %v1073_v47 = vld [vmem:[#allocation9 + $0x8d0] sm:$0xff]  ;;  %v6495_v23 = vpack.c.bf16 %v1077_v1, %v1074_v21  ;;  %v1078_v36 = vld [vmem:[#allocation9 + $0x8f8] sm:$0xff]  ;;  %v1145_v41 = vrot.slane %v1118_v4, 1  ;;  %v1080_v28 = vld [vmem:[#allocation9 + $0x908] sm:$0xff] }
 0x1ca   : > { %4306 = vmatpush1.bf16.msra.mxu0 %v6460_v60  ;;  %4380 = vmatpush1.bf16.msra.mxu1 %v6462_v29  ;;  %7840 = vst [vmem:[#allocation49_spill] sm:$0xff] %v6481_v53  ;;  %7841 = vst [vmem:[#allocation50_spill] sm:$0xff] %v6485_v52  ;;  %v1083_v35 = vld [vmem:[#allocation9 + $0x920] sm:$0xff]  ;;  %v6502_v13 = vpack.c.bf16 %v1076_v11, %v1073_v47  ;;  %v6504_v33 = vpack.c.bf16 %v1078_v36, %v1075_v57  ;;  %v1082_v1 = vld [vmem:[#allocation9 + $0x918] sm:$0xff] }
 0x1cb   : > { %4308 = vmatprep.subr.bf16.mxu0 %v6467_v49  ;;  %4381 = vmatprep.subr.bf16.mxu1 %v7837_v44  ;;  %7842 = vst [vmem:[#allocation51_spill] sm:$0xff] %v6489_v27  ;;  %7843 = vst [vmem:[#allocation52_spill] sm:$0xff] %v6491_v6  ;;  %v1079_v0 = vld [vmem:[#allocation9 + $0x900] sm:$0xff]  ;;  %v6508_v21 = vpack.c.bf16 %v1083_v35, %v1080_v28  ;;  %v1081_v4 = vld [vmem:[#allocation9 + $0x910] sm:$0xff] }
 0x1cc   : > { %7844 = vst [vmem:[#allocation53_spill] sm:$0xff] %v6495_v23  ;;  %7845 = vst [vmem:[#allocation54_spill] sm:$0xff] %v6502_v13  ;;  %v6517_v47 = vpack.c.bf16 %v1082_v1, %v1079_v0  ;;  %v1085_v57 = vld [vmem:[#allocation9 + $0x930] sm:$0xff]  ;;  %v1087_v28 = vld [vmem:[#allocation9 + $0x940] sm:$0xff] }
 0x1cd   : > { %7846 = vst [vmem:[#allocation55_spill] sm:$0xff] %v6504_v33  ;;  %7847 = vst [vmem:[#allocation56_spill] sm:$0xff] %v6508_v21  ;;  %v1090_v35 = vld [vmem:[#allocation9 + $0x958] sm:$0xff]  ;;  %v1091_v1 = vld [vmem:[#allocation9 + $0x960] sm:$0xff] }
 0x1ce   : > { %4310 = vmatpush1.bf16.msra.mxu0 %v6479_v16  ;;  %4383 = vmatpush1.bf16.msra.mxu1 %v6481_v53  ;;  %v1086_v53 = vld [vmem:[#allocation9 + $0x938] sm:$0xff]  ;;  %7848 = vst [vmem:[#allocation57_spill] sm:$0xff] %v6517_v47  ;;  %v1108_v49 = vld [vmem:[#allocation9 + $0x9e8] sm:$0xff] }
 0x1cf   : > { %4312 = vmatprep.subr.bf16.mxu0 %v6485_v52  ;;  %4384 = vmatprep.subr.bf16.mxu1 %v7837_v44  ;;  %v6497_v16 = vld [vmem:[#allocation2 + $0x38] sm:$0xff]  ;;  %v1084_v52 = vld [vmem:[#allocation9 + $0x928] sm:$0xff] }
 0x1d0   : > { %v7675_v5 = vrot.slane %v6497_v16, 1  ;;  %v6519_v11 = vpack.c.bf16 %v1084_v52, %v1081_v4  ;;  %v6529_v52 = vpack.c.bf16 %v1090_v35, %v1087_v28  ;;  %v1093_v4 = vld [vmem:[#allocation9 + $0x970] sm:$0xff]  ;;  %v1100_v35 = vld [vmem:[#allocation9 + $0x9a8] sm:$0xff] }
 0x1d1   : > { %v1097_v28 = vld [vmem:[#allocation9 + $0x990] sm:$0xff] }
 0x1d2   : > { %4314 = vmatpush1.bf16.msra.mxu0 %v6489_v27  ;;  %4386 = vmatpush1.bf16.msra.mxu1 %v6491_v6  ;;  %v1147_v27 = vsel %vm1135_vm2, %v1145_v41, %v7675_v5  ;;  %v1089_v6 = vld [vmem:[#allocation9 + $0x950] sm:$0xff]  ;;  %7849 = vst [vmem:[#allocation58_spill] sm:$0xff] %v6519_v11  ;;  %v1088_v41 = vld [vmem:[#allocation9 + $0x948] sm:$0xff]  ;;  %7852 = vst [vmem:[#allocation61_spill] sm:$0xff] %v6529_v52 }
 0x1d3   : > { %4316 = vmatprep.subr.bf16.mxu0 %v6495_v23  ;;  %4387 = vmatprep.subr.bf16.mxu1 %v7837_v44  ;;  %v6523_v36 = vpack.c.bf16 %v1089_v6, %v1086_v53  ;;  %v1092_v5 = vld [vmem:[#allocation9 + $0x968] sm:$0xff]  ;;  %v6527_v0 = vpack.c.bf16 %v1088_v41, %v1085_v57  ;;  %v1094_v6 = vld [vmem:[#allocation9 + $0x978] sm:$0xff]  ;;  %v535_v23 = vpop.f32.mrb[4].mxu0 }
 0x1d4   : > { %3806 = vmatprep.mubr.msk.f32.mxu0 %vm717_vm5, %v1147_v27  ;;  %3808 = vmatprep.mubr.msk.f32.mxu1 %vm717_vm5, %v1147_v27  ;;  %v1095_v27 = vld [vmem:[#allocation9 + $0x980] sm:$0xff]  ;;  %v6537_v57 = vpack.c.bf16 %v1094_v6, %v1091_v1 }
 0x1d5   : > { %7850 = vst [vmem:[#allocation59_spill] sm:$0xff] %v6523_v36  ;;  %7851 = vst [vmem:[#allocation60_spill] sm:$0xff] %v6527_v0  ;;  %v6533_v53 = vpack.c.bf16 %v1095_v27, %v1092_v5  ;;  %v1099_v27 = vld [vmem:[#allocation9 + $0x9a0] sm:$0xff] }
 0x1d6   : > { %4318 = vmatpush1.bf16.msra.mxu0 %v6502_v13  ;;  %4389 = vmatpush1.bf16.msra.mxu1 %v6504_v33  ;;  %v1098_v33 = vld [vmem:[#allocation9 + $0x998] sm:$0xff]  ;;  %v1101_v13 = vld [vmem:[#allocation9 + $0x9b0] sm:$0xff]  ;;  %7854 = vst [vmem:[#allocation63_spill] sm:$0xff] %v6537_v57  ;;  %v1103_v6 = vld [vmem:[#allocation9 + $0x9c0] sm:$0xff] }
 0x1d7   : > { %4320 = vmatprep.subr.bf16.mxu0 %v6508_v21  ;;  %4390 = vmatprep.subr.bf16.mxu1 %v7837_v44  ;;  %7853 = vst [vmem:[#allocation62_spill] sm:$0xff] %v6533_v53  ;;  %v1096_v21 = vld [vmem:[#allocation9 + $0x988] sm:$0xff]  ;;  %v6543_v5 = vpack.c.bf16 %v1101_v13, %v1098_v33 }
 0x1d8   : > { %v6539_v41 = vpack.c.bf16 %v1096_v21, %v1093_v4  ;;  %v6548_v21 = vpack.c.bf16 %v1100_v35, %v1097_v28  ;;  %v1110_v35 = vld [vmem:[#allocation9 + $0x9f8] sm:$0xff] }
 0x1d9   : > { %7856 = vst [vmem:[#allocation65_spill] sm:$0xff] %v6543_v5 }
 0x1da   : > { %4322 = vmatpush1.bf16.msra.mxu0 %v6517_v47  ;;  %4392 = vmatpush1.bf16.msra.mxu1 %v6519_v11  ;;  %7855 = vst [vmem:[#allocation64_spill] sm:$0xff] %v6539_v41  ;;  %v1104_v11 = vld [vmem:[#allocation9 + $0x9c8] sm:$0xff]  ;;  %v1107_v47 = vld [vmem:[#allocation9 + $0x9e0] sm:$0xff]  ;;  %7857 = vst [vmem:[#allocation66_spill] sm:$0xff] %v6548_v21 }
 0x1db   : > { %4324 = vmatprep.subr.bf16.mxu0 %v6523_v36  ;;  %4393 = vmatprep.subr.bf16.mxu1 %v7837_v44  ;;  %v1102_v36 = vld [vmem:[#allocation9 + $0x9b8] sm:$0xff]  ;;  %v6555_v4 = vpack.c.bf16 %v1107_v47, %v1104_v11 }
 0x1dc   : > { %v6550_v1 = vpack.c.bf16 %v1102_v36, %v1099_v27  ;;  %v1113_v36 = vld [vmem:[#allocation9 + $0xa10] sm:$0xff] }
 0x1dd   : > { %7859 = vst [vmem:[#allocation68_spill] sm:$0xff] %v6555_v4 }
 0x1de   : > { %4326 = vmatpush1.bf16.msra.mxu0 %v6527_v0  ;;  %4395 = vmatpush1.bf16.msra.mxu1 %v6529_v52  ;;  %v536_v0 = vadd.f32 %v535_v23, %v6419_v42  ;;  %v537_v52 = vpop.f32.mrb[5].mxu0  ;;  %7858 = vst [vmem:[#allocation67_spill] sm:$0xff] %v6550_v1  ;;  %v1106_v23 = vld [vmem:[#allocation9 + $0x9d8] sm:$0xff] }
 0x1df   : > { %4328 = vmatprep.subr.bf16.mxu0 %v6533_v53  ;;  %4396 = vmatprep.subr.bf16.mxu1 %v7837_v44  ;;  %v538_v13 = vadd.f32 %v537_v52, %v6422_v43  ;;  %v541_v33 = vpop.f32.mrb[6].mxu0  ;;  %v1105_v53 = vld [vmem:[#allocation9 + $0x9d0] sm:$0xff]  ;;  %v6561_v47 = vpack.c.bf16 %v1106_v23, %v1103_v6  ;;  %v827_v23 = vld [vmem:[#allocation9 + $0x1a8] sm:$0xff] }
 0x1e0   : > { %v543_v28 = vpop.f32.mrb[7].mxu0  ;;  %v6563_v11 = vpack.c.bf16 %v1108_v49, %v1105_v53  ;;  %v824_v6 = vld [vmem:[#allocation9 + $0x190] sm:$0xff] }
 0x1e1   : > { %v644_v27 = vmax.f32 %v538_v13, 0.0  ;;  %v544_v29 = vadd.f32 %v543_v28, %v6422_v43  ;;  %7860 = vst [vmem:[#allocation69_spill] sm:$0xff] %v6561_v47  ;;  %v6567_v13 = vpack.c.bf16 %v1113_v36, %v1110_v35  ;;  %v1111_v43 = vld [vmem:[#allocation9 + $0xa00] sm:$0xff]  ;;  %v1122_v36 = vld [vmem:[#allocation2 + $0x58] sm:$0x1] }
 0x1e2   : > { %4330 = vmatpush1.bf16.msra.mxu0 %v6537_v57  ;;  %4398 = vmatpush1.bf16.msra.mxu1 %v6539_v41  ;;  %v643_v57 = vmax.f32 %v536_v0, 0.0  ;;  %v542_v41 = vadd.f32 %v541_v33, %v6419_v42  ;;  %7861 = vst [vmem:[#allocation70_spill] sm:$0xff] %v6563_v11  ;;  %v1112_v0 = vld [vmem:[#allocation9 + $0xa08] sm:$0xff] }
 0x1e3   : > { %4332 = vmatprep.subr.bf16.mxu0 %v6543_v5  ;;  %4399 = vmatprep.subr.bf16.mxu1 %v7837_v44  ;;  %v1109_v5 = vld [vmem:[#allocation9 + $0x9f0] sm:$0xff]  ;;  %v660_v30 = vmin.f32 %v644_v27, 6.0  ;;  %v648_v42 = vmax.f32 %v544_v29, 0.0  ;;  %7862 = vst [vmem:[#allocation71_spill] sm:$0xff] %v6567_v13 }
 0x1e4   : > { %v659_v52 = vmin.f32 %v643_v57, 6.0  ;;  %v647_v60 = vmax.f32 %v542_v41, 0.0  ;;  %v1114_v57 = vld [vmem:[#allocation9 + $0xa18] sm:$0xff]  ;;  %v775_v41 = vld [vmem:[#allocation9 + $0x8] sm:$0xff]  ;;  %v6571_v29 = vpack.c.bf16 %v1112_v0, %v1109_v5  ;;  %v1143_v0 = vrot.slane %v6470_v20, 1 }
 0x1e5   : > { %v739_v49 = vrot.slane %v660_v30, 7  ;;  %v664_v53 = vmin.f32 %v648_v42, 6.0  ;;  %v6573_v35 = vpack.c.bf16 %v1114_v57, %v1111_v43  ;;  %v774_v42 = vld [vmem:[#allocation9] sm:$0xff]  ;;  %v779_v43 = vld [vmem:[#allocation9 + $0x28] sm:$0xff]  ;;  %v781_v57 = vld [vmem:[#allocation9 + $0x38] sm:$0xff] }
 0x1e6   : > { %4334 = vmatpush1.bf16.msra.mxu0 %v6548_v21  ;;  %4401 = vmatpush1.bf16.msra.mxu1 %v6550_v1  ;;  %v738_v33 = vrot.slane %v659_v52, 7  ;;  %v663_v28 = vmin.f32 %v647_v60, 6.0  ;;  %v778_v1 = vld [vmem:[#allocation9 + $0x20] sm:$0xff]  ;;  %v1117_v21 = vld [vmem:[#allocation2 + $0x10] sm:$0xfe]  ;;  %7863 = vst [vmem:[#allocation72_spill] sm:$0xff] %v6571_v29  ;;  %v6579_v60 = vpack.c.bf16 %v827_v23, %v824_v6 }
 0x1e7   : > { %4336 = vmatprep.subr.bf16.mxu0 %v6555_v4  ;;  %4402 = vmatprep.subr.bf16.mxu1 %v7837_v44  ;;  %7864 = vst [vmem:[#allocation73_spill] sm:$0xff] %v6573_v35  ;;  %763 = vst [vmem:[#allocation2 + $0x68] sm:$0xfe] %v739_v49  ;;  %v744_v52 = vrot.slane %v664_v53, 7  ;;  %v6577_v30 = vpack.c.bf16 %v778_v1, %v775_v41  ;;  %v1142_v5 = vrot.slane %v1117_v21, 1  ;;  %v784_v53 = vld [vmem:[#allocation9 + $0x50] sm:$0xff] }
 0x1e8   : > { %762 = vst [vmem:[#allocation2 + $0x60] sm:$0xfe] %v738_v33  ;;  %v742_v27 = vrot.slane %v663_v28, 7  ;;  %7865 = vst [vmem:[#allocation74_spill] sm:$0xff] %v6579_v60  ;;  %v777_v28 = vld [vmem:[#allocation9 + $0x18] sm:$0xff]  ;;  %v1154_v41 = vrot.slane %v1122_v36, 1  ;;  %v6599_v4 = vpack.c.bf16 %v784_v53, %v781_v57 }
 0x1e9   : > { %v6587_v1 = vsel %vm684_vm1, %v739_v49, %v744_v52  ;;  %771 = vst [vmem:[#allocation2 + $0xa8] sm:$0x1] %v744_v52  ;;  %v1121_v6 = vld [vmem:[#allocation2 + $0x50] sm:$0x1]  ;;  %v830_v23 = vld [vmem:[#allocation9 + $0x1c0] sm:$0xff]  ;;  %v6594_v21 = vpack.c.bf16 %v777_v28, %v774_v42  ;;  %v780_v49 = vld [vmem:[#allocation9 + $0x30] sm:$0xff]  ;;  %v1144_v36 = vsel %vm1135_vm2, %v1142_v5, %v1143_v0 }
 0x1ea   : > { %4338 = vmatpush1.bf16.msra.mxu0 %v6561_v47  ;;  %4404 = vmatpush1.bf16.msra.mxu1 %v6563_v11  ;;  %v776_v47 = vld [vmem:[#allocation9 + $0x10] sm:$0xff]  ;;  %v6582_v11 = vsel %vm684_vm1, %v738_v33, %v742_v27  ;;  %770 = vst [vmem:[#allocation2 + $0xa0] sm:$0x1] %v742_v27  ;;  %767 = vst [vmem:[#allocation2 + $0x88] sm:$0xff] %v6587_v1  ;;  %v783_v27 = vld [vmem:[#allocation9 + $0x48] sm:$0xff]  ;;  %v1152_v52 = vrot.slane %v1121_v6, 1 }
 0x1eb   : > { %4340 = vmatprep.subr.bf16.mxu0 %v6567_v13  ;;  %4405 = vmatprep.subr.bf16.mxu1 %v7837_v44  ;;  %7866 = vst [vmem:[#allocation75_spill] sm:$0xff] %v6582_v11  ;;  %766 = vst [vmem:[#allocation2 + $0x80] sm:$0xff] %v6582_v11  ;;  %v833_v13 = vld [vmem:[#allocation9 + $0x1d8] sm:$0xff]  ;;  %v6596_v33 = vpack.c.bf16 %v779_v43, %v776_v47  ;;  %v790_v47 = vld [vmem:[#allocation9 + $0x80] sm:$0xff] }
 0x1ec   : > { %7868 = vst [vmem:[#allocation77_spill] sm:$0xff] %v6599_v4  ;;  %v6601_v2 = vpack.c.bf16 %v833_v13, %v830_v23  ;;  %v785_v11 = vld [vmem:[#allocation9 + $0x58] sm:$0xff]  ;;  %v836_v28 = vld [vmem:[#allocation9 + $0x1f0] sm:$0xff]  ;;  %v839_v43 = vld [vmem:[#allocation9 + $0x208] sm:$0xff]  ;;  %v6610_v13 = vpack.c.bf16 %v783_v27, %v780_v49 }
 0x1ed   : > { %7867 = vst [vmem:[#allocation76_spill] sm:$0xff] %v6596_v33  ;;  %v786_v57 = vld [vmem:[#allocation9 + $0x60] sm:$0xff]  ;;  %v789_v53 = vld [vmem:[#allocation9 + $0x78] sm:$0xff]  ;;  %v788_v6 = vld [vmem:[#allocation9 + $0x70] sm:$0xff]  ;;  %v6619_v23 = vpack.c.bf16 %v839_v43, %v836_v28 }
 0x1ee   : > { %4342 = vmatpush1.bf16.msra.mxu0 %v6571_v29  ;;  %4407 = vmatpush1.bf16.msra.mxu1 %v6573_v35  ;;  %7869 = vst [vmem:[#allocation78_spill] sm:$0xff] %v6601_v2  ;;  %v782_v29 = vld [vmem:[#allocation9 + $0x40] sm:$0xff]  ;;  %v787_v35 = vld [vmem:[#allocation9 + $0x68] sm:$0xff]  ;;  %7871 = vst [vmem:[#allocation79_spill] sm:$0xff] %v6610_v13 }
 0x1ef   : > { %4409 = vmatprep.subr.bf16.mxu0 %v6577_v30  ;;  %4517 = vmatprep.subr.bf16.mxu1 %v6579_v60  ;;  %v7870_v60 = vrot.slane %v6497_v16, 1  ;;  %v6612_v5 = vpack.c.bf16 %v785_v11, %v782_v29  ;;  %7874 = vst [vmem:[#allocation82_spill] sm:$0xff] %v6619_v23  ;;  %v937_v11 = vld [vmem:[#allocation2 + $0x8] sm:$0xff]  ;;  %v845_v49 = vld [vmem:[#allocation9 + $0x238] sm:$0xff]  ;;  %v792_v27 = vld [vmem:[#allocation9 + $0x90] sm:$0xff] }
 0x1f0   : > { %v842_v29 = vld [vmem:[#allocation9 + $0x220] sm:$0xff] }
 0x1f1   : > { %1308 = vmatmul.mubr.f32.vlgmr.msra.gmra.mrb[8].mxu0 %v1144_v36  ;;  %1460 = vmatmul.mubr.f32.vlgmr.msra.gmra.mrb[12].mxu1 %v1144_v36  ;;  %v1155_v42 = vsel %vm1135_vm2, %v7870_v60, %v1154_v41  ;;  %7872 = vst [vmem:[#allocation80_spill] sm:$0xff] %v6612_v5  ;;  %v1153_v60 = vsel %vm1135_vm2, %v1143_v0, %v1152_v52  ;;  %v791_v36 = vld [vmem:[#allocation9 + $0x88] sm:$0xff]  ;;  %v794_v43 = vld [vmem:[#allocation9 + $0xa0] sm:$0xff] }
 0x1f2   : > { %3807 = vmatprep.mubr.msk.f32.mxu0 %vm717_vm5, %v1155_v42  ;;  %3809 = vmatprep.mubr.msk.f32.mxu1 %vm717_vm5, %v1155_v42  ;;  %v6617_v41 = vpack.c.bf16 %v790_v47, %v787_v35  ;;  %v793_v42 = vld [vmem:[#allocation9 + $0x98] sm:$0xff]  ;;  %v6623_v0 = vpack.c.bf16 %v789_v53, %v786_v57  ;;  %v6625_v35 = vpack.c.bf16 %v791_v36, %v788_v6  ;;  %v795_v52 = vld [vmem:[#allocation9 + $0xa8] sm:$0xff]  ;;  %v798_v6 = vld [vmem:[#allocation9 + $0xc0] sm:$0xff] }
 0x1f3   : > { %4411 = vmatpush1.bf16.msra.mxu0 %v6594_v21  ;;  %4519 = vmatpush3.bf16.msra.mxu1 %v6596_v33  ;;  %v796_v33 = vld [vmem:[#allocation9 + $0xb0] sm:$0xff]  ;;  %v6631_v28 = vpack.c.bf16 %v845_v49, %v842_v29  ;;  %v6635_v57 = vpack.c.bf16 %v795_v52, %v792_v27  ;;  %v801_v36 = vld [vmem:[#allocation9 + $0xd8] sm:$0xff]  ;;  %v803_v49 = vld [vmem:[#allocation9 + $0xe8] sm:$0xff] }
 0x1f4   : > { %4413 = vmatprep.subr.bf16.mxu0 %v6599_v4  ;;  %4521 = vmatprep.subr.bf16.mxu1 %v6601_v2  ;;  %7873 = vst [vmem:[#allocation81_spill] sm:$0xff] %v6617_v41  ;;  %7875 = vst [vmem:[#allocation83_spill] sm:$0xff] %v6623_v0  ;;  %v6629_v47 = vpack.c.bf16 %v796_v33, %v793_v42  ;;  %v848_v2 = vld [vmem:[#allocation9 + $0x250] sm:$0xff]  ;;  %v6647_v27 = vpack.c.bf16 %v801_v36, %v798_v6 }
 0x1f5   : > { %1314 = vmatmul.mubr.f32.gmra.mrb[10].mxu0 %v1153_v60  ;;  %1465 = vmatmul.mubr.f32.gmra.mrb[14].mxu1 %v1153_v60  ;;  %7876 = vst [vmem:[#allocation84_spill] sm:$0xff] %v6625_v35  ;;  %7878 = vst [vmem:[#allocation86_spill] sm:$0xff] %v6631_v28  ;;  %v797_v60 = vld [vmem:[#allocation9 + $0xb8] sm:$0xff]  ;;  %v800_v29 = vld [vmem:[#allocation9 + $0xd0] sm:$0xff] }
 0x1f6   : > { %1539 = vmatprep.mubr.f32.mxu0 %v937_v11  ;;  %1693 = vmatprep.mubr.f32.mxu1 %v937_v11  ;;  %7877 = vst [vmem:[#allocation85_spill] sm:$0xff] %v6629_v47  ;;  %v799_v11 = vld [vmem:[#allocation9 + $0xc8] sm:$0xff]  ;;  %7879 = vst [vmem:[#allocation87_spill] sm:$0xff] %v6635_v57  ;;  %v6637_v53 = vpack.c.bf16 %v797_v60, %v794_v43  ;;  %v6649_v52 = vpack.c.bf16 %v803_v49, %v800_v29  ;;  %v804_v43 = vld [vmem:[#allocation9 + $0xf0] sm:$0xff] }
 0x1f7   : > { %4415 = vmatpush1.bf16.msra.mxu0 %v6610_v13  ;;  %4523 = vmatpush3.bf16.msra.mxu1 %v6612_v5  ;;  %v802_v13 = vld [vmem:[#allocation9 + $0xe0] sm:$0xff]  ;;  %v851_v5 = vld [vmem:[#allocation9 + $0x268] sm:$0xff]  ;;  %7883 = vst [vmem:[#allocation91_spill] sm:$0xff] %v6647_v27  ;;  %v813_v49 = vld [vmem:[#allocation9 + $0x138] sm:$0xff] }
 0x1f8   : > { %4417 = vmatprep.subr.bf16.mxu0 %v6617_v41  ;;  %4525 = vmatprep.subr.bf16.mxu1 %v6619_v23  ;;  %7880 = vst [vmem:[#allocation88_spill] sm:$0xff] %v6637_v53  ;;  %v6641_v33 = vpack.c.bf16 %v802_v13, %v799_v11  ;;  %v6643_v42 = vpack.c.bf16 %v851_v5, %v848_v2  ;;  %v805_v23 = vld [vmem:[#allocation9 + $0xf8] sm:$0xff]  ;;  %v854_v41 = vld [vmem:[#allocation9 + $0x280] sm:$0xff]  ;;  %7884 = vst [vmem:[#allocation92_spill] sm:$0xff] %v6649_v52 }
 0x1f9   : > { %v807_v60 = vld [vmem:[#allocation9 + $0x108] sm:$0xff]  ;;  %v806_v5 = vld [vmem:[#allocation9 + $0x100] sm:$0xff]  ;;  %v809_v11 = vld [vmem:[#allocation9 + $0x118] sm:$0xff] }
 0x1fa   : > { %7881 = vst [vmem:[#allocation89_spill] sm:$0xff] %v6641_v33  ;;  %7882 = vst [vmem:[#allocation90_spill] sm:$0xff] %v6643_v42  ;;  %v6659_v6 = vpack.c.bf16 %v807_v60, %v804_v43  ;;  %v6661_v36 = vpack.c.bf16 %v809_v11, %v806_v5  ;;  %v810_v29 = vld [vmem:[#allocation9 + $0x120] sm:$0xff]  ;;  %v816_v5 = vld [vmem:[#allocation9 + $0x150] sm:$0xff] }
 0x1fb   : > { %4419 = vmatpush1.bf16.msra.mxu0 %v6623_v0  ;;  %4527 = vmatpush3.bf16.msra.mxu1 %v6625_v35  ;;  %v808_v0 = vld [vmem:[#allocation9 + $0x110] sm:$0xff]  ;;  %v857_v35 = vld [vmem:[#allocation9 + $0x298] sm:$0xff]  ;;  %v6671_v43 = vpack.c.bf16 %v813_v49, %v810_v29 }
 0x1fc   : > { %4421 = vmatprep.subr.bf16.mxu0 %v6629_v47  ;;  %4529 = vmatprep.subr.bf16.mxu1 %v6631_v28  ;;  %v6653_v2 = vpack.c.bf16 %v808_v0, %v805_v23  ;;  %v6655_v13 = vpack.c.bf16 %v857_v35, %v854_v41  ;;  %v811_v28 = vld [vmem:[#allocation9 + $0x128] sm:$0xff]  ;;  %v860_v47 = vld [vmem:[#allocation9 + $0x2b0] sm:$0xff]  ;;  %7887 = vst [vmem:[#allocation95_spill] sm:$0xff] %v6659_v6  ;;  %7888 = vst [vmem:[#allocation96_spill] sm:$0xff] %v6661_v36 }
 0x1fd   : > { %v812_v0 = vld [vmem:[#allocation9 + $0x130] sm:$0xff]  ;;  %v815_v35 = vld [vmem:[#allocation9 + $0x148] sm:$0xff]  ;;  %7891 = vst [vmem:[#allocation99_spill] sm:$0xff] %v6671_v43  ;;  %v821_v11 = vld [vmem:[#allocation9 + $0x178] sm:$0xff] }
 0x1fe   : > { %7885 = vst [vmem:[#allocation93_spill] sm:$0xff] %v6653_v2  ;;  %7886 = vst [vmem:[#allocation94_spill] sm:$0xff] %v6655_v13  ;;  %v6673_v60 = vpack.c.bf16 %v815_v35, %v812_v0 }
 0x1ff   : > { %4423 = vmatpush1.bf16.msra.mxu0 %v6635_v57  ;;  %4531 = vmatpush3.bf16.msra.mxu1 %v6637_v53  ;;  %v814_v57 = vld [vmem:[#allocation9 + $0x140] sm:$0xff]  ;;  %v863_v53 = vld [vmem:[#allocation9 + $0x2c8] sm:$0xff] }
 0x200   : > { %4425 = vmatprep.subr.bf16.mxu0 %v6641_v33  ;;  %4533 = vmatprep.subr.bf16.mxu1 %v6643_v42  ;;  %v6665_v41 = vpack.c.bf16 %v814_v57, %v811_v28  ;;  %v6667_v23 = vpack.c.bf16 %v863_v53, %v860_v47  ;;  %v817_v42 = vld [vmem:[#allocation9 + $0x158] sm:$0xff]  ;;  %v866_v33 = vld [vmem:[#allocation9 + $0x2e0] sm:$0xff]  ;;  %7892 = vst [vmem:[#allocation100_spill] sm:$0xff] %v6673_v60  ;;  %v819_v57 = vld [vmem:[#allocation9 + $0x168] sm:$0xff] }
 0x201   : > { %v818_v53 = vld [vmem:[#allocation9 + $0x160] sm:$0xff]  ;;  %v6683_v29 = vpack.c.bf16 %v819_v57, %v816_v5  ;;  %v832_v5 = vld [vmem:[#allocation9 + $0x1d0] sm:$0xff] }
 0x202   : > { %7889 = vst [vmem:[#allocation97_spill] sm:$0xff] %v6665_v41  ;;  %7890 = vst [vmem:[#allocation98_spill] sm:$0xff] %v6667_v23  ;;  %v6685_v49 = vpack.c.bf16 %v821_v11, %v818_v53 }
 0x203   : > { %4427 = vmatpush1.bf16.msra.mxu0 %v6647_v27  ;;  %4535 = vmatpush3.bf16.msra.mxu1 %v6649_v52  ;;  %v820_v27 = vld [vmem:[#allocation9 + $0x170] sm:$0xff]  ;;  %v869_v52 = vld [vmem:[#allocation9 + $0x2f8] sm:$0xff]  ;;  %7895 = vst [vmem:[#allocation103_spill] sm:$0xff] %v6683_v29 }
 0x204   : > { %4429 = vmatprep.subr.bf16.mxu0 %v6653_v2  ;;  %4537 = vmatprep.subr.bf16.mxu1 %v6655_v13  ;;  %v6677_v47 = vpack.c.bf16 %v820_v27, %v817_v42  ;;  %v6679_v28 = vpack.c.bf16 %v869_v52, %v866_v33  ;;  %v823_v13 = vld [vmem:[#allocation9 + $0x188] sm:$0xff]  ;;  %v624_v2 = vpop.f32.mrb[4].mxu1  ;;  %7896 = vst [vmem:[#allocation104_spill] sm:$0xff] %v6685_v49  ;;  %v822_v42 = vld [vmem:[#allocation9 + $0x180] sm:$0xff]  ;;  %v825_v27 = vld [vmem:[#allocation9 + $0x198] sm:$0xff] }
 0x205   : > { %v872_v52 = vld [vmem:[#allocation9 + $0x310] sm:$0xff]  ;;  %v625_v35 = vadd.f32 %v624_v2, %v6431_v34 }
 0x206   : > { %7893 = vst [vmem:[#allocation101_spill] sm:$0xff] %v6677_v47  ;;  %7894 = vst [vmem:[#allocation102_spill] sm:$0xff] %v6679_v28 }
 0x207   : > { %4431 = vmatpush1.bf16.msra.mxu0 %v6659_v6  ;;  %4539 = vmatpush3.bf16.msra.mxu1 %v6661_v36  ;;  %v826_v6 = vld [vmem:[#allocation9 + $0x1a0] sm:$0xff]  ;;  %v626_v36 = vpop.f32.mrb[5].mxu1  ;;  %v645_v53 = vmax.f32 %v625_v35, 0.0  ;;  %v881_v35 = vld [vmem:[#allocation9 + $0x358] sm:$0xff] }
 0x208   : > { %4433 = vmatprep.subr.bf16.mxu0 %v6665_v41  ;;  %4541 = vmatprep.subr.bf16.mxu1 %v6667_v23  ;;  %v630_v0 = vpop.f32.mrb[6].mxu1  ;;  %v6689_v33 = vpack.c.bf16 %v826_v6, %v823_v13  ;;  %v875_v23 = vld [vmem:[#allocation9 + $0x328] sm:$0xff]  ;;  %v627_v57 = vadd.f32 %v626_v36, %v6433_v54  ;;  %v6696_v13 = vpack.c.bf16 %v825_v27, %v822_v42  ;;  %v828_v6 = vld [vmem:[#allocation9 + $0x1b0] sm:$0xff]  ;;  %v838_v27 = vld [vmem:[#allocation9 + $0x200] sm:$0xff] }
 0x209   : > { %v632_v41 = vpop.f32.mrb[7].mxu1  ;;  %v835_v42 = vld [vmem:[#allocation9 + $0x1e8] sm:$0xff] }
 0x20a   : > { %v633_v2 = vadd.f32 %v632_v41, %v6433_v54 }
 0x20b   : > { %4435 = vmatpush1.bf16.msra.mxu0 %v6671_v43  ;;  %4543 = vmatpush3.bf16.msra.mxu1 %v6673_v60  ;;  %v631_v43 = vadd.f32 %v630_v0, %v6431_v34  ;;  %v829_v60 = vld [vmem:[#allocation9 + $0x1b8] sm:$0xff]  ;;  %v6701_v34 = vpack.c.bf16 %v875_v23, %v872_v52  ;;  %v878_v0 = vld [vmem:[#allocation9 + $0x340] sm:$0xff] }
 0x20c   : > { %4437 = vmatprep.subr.bf16.mxu0 %v6677_v47  ;;  %4545 = vmatprep.subr.bf16.mxu1 %v6679_v28  ;;  %v646_v28 = vmax.f32 %v627_v57, 0.0  ;;  %v6703_v36 = vpack.c.bf16 %v832_v5, %v829_v60  ;;  %v650_v4 = vmax.f32 %v633_v2, 0.0  ;;  %v6714_v5 = vpack.c.bf16 %v881_v35, %v878_v0 }
 0x20d   : > { %v649_v11 = vmax.f32 %v631_v43, 0.0  ;;  %v831_v43 = vld [vmem:[#allocation9 + $0x1c8] sm:$0xff] }
 0x20e   : > { %v662_v57 = vmin.f32 %v646_v28, 6.0  ;;  %v6710_v23 = vpack.c.bf16 %v831_v43, %v828_v6  ;;  %v666_v52 = vmin.f32 %v650_v4, 6.0  ;;  %v6716_v28 = vpack.c.bf16 %v838_v27, %v835_v42  ;;  %v841_v4 = vld [vmem:[#allocation9 + $0x218] sm:$0xff]  ;;  %v844_v6 = vld [vmem:[#allocation9 + $0x230] sm:$0xff] }
 0x20f   : > { %4439 = vmatpush1.bf16.msra.mxu0 %v6683_v29  ;;  %4547 = vmatpush3.bf16.msra.mxu1 %v6685_v49  ;;  %v661_v29 = vmin.f32 %v645_v53, 6.0  ;;  %v665_v47 = vmin.f32 %v649_v11, 6.0  ;;  %v6705_v49 = vld [vmem:[#allocation2] sm:$0xff]  ;;  %v6725_v43 = vld [vmem:[#allocation2 + $0x18] sm:$0xff] }
 0x210   : > { %4441 = vmatprep.subr.bf16.mxu0 %v6689_v33  ;;  %4548 = vmatprep.subr.bf16.mxu1 %v7837_v44  ;;  %v741_v60 = vrot.slane %v662_v57, 7  ;;  %7897 = vst [vmem:[#allocation105_spill] sm:$0xff] %v6716_v28  ;;  %v834_v53 = vld [vmem:[#allocation9 + $0x1e0] sm:$0xff]  ;;  %v837_v11 = vld [vmem:[#allocation9 + $0x1f8] sm:$0xff]  ;;  %v748_v2 = vrot.slane %v666_v52, 7  ;;  %v840_v27 = vld [vmem:[#allocation9 + $0x210] sm:$0xff] }
 0x211   : > { %v740_v54 = vrot.slane %v661_v29, 7  ;;  %v746_v41 = vrot.slane %v665_v47, 7  ;;  %v884_v29 = vld [vmem:[#allocation9 + $0x370] sm:$0xff]  ;;  %v6730_v0 = vpack.c.bf16 %v837_v11, %v834_v53  ;;  %v843_v57 = vld [vmem:[#allocation9 + $0x228] sm:$0xff] }
 0x212   : > { %1694 = vmatmul.mubr.f32.vlgmr.msra.gmra.mrb[16].mxu1 %v6705_v49  ;;  %765 = vst.msk [vmem:[#allocation2 + $0x78] sm:$0xfe] %vm712_vm3, %v741_v60  ;;  %v749_v35 = vsel %vm684_vm1, %v741_v60, %v748_v2  ;;  %v847_v52 = vld [vmem:[#allocation9 + $0x248] sm:$0xff]  ;;  %v850_v60 = vld [vmem:[#allocation9 + $0x260] sm:$0xff]  ;;  %v6743_v53 = vpack.c.bf16 %v843_v57, %v840_v27 }
 0x213   : > { %4443 = vmatpush1.bf16.msra.mxu0 %v6696_v13  ;;  %1698 = vmatprep.mubr.f32.mxu1 %v6442_v56  ;;  %764 = vst [vmem:[#allocation2 + $0x70] sm:$0xfe] %v740_v54  ;;  %v6719_v47 = vsel %vm684_vm1, %v740_v54, %v746_v41  ;;  %772 = vst [vmem:[#allocation2 + $0xb0] sm:$0x1] %v746_v41  ;;  %v887_v56 = vld [vmem:[#allocation9 + $0x388] sm:$0xff]  ;;  %v890_v54 = vld [vmem:[#allocation9 + $0x3a0] sm:$0xff] }
 0x214   : > { %4550 = vmatpush1.bf16.msra.mxu1 %v6701_v34  ;;  %4445 = vmatprep.subr.bf16.mxu0 %v6703_v36  ;;  %768 = vst [vmem:[#allocation2 + $0x90] sm:$0xff] %v6719_v47  ;;  %7898 = vst [vmem:[#allocation106_spill] sm:$0xff] %v6730_v0  ;;  %v6736_v42 = vpack.c.bf16 %v887_v56, %v884_v29  ;;  %v893_v41 = vld [vmem:[#allocation9 + $0x3b8] sm:$0xff]  ;;  %v6749_v29 = vpack.c.bf16 %v850_v60, %v847_v52  ;;  %v846_v56 = vld [vmem:[#allocation9 + $0x240] sm:$0xff] }
 0x215   : > { %4551 = vmatprep.subr.bf16.mxu1 %v7837_v44  ;;  %773 = vst.msk [vmem:[#allocation2 + $0xb8] sm:$0x1] %vm722_vm4, %v748_v2  ;;  %7901 = vst [vmem:[#allocation109_spill] sm:$0xff] %v6743_v53  ;;  %v6747_v11 = vpack.c.bf16 %v893_v41, %v890_v54  ;;  %v899_v2 = vld [vmem:[#allocation9 + $0x3e8] sm:$0xff]  ;;  %v852_v41 = vld [vmem:[#allocation9 + $0x270] sm:$0xff] }
 0x216   : > { %1699 = vmatmul.mubr.f32.gmra.mrb[18].mxu1 %v6437_v14  ;;  %7899 = vst [vmem:[#allocation107_spill] sm:$0xff] %v6736_v42  ;;  %v6738_v14 = vpack.c.bf16 %v844_v6, %v841_v4  ;;  %769 = vst.msk [vmem:[#allocation2 + $0x98] sm:$0xff] %vm717_vm5, %v749_v35  ;;  %v849_v4 = vld [vmem:[#allocation9 + $0x258] sm:$0xff]  ;;  %v896_v6 = vld [vmem:[#allocation9 + $0x3d0] sm:$0xff] }
 0x217   : > { %4447 = vmatpush1.bf16.msra.mxu0 %v6710_v23  ;;  %3812 = vmatprep.mubr.msk.f32.mxu1 %vm717_vm5, %v6725_v43  ;;  %7902 = vst [vmem:[#allocation110_spill] sm:$0xff] %v6747_v11  ;;  %7903 = vst [vmem:[#allocation111_spill] sm:$0xff] %v6749_v29  ;;  %v853_v35 = vld [vmem:[#allocation9 + $0x278] sm:$0xff]  ;;  %v6753_v27 = vpack.c.bf16 %v849_v4, %v846_v56  ;;  %v6757_v57 = vpack.c.bf16 %v899_v2, %v896_v6  ;;  %v855_v52 = vld [vmem:[#allocation9 + $0x288] sm:$0xff] }
 0x218   : > { %4553 = vmatpush1.bf16.msra.mxu1 %v6714_v5  ;;  %4449 = vmatprep.subr.bf16.mxu0 %v6716_v28  ;;  %7900 = vst [vmem:[#allocation108_spill] sm:$0xff] %v6738_v14  ;;  %v856_v28 = vld [vmem:[#allocation9 + $0x290] sm:$0xff]  ;;  %v902_v60 = vld [vmem:[#allocation9 + $0x400] sm:$0xff]  ;;  %v6763_v56 = vpack.c.bf16 %v855_v52, %v852_v41  ;;  %v861_v2 = vld [vmem:[#allocation9 + $0x2b8] sm:$0xff] }
 0x219   : > { %4554 = vmatprep.subr.bf16.mxu1 %v7837_v44  ;;  %7904 = vst [vmem:[#allocation112_spill] sm:$0xff] %v6753_v27  ;;  %7905 = vst [vmem:[#allocation113_spill] sm:$0xff] %v6757_v57  ;;  %v6759_v54 = vpack.c.bf16 %v856_v28, %v853_v35  ;;  %v858_v6 = vld [vmem:[#allocation9 + $0x2a0] sm:$0xff]  ;;  %v908_v35 = vld [vmem:[#allocation9 + $0x430] sm:$0xff] }
 0x21a   : > { %7907 = vst [vmem:[#allocation115_spill] sm:$0xff] %v6763_v56  ;;  %v6773_v41 = vpack.c.bf16 %v861_v2, %v858_v6  ;;  %v867_v52 = vld [vmem:[#allocation9 + $0x2e8] sm:$0xff]  ;;  %v873_v2 = vld [vmem:[#allocation9 + $0x318] sm:$0xff] }
 0x21b   : > { %4451 = vmatpush1.bf16.msra.mxu0 %v6730_v0  ;;  %7906 = vst [vmem:[#allocation114_spill] sm:$0xff] %v6759_v54  ;;  %v862_v0 = vld [vmem:[#allocation9 + $0x2c0] sm:$0xff] }
 0x21c   : > { %4556 = vmatpush1.bf16.msra.mxu1 %v6736_v42  ;;  %4453 = vmatprep.subr.bf16.mxu0 %v6738_v14  ;;  %v905_v14 = vld [vmem:[#allocation9 + $0x418] sm:$0xff]  ;;  %v859_v42 = vld [vmem:[#allocation9 + $0x2a8] sm:$0xff]  ;;  %7910 = vst [vmem:[#allocation118_spill] sm:$0xff] %v6773_v41 }
 0x21d   : > { %4557 = vmatprep.subr.bf16.mxu1 %v7837_v44  ;;  %v6767_v4 = vpack.c.bf16 %v905_v14, %v902_v60  ;;  %v6769_v28 = vpack.c.bf16 %v862_v0, %v859_v42  ;;  %v864_v42 = vld [vmem:[#allocation9 + $0x2d0] sm:$0xff]  ;;  %v914_v60 = vld [vmem:[#allocation9 + $0x460] sm:$0xff] }
 0x21e   : > { %v6783_v6 = vpack.c.bf16 %v867_v52, %v864_v42  ;;  %v879_v52 = vld [vmem:[#allocation9 + $0x348] sm:$0xff] }
 0x21f   : > { %4455 = vmatpush1.bf16.msra.mxu0 %v6743_v53  ;;  %7908 = vst [vmem:[#allocation116_spill] sm:$0xff] %v6767_v4  ;;  %7909 = vst [vmem:[#allocation117_spill] sm:$0xff] %v6769_v28  ;;  %v868_v53 = vld [vmem:[#allocation9 + $0x2f0] sm:$0xff] }
 0x220   : > { %4559 = vmatpush1.bf16.msra.mxu1 %v6747_v11  ;;  %4457 = vmatprep.subr.bf16.mxu0 %v6749_v29  ;;  %v911_v29 = vld [vmem:[#allocation9 + $0x448] sm:$0xff]  ;;  %v865_v11 = vld [vmem:[#allocation9 + $0x2d8] sm:$0xff]  ;;  %7913 = vst [vmem:[#allocation121_spill] sm:$0xff] %v6783_v6 }
 0x221   : > { %4560 = vmatprep.subr.bf16.mxu1 %v7837_v44  ;;  %v6777_v14 = vpack.c.bf16 %v911_v29, %v908_v35  ;;  %v6779_v0 = vpack.c.bf16 %v868_v53, %v865_v11  ;;  %v870_v11 = vld [vmem:[#allocation9 + $0x300] sm:$0xff]  ;;  %v920_v35 = vld [vmem:[#allocation9 + $0x490] sm:$0xff] }
 0x222   : > { %v6793_v42 = vpack.c.bf16 %v873_v2, %v870_v11  ;;  %v6803_v11 = vld [vmem:[#allocation2 + $0x28] sm:$0xff] }
 0x223   : > { %4459 = vmatpush1.bf16.msra.mxu0 %v6753_v27  ;;  %7911 = vst [vmem:[#allocation119_spill] sm:$0xff] %v6777_v14  ;;  %7912 = vst [vmem:[#allocation120_spill] sm:$0xff] %v6779_v0  ;;  %v874_v27 = vld [vmem:[#allocation9 + $0x320] sm:$0xff] }
 0x224   : > { %4562 = vmatpush1.bf16.msra.mxu1 %v6757_v57  ;;  %4461 = vmatprep.subr.bf16.mxu0 %v6759_v54  ;;  %v917_v54 = vld [vmem:[#allocation9 + $0x478] sm:$0xff]  ;;  %v871_v57 = vld [vmem:[#allocation9 + $0x308] sm:$0xff]  ;;  %7916 = vst [vmem:[#allocation124_spill] sm:$0xff] %v6803_v11  ;;  %v882_v2 = vld [vmem:[#allocation9 + $0x360] sm:$0xff] }
 0x225   : > { %4563 = vmatprep.subr.bf16.mxu1 %v7837_v44  ;;  %v6787_v29 = vpack.c.bf16 %v917_v54, %v914_v60  ;;  %v6789_v53 = vpack.c.bf16 %v874_v27, %v871_v57  ;;  %v876_v57 = vld [vmem:[#allocation9 + $0x330] sm:$0xff]  ;;  %v926_v60 = vld [vmem:[#allocation9 + $0x4c0] sm:$0xff] }
 0x227   : > { %4463 = vmatpush1.bf16.msra.mxu0 %v6763_v56  ;;  %7914 = vst [vmem:[#allocation122_spill] sm:$0xff] %v6787_v29  ;;  %7915 = vst [vmem:[#allocation123_spill] sm:$0xff] %v6789_v53  ;;  %v880_v56 = vld [vmem:[#allocation9 + $0x350] sm:$0xff] }
 0x228   : > { %4565 = vmatpush1.bf16.msra.mxu1 %v6767_v4  ;;  %4465 = vmatprep.subr.bf16.mxu0 %v6769_v28  ;;  %v923_v28 = vld [vmem:[#allocation9 + $0x4a8] sm:$0xff]  ;;  %v877_v4 = vld [vmem:[#allocation9 + $0x338] sm:$0xff] }
 0x229   : > { %4566 = vmatprep.subr.bf16.mxu1 %v7837_v44  ;;  %v6797_v54 = vpack.c.bf16 %v923_v28, %v920_v35  ;;  %v6799_v27 = vpack.c.bf16 %v880_v56, %v877_v4  ;;  %v6807_v28 = vpack.c.bf16 %v879_v52, %v876_v57  ;;  %v885_v35 = vld [vmem:[#allocation9 + $0x378] sm:$0xff]  ;;  %v891_v52 = vld [vmem:[#allocation9 + $0x3a8] sm:$0xff] }
 0x22a   : > { %v6819_v57 = vpack.c.bf16 %v885_v35, %v882_v2  ;;  %v894_v2 = vld [vmem:[#allocation9 + $0x3c0] sm:$0xff]  ;;  %v904_v35 = vld [vmem:[#allocation9 + $0x410] sm:$0xff] }
 0x22b   : > { %4467 = vmatpush1.bf16.msra.mxu0 %v6773_v41  ;;  %v886_v41 = vld [vmem:[#allocation9 + $0x380] sm:$0xff]  ;;  %7917 = vst [vmem:[#allocation125_spill] sm:$0xff] %v6807_v28 }
 0x22c   : > { %4568 = vmatpush1.bf16.msra.mxu1 %v6777_v14  ;;  %4469 = vmatprep.subr.bf16.mxu0 %v6779_v0  ;;  %v929_v0 = vld [vmem:[#allocation9 + $0x4d8] sm:$0xff]  ;;  %v883_v14 = vld [vmem:[#allocation9 + $0x368] sm:$0xff]  ;;  %7919 = vst [vmem:[#allocation127_spill] sm:$0xff] %v6819_v57 }
 0x22d   : > { %4569 = vmatprep.subr.bf16.mxu1 %v7837_v44  ;;  %v6811_v56 = vpack.c.bf16 %v929_v0, %v926_v60  ;;  %v6813_v4 = vpack.c.bf16 %v886_v41, %v883_v14  ;;  %v888_v0 = vld [vmem:[#allocation9 + $0x390] sm:$0xff]  ;;  %v898_v60 = vld [vmem:[#allocation9 + $0x3e0] sm:$0xff] }
 0x22f   : > { %4471 = vmatpush1.bf16.msra.mxu0 %v6783_v6  ;;  %7918 = vst [vmem:[#allocation126_spill] sm:$0xff] %v6813_v4  ;;  %v5483_v6 = vld [vmem:[#allocation2 + $0x20] sm:$0xff] }
 0x230   : > { %4571 = vmatpush1.bf16.msra.mxu1 %v6787_v29  ;;  %4473 = vmatprep.subr.bf16.mxu0 %v6789_v53  ;;  %v932_v53 = vld [vmem:[#allocation9 + $0x4f0] sm:$0xff]  ;;  %v889_v29 = vld [vmem:[#allocation9 + $0x398] sm:$0xff] }
 0x231   : > { %4572 = vmatprep.subr.bf16.mxu1 %v7837_v44 }
 0x232   : > { %1540 = vmatmul.mubr.f32.vlgmr.msra.gmra.mrb[8].mxu0 %v6705_v49  ;;  %v935_v49 = vld [vmem:[#allocation9 + $0x508] sm:$0xff] }
 0x233   : > { %1545 = vmatprep.mubr.f32.mxu0 %v6803_v11  ;;  %4475 = vmatpush1.bf16.msra.mxu0 %v6793_v42  ;;  %v892_v11 = vld [vmem:[#allocation9 + $0x3b0] sm:$0xff]  ;;  %v6823_v41 = vpack.c.bf16 %v935_v49, %v932_v53  ;;  %v897_v53 = vld [vmem:[#allocation9 + $0x3d8] sm:$0xff] }
 0x234   : > { %4574 = vmatpush1.bf16.msra.mxu1 %v6797_v54  ;;  %4477 = vmatprep.subr.bf16.mxu0 %v6799_v27  ;;  %v6825_v14 = vpack.c.bf16 %v892_v11, %v889_v29  ;;  %v901_v11 = vld [vmem:[#allocation9 + $0x3f8] sm:$0xff]  ;;  %v6836_v49 = vld [vmem:[#allocation2 + $0x10] sm:$0xff] }
 0x235   : > { %4575 = vmatprep.subr.bf16.mxu1 %v7837_v44 }
 0x236   : > { %1546 = vmatmul.mubr.f32.gmra.mrb[10].mxu0 %v5483_v6  ;;  %v895_v6 = vld [vmem:[#allocation9 + $0x3c8] sm:$0xff] }
 0x237   : > { %4479 = vmatpush1.bf16.msra.mxu0 %v6807_v28  ;;  %3810 = vmatprep.mubr.msk.f32.mxu0 %vm717_vm5, %v6725_v43  ;;  %v6829_v28 = vpack.c.bf16 %v891_v52, %v888_v0  ;;  %v1780_v43 = vld [vmem:[#allocation2 + $0x68] sm:$0xfe]  ;;  %v6834_v29 = vpack.c.bf16 %v898_v60, %v895_v6  ;;  %v6841_v0 = vpack.c.bf16 %v897_v53, %v894_v2  ;;  %v900_v52 = vld [vmem:[#allocation9 + $0x3f0] sm:$0xff]  ;;  %v909_v53 = vld [vmem:[#allocation9 + $0x438] sm:$0xff] }
 0x238   : > { %4577 = vmatpush1.bf16.msra.mxu1 %v6811_v56  ;;  %4481 = vmatprep.subr.bf16.mxu0 %v6813_v4  ;;  %v1806_v4 = vrot.slane %v1780_v43, 1  ;;  %v903_v6 = vld [vmem:[#allocation9 + $0x408] sm:$0xff]  ;;  %v910_v43 = vld [vmem:[#allocation9 + $0x440] sm:$0xff] }
 0x239   : > { %4578 = vmatprep.subr.bf16.mxu1 %v7837_v44  ;;  %v907_v60 = vld [vmem:[#allocation9 + $0x428] sm:$0xff] }
 0x23b   : > { %4483 = vmatpush1.bf16.msra.mxu0 %v6819_v57  ;;  %v1807_v57 = vrot.slane %v6587_v1, 1  ;;  %v7942_v1 = vld [vmem:[#allocation45_spill] sm:$0xff] }
 0x23c   : > { %4580 = vmatpush1.bf16.msra.mxu1 %v6823_v41  ;;  %4485 = vmatprep.subr.bf16.mxu0 %v6825_v14 }
 0x23d   : > { %4582 = vmatprep.subr.bf16.mxu1 %v6232_v25  ;;  %v6846_v25 = vpack.c.bf16 %v904_v35, %v901_v11  ;;  %v6853_v2 = vsel %vm1135_vm2, %v1806_v4, %v1807_v57  ;;  %v913_v11 = vld [vmem:[#allocation9 + $0x458] sm:$0xff]  ;;  %v916_v35 = vld [vmem:[#allocation9 + $0x470] sm:$0xff] }
 0x23e   : > { %v912_v4 = vld [vmem:[#allocation9 + $0x450] sm:$0xff] }
 0x23f   : > { %1769 = vmatmul.mubr.f32.vlgmr.msra.gmra.mrb[20].mxu1 %v6836_v49  ;;  %4487 = vmatpush1.bf16.msra.mxu0 %v6829_v28 }
 0x240   : > { %3813 = vmatprep.mubr.msk.f32.mxu1 %vm717_vm5, %v6497_v16  ;;  %4584 = vmatpush1.bf16.msra.mxu1 %v6248_v37  ;;  %v6857_v37 = vpack.c.bf16 %v903_v6, %v900_v52  ;;  %v6861_v16 = vpack.c.bf16 %v910_v43, %v907_v60  ;;  %v915_v52 = vld [vmem:[#allocation9 + $0x468] sm:$0xff] }
 0x241   : > { %4489 = vmatprep.subr.bf16.mxu0 %v6834_v29  ;;  %4586 = vmatprep.subr.bf16.mxu1 %v6250_v38  ;;  %v906_v38 = vld [vmem:[#allocation9 + $0x420] sm:$0xff]  ;;  %v919_v6 = vld [vmem:[#allocation9 + $0x488] sm:$0xff]  ;;  %v6874_v60 = vpack.c.bf16 %v915_v52, %v912_v4 }
 0x242   : > { %v927_v4 = vld [vmem:[#allocation9 + $0x4c8] sm:$0xff] }
 0x243   : > { %1774 = vmatmul.mubr.f32.gmra.mrb[22].mxu1 %v6470_v20  ;;  %4491 = vmatpush1.bf16.msra.mxu0 %v6841_v0  ;;  %v6866_v20 = vpack.c.bf16 %v909_v53, %v906_v38  ;;  %v921_v38 = vld [vmem:[#allocation9 + $0x498] sm:$0xff]  ;;  %v931_v52 = vld [vmem:[#allocation9 + $0x4e8] sm:$0xff] }
 0x244   : > { %4588 = vmatpush1.bf16.msra.mxu1 %v6261_v48  ;;  %4493 = vmatprep.subr.bf16.mxu0 %v6846_v25  ;;  %v6870_v48 = vpack.c.bf16 %v916_v35, %v913_v11  ;;  %v925_v53 = vld [vmem:[#allocation9 + $0x4b8] sm:$0xff]  ;;  %v928_v11 = vld [vmem:[#allocation9 + $0x4d0] sm:$0xff] }
 0x245   : > { %4590 = vmatprep.subr.bf16.mxu1 %v6264_v51  ;;  %1897 = vmatprep.mubr.f32.mxu1 %v6853_v2  ;;  %v922_v51 = vld [vmem:[#allocation9 + $0x4a0] sm:$0xff]  ;;  %v6886_v35 = vpack.c.bf16 %v928_v11, %v925_v53  ;;  %v6942_v53 = vld [vmem:[#allocation2 + $0x98] sm:$0xff] }
 0x246   : > { %v6878_v43 = vpack.c.bf16 %v922_v51, %v919_v6  ;;  %v934_v6 = vld [vmem:[#allocation9 + $0x500] sm:$0xff] }
 0x247   : > { %4495 = vmatpush1.bf16.msra.mxu0 %v6857_v37  ;;  %v6894_v51 = vpack.c.bf16 %v934_v6, %v931_v52  ;;  %v7937_v52 = vld [vmem:[#allocation36_spill] sm:$0xff] }
 0x248   : > { %4592 = vmatpush1.bf16.msra.mxu1 %v6271_v59  ;;  %4497 = vmatprep.subr.bf16.mxu0 %v6861_v16  ;;  %v918_v59 = vld [vmem:[#allocation9 + $0x480] sm:$0xff] }
 0x249   : > { %4594 = vmatprep.subr.bf16.mxu1 %v6274_v63  ;;  %v6882_v63 = vpack.c.bf16 %v921_v38, %v918_v59  ;;  %v933_v59 = vld [vmem:[#allocation9 + $0x4f8] sm:$0xff] }
 0x24b   : > { %4499 = vmatpush1.bf16.msra.mxu0 %v6866_v20 }
 0x24c   : > { %4596 = vmatpush1.bf16.msra.mxu1 %v6282_v8  ;;  %4501 = vmatprep.subr.bf16.mxu0 %v6870_v48  ;;  %v924_v8 = vld [vmem:[#allocation9 + $0x4b0] sm:$0xff] }
 0x24d   : > { %4598 = vmatprep.subr.bf16.mxu1 %v6287_v12  ;;  %v6890_v12 = vpack.c.bf16 %v927_v4, %v924_v8  ;;  %v1787_v8 = vld [vmem:[#allocation2 + $0xa0] sm:$0x1] }
 0x24e   : > { %v7936_v4 = vld [vmem:[#allocation37_spill] sm:$0xff] }
 0x24f   : > { %4503 = vmatpush1.bf16.msra.mxu0 %v6874_v60 }
 0x250   : > { %4600 = vmatpush1.bf16.msra.mxu1 %v6294_v18  ;;  %4505 = vmatprep.subr.bf16.mxu0 %v6878_v43  ;;  %v930_v18 = vld [vmem:[#allocation9 + $0x4e0] sm:$0xff] }
 0x251   : > { %4602 = vmatprep.subr.bf16.mxu1 %v6298_v19  ;;  %v6898_v38 = vpack.c.bf16 %v933_v59, %v930_v18  ;;  %v6908_v19 = vld [vmem:[#allocation2 + $0x38] sm:$0xff]  ;;  %v1813_v18 = vrot.slane %v6942_v53, 1 }
 0x253   : > { %4507 = vmatpush1.bf16.msra.mxu0 %v6882_v63 }
 0x254   : > { %4604 = vmatpush1.bf16.msra.mxu1 %v6303_v24  ;;  %4509 = vmatprep.subr.bf16.mxu0 %v6886_v35  ;;  %v5485_v24 = vld [vmem:[#allocation2 + $0x30] sm:$0xff] }
 0x255   : > { %4606 = vmatprep.subr.bf16.mxu1 %v6306_v26  ;;  %v7924_v26 = vld [vmem:[#allocation24_spill] sm:$0xff] }
 0x257   : > { %4511 = vmatpush1.bf16.msra.mxu0 %v6890_v12 }
 0x258   : > { %4608 = vmatpush1.bf16.msra.mxu1 %v6310_v31  ;;  %4513 = vmatprep.subr.bf16.mxu0 %v6894_v51  ;;  %v7925_v31 = vld [vmem:[#allocation27_spill] sm:$0xff] }
 0x259   : > { %4610 = vmatprep.subr.bf16.mxu1 %v6313_v32  ;;  %v7926_v32 = vld [vmem:[#allocation26_spill] sm:$0xff] }
 0x25b   : > { %4515 = vmatpush1.bf16.msra.mxu0 %v6898_v38 }
 0x25c   : > { %4612 = vmatpush1.bf16.msra.mxu1 %v6316_v39  ;;  %4690 = vmatprep.subr.bf16.mxu0 %v6268_v58  ;;  %v7920_v58 = vld [vmem:[#allocation21_spill] sm:$0xff] }
 0x25d   : > { %4614 = vmatprep.subr.bf16.mxu1 %v6319_v40  ;;  %v7927_v39 = vld [vmem:[#allocation29_spill] sm:$0xff]  ;;  %v7928_v40 = vld [vmem:[#allocation28_spill] sm:$0xff] }
 0x25e   : > { %1617 = vmatmul.mubr.f32.vlgmr.msra.gmra.mrb[8].mxu0 %v6836_v49 }
 0x25f   : > { %3811 = vmatprep.mubr.msk.f32.mxu0 %vm717_vm5, %v6908_v19  ;;  %4692 = vmatpush3.bf16.msra.mxu0 %v6279_v7  ;;  %v7921_v7 = vld [vmem:[#allocation23_spill] sm:$0xff] }
 0x260   : > { %4616 = vmatpush1.bf16.msra.mxu1 %v6322_v45  ;;  %4694 = vmatprep.subr.bf16.mxu0 %v6284_v9  ;;  %v7922_v9 = vld [vmem:[#allocation22_spill] sm:$0xff]  ;;  %v7929_v45 = vld [vmem:[#allocation31_spill] sm:$0xff] }
 0x261   : > { %4618 = vmatprep.subr.bf16.mxu1 %v6325_v46  ;;  %v7930_v46 = vld [vmem:[#allocation30_spill] sm:$0xff] }
 0x262   : > { %1623 = vmatmul.mubr.f32.gmra.mrb[10].mxu0 %v5485_v24  ;;  %v7938_v24 = vld [vmem:[#allocation38_spill] sm:$0xff] }
 0x263   : > { %4696 = vmatpush3.bf16.msra.mxu0 %v6291_v17  ;;  %2051 = vmatprep.mubr.f32.mxu0 %v6853_v2  ;;  %v7923_v17 = vld [vmem:[#allocation25_spill] sm:$0xff] }
 0x264   : > { %4620 = vmatpush1.bf16.msra.mxu1 %v6328_v50  ;;  %4698 = vmatprep.subr.bf16.mxu0 %v6334_v61  ;;  %v1779_v50 = vld [vmem:[#allocation2 + $0x60] sm:$0xfe]  ;;  %v1788_v61 = vld [vmem:[#allocation2 + $0xa8] sm:$0x1]  ;;  %v1782_v2 = vld [vmem:[#allocation2 + $0x78] sm:$0xfe] }
 0x265   : > { %4622 = vmatprep.subr.bf16.mxu1 %v6332_v55  ;;  %v7931_v55 = vld [vmem:[#allocation33_spill] sm:$0xff]  ;;  %v1817_v11 = vrot.slane %v1788_v61, 1  ;;  %v1812_v6 = vrot.slane %v1782_v2, 1  ;;  %v7957_v2 = vld [vmem:[#allocation60_spill] sm:$0xff] }
 0x266   : > { %v7950_v61 = vld [vmem:[#allocation53_spill] sm:$0xff] }
 0x267   : > { %4700 = vmatpush3.bf16.msra.mxu0 %v6339_v3  ;;  %v7933_v3 = vld [vmem:[#allocation35_spill] sm:$0xff] }
 0x268   : > { %4624 = vmatpush1.bf16.msra.mxu1 %v6336_v62  ;;  %4702 = vmatprep.subr.bf16.mxu0 %v6346_v15  ;;  %v7932_v62 = vld [vmem:[#allocation32_spill] sm:$0xff]  ;;  %v1803_v15 = vrot.slane %v1779_v50, 1  ;;  %v7948_v50 = vld [vmem:[#allocation51_spill] sm:$0xff] }
 0x269   : > { %4626 = vmatprep.subr.bf16.mxu1 %v6344_v10  ;;  %v7934_v10 = vld [vmem:[#allocation34_spill] sm:$0xff] }
 0x26b   : > { %4704 = vmatpush3.bf16.msra.mxu0 %v6351_v22  ;;  %v7935_v22 = vld [vmem:[#allocation75_spill] sm:$0xff] }
 0x26c   : > { %4628 = vmatpush1.bf16.msra.mxu1 %v7920_v58  ;;  %4706 = vmatprep.subr.bf16.mxu0 %v7921_v7  ;;  %v1804_v49 = vrot.slane %v7935_v22, 1  ;;  %v1815_v58 = vrot.slane %v1787_v8, 1  ;;  %v1818_v7 = vsel %vm1135_vm2, %v1807_v57, %v1817_v11  ;;  %v7943_v57 = vld [vmem:[#allocation46_spill] sm:$0xff]  ;;  %v7958_v8 = vld [vmem:[#allocation61_spill] sm:$0xff] }
 0x26d   : > { %4630 = vmatprep.subr.bf16.mxu1 %v7922_v9  ;;  %v7939_v9 = vld [vmem:[#allocation42_spill] sm:$0xff] }
 0x26e   : > { %v1805_v59 = vsel %vm1135_vm2, %v1803_v15, %v1804_v49  ;;  %v7954_v15 = vld [vmem:[#allocation57_spill] sm:$0xff]  ;;  %v7955_v22 = vld [vmem:[#allocation58_spill] sm:$0xff] }
 0x26f   : > { %4708 = vmatpush3.bf16.msra.mxu0 %v7923_v17  ;;  %v1814_v17 = vsel %vm1135_vm2, %v1812_v6, %v1813_v18 }
 0x270   : > { %4632 = vmatpush1.bf16.msra.mxu1 %v7924_v26  ;;  %4710 = vmatprep.subr.bf16.mxu0 %v7925_v31  ;;  %v7940_v26 = vld [vmem:[#allocation43_spill] sm:$0xff]  ;;  %v1816_v31 = vsel %vm1135_vm2, %v1804_v49, %v1815_v58  ;;  %v7961_v58 = vld [vmem:[#allocation64_spill] sm:$0xff] }
 0x271   : > { %4634 = vmatprep.subr.bf16.mxu1 %v7926_v32  ;;  %v7941_v32 = vld [vmem:[#allocation44_spill] sm:$0xff]  ;;  %v7956_v49 = vld [vmem:[#allocation59_spill] sm:$0xff] }
 0x273   : > { %4712 = vmatpush3.bf16.msra.mxu0 %v7927_v39  ;;  %v7944_v39 = vld [vmem:[#allocation47_spill] sm:$0xff] }
 0x274   : > { %4636 = vmatpush1.bf16.msra.mxu1 %v7928_v40  ;;  %4714 = vmatprep.subr.bf16.mxu0 %v7929_v45  ;;  %v7945_v40 = vld [vmem:[#allocation48_spill] sm:$0xff]  ;;  %v7946_v45 = vld [vmem:[#allocation49_spill] sm:$0xff] }
 0x275   : > { %4638 = vmatprep.subr.bf16.mxu1 %v7930_v46  ;;  %v7947_v46 = vld [vmem:[#allocation50_spill] sm:$0xff] }
 0x277   : > { %4716 = vmatpush3.bf16.msra.mxu0 %v7931_v55  ;;  %v7949_v55 = vld [vmem:[#allocation52_spill] sm:$0xff] }
 0x278   : > { %4640 = vmatpush1.bf16.msra.mxu1 %v7932_v62  ;;  %4718 = vmatprep.subr.bf16.mxu0 %v7933_v3  ;;  %v7951_v62 = vld [vmem:[#allocation54_spill] sm:$0xff]  ;;  %v7952_v3 = vld [vmem:[#allocation55_spill] sm:$0xff] }
 0x279   : > { %4642 = vmatprep.subr.bf16.mxu1 %v7934_v10  ;;  %v7953_v10 = vld [vmem:[#allocation56_spill] sm:$0xff] }
 0x27b   : > { %4720 = vmatpush3.bf16.msra.mxu0 %v7936_v4  ;;  %v7959_v4 = vld [vmem:[#allocation62_spill] sm:$0xff] }
 0x27c   : > { %4644 = vmatpush1.bf16.msra.mxu1 %v7937_v52  ;;  %4721 = vmatprep.subr.bf16.mxu0 %v7837_v44 }
 0x27d   : > { %4646 = vmatprep.subr.bf16.mxu1 %v7938_v24 }
 0x27e   : > { %2052 = vmatmul.mubr.f32.vlgmr.msra.gmra.mrb[12].mxu0 %v1805_v59 }
 0x27f   : > { %1898 = vmatmul.mubr.f32.vlgmr.msra.gmra.mrb[24].mxu1 %v1805_v59  ;;  %2056 = vmatprep.mubr.f32.mxu0 %v1818_v7  ;;  %v7960_v59 = vld [vmem:[#allocation63_spill] sm:$0xff] }
 0x280   : > { %1903 = vmatprep.mubr.f32.mxu1 %v1818_v7  ;;  %4648 = vmatpush1.bf16.msra.mxu1 %v7939_v9  ;;  %v7962_v7 = vld [vmem:[#allocation65_spill] sm:$0xff] }
 0x281   : > { %4723 = vmatpush1.bf16.msra.mxu0 %v7940_v26  ;;  %4650 = vmatprep.subr.bf16.mxu1 %v7941_v32  ;;  %v7963_v26 = vld [vmem:[#allocation66_spill] sm:$0xff]  ;;  %v7965_v32 = vld [vmem:[#allocation68_spill] sm:$0xff] }
 0x282   : > { %2057 = vmatmul.mubr.f32.gmra.mrb[14].mxu0 %v1816_v31  ;;  %4724 = vmatprep.subr.bf16.mxu0 %v7837_v44 }
 0x283   : > { %1904 = vmatmul.mubr.f32.gmra.mrb[26].mxu1 %v1816_v31  ;;  %3816 = vmatprep.mubr.msk.f32.mxu0 %vm717_vm5, %v1814_v17  ;;  %v7964_v31 = vld [vmem:[#allocation67_spill] sm:$0xff] }
 0x284   : > { %4652 = vmatpush1.bf16.msra.mxu1 %v7942_v1  ;;  %3814 = vmatprep.mubr.msk.f32.mxu1 %vm717_vm5, %v1814_v17  ;;  %v1781_v1 = vld [vmem:[#allocation2 + $0x70] sm:$0xfe] }
 0x285   : > { %4726 = vmatpush1.bf16.msra.mxu0 %v7943_v57  ;;  %4654 = vmatprep.subr.bf16.mxu1 %v7944_v39  ;;  %v7966_v57 = vld [vmem:[#allocation69_spill] sm:$0xff]  ;;  %v1790_v39 = vld [vmem:[#allocation2 + $0xb8] sm:$0x1] }
 0x286   : > { %4727 = vmatprep.subr.bf16.mxu0 %v7837_v44 }
 0x288   : > { %4656 = vmatpush1.bf16.msra.mxu1 %v7945_v40  ;;  %v7967_v40 = vld [vmem:[#allocation70_spill] sm:$0xff] }
 0x289   : > { %4729 = vmatpush1.bf16.msra.mxu0 %v7946_v45  ;;  %4658 = vmatprep.subr.bf16.mxu1 %v7947_v46  ;;  %v7968_v45 = vld [vmem:[#allocation71_spill] sm:$0xff]  ;;  %v1809_v46 = vrot.slane %v1781_v1, 1  ;;  %v7986_v1 = vld [vmem:[#allocation90_spill] sm:$0xff] }
 0x28a   : > { %4730 = vmatprep.subr.bf16.mxu0 %v7837_v44 }
 0x28c   : > { %4660 = vmatpush1.bf16.msra.mxu1 %v7948_v50  ;;  %v1810_v50 = vrot.slane %v6719_v47, 1 }
 0x28d   : > { %4732 = vmatpush1.bf16.msra.mxu0 %v7949_v55  ;;  %4662 = vmatprep.subr.bf16.mxu1 %v7950_v61  ;;  %v1821_v55 = vrot.slane %v1790_v39, 1  ;;  %v1789_v61 = vld [vmem:[#allocation2 + $0xb0] sm:$0x1]  ;;  %v7988_v39 = vld [vmem:[#allocation92_spill] sm:$0xff] }
 0x28e   : > { %4733 = vmatprep.subr.bf16.mxu0 %v7837_v44 }
 0x290   : > { %4664 = vmatpush1.bf16.msra.mxu1 %v7951_v62  ;;  %v7969_v62 = vld [vmem:[#allocation72_spill] sm:$0xff] }
 0x291   : > { %4735 = vmatpush1.bf16.msra.mxu0 %v7952_v3  ;;  %4666 = vmatprep.subr.bf16.mxu1 %v7953_v10  ;;  %v7970_v3 = vld [vmem:[#allocation73_spill] sm:$0xff]  ;;  %v1811_v10 = vsel %vm1135_vm2, %v1809_v46, %v1810_v50  ;;  %v7991_v46 = vld [vmem:[#allocation95_spill] sm:$0xff] }
 0x292   : > { %4736 = vmatprep.subr.bf16.mxu0 %v7837_v44 }
 0x294   : > { %4668 = vmatpush1.bf16.msra.mxu1 %v7954_v15  ;;  %v7971_v15 = vld [vmem:[#allocation74_spill] sm:$0xff] }
 0x295   : > { %4738 = vmatpush1.bf16.msra.mxu0 %v7955_v22  ;;  %4670 = vmatprep.subr.bf16.mxu1 %v7956_v49  ;;  %v1819_v22 = vrot.slane %v1789_v61, 1  ;;  %v1822_v49 = vsel %vm1135_vm2, %v1813_v18, %v1821_v55  ;;  %v7975_v18 = vld [vmem:[#allocation79_spill] sm:$0xff]  ;;  %v7993_v55 = vld [vmem:[#allocation97_spill] sm:$0xff]  ;;  %v7994_v61 = vld [vmem:[#allocation98_spill] sm:$0xff] }
 0x296   : > { %4739 = vmatprep.subr.bf16.mxu0 %v7837_v44 }
 0x298   : > { %4672 = vmatpush1.bf16.msra.mxu1 %v7957_v2  ;;  %v3873_v11 = vpop.f32.mrb[8].mxu1  ;;  %v7972_v2 = vld [vmem:[#allocation76_spill] sm:$0xff] }
 0x299   : > { %4741 = vmatpush1.bf16.msra.mxu0 %v7958_v8  ;;  %4674 = vmatprep.subr.bf16.mxu1 %v7959_v4  ;;  %v3874_v52 = vpop.f32.mrb[9].mxu1  ;;  %v7974_v8 = vld [vmem:[#allocation78_spill] sm:$0xff] }
 0x29a   : > { %4742 = vmatprep.subr.bf16.mxu0 %v7837_v44  ;;  %v6987_v6 = vadd.f32 %v3874_v52, %v3873_v11  ;;  %v7973_v11 = vld [vmem:[#allocation77_spill] sm:$0xff]  ;;  %v945_v4 = vld [vmem:[#allocation2 + $0x68] sm:$0xff]  ;;  %v7976_v52 = vld [vmem:[#allocation80_spill] sm:$0xff] }
 0x29c   : > { %4676 = vmatpush1.bf16.msra.mxu1 %v7960_v59  ;;  %v3876_v24 = vpop.f32.mrb[10].mxu1  ;;  %v7977_v59 = vld [vmem:[#allocation81_spill] sm:$0xff] }
 0x29d   : > { %4744 = vmatpush1.bf16.msra.mxu0 %v7961_v58  ;;  %4678 = vmatprep.subr.bf16.mxu1 %v7962_v7  ;;  %v3877_v9 = vpop.f32.mrb[11].mxu1  ;;  %v7980_v58 = vld [vmem:[#allocation84_spill] sm:$0xff]  ;;  %v7981_v7 = vld [vmem:[#allocation85_spill] sm:$0xff] }
 0x29e   : > { %4745 = vmatprep.subr.bf16.mxu0 %v7837_v44  ;;  %v6993_v17 = vadd.f32 %v3877_v9, %v3876_v24  ;;  %v7979_v24 = vld [vmem:[#allocation83_spill] sm:$0xff]  ;;  %v7982_v9 = vld [vmem:[#allocation86_spill] sm:$0xff] }
 0x2a0   : > { %4680 = vmatpush1.bf16.msra.mxu1 %v7963_v26  ;;  %v7983_v26 = vld [vmem:[#allocation87_spill] sm:$0xff] }
 0x2a1   : > { %4747 = vmatpush1.bf16.msra.mxu0 %v7964_v31  ;;  %4682 = vmatprep.subr.bf16.mxu1 %v7965_v32  ;;  %v7984_v31 = vld [vmem:[#allocation88_spill] sm:$0xff]  ;;  %v7985_v32 = vld [vmem:[#allocation89_spill] sm:$0xff] }
 0x2a2   : > { %4748 = vmatprep.subr.bf16.mxu0 %v7837_v44 }
 0x2a4   : > { %4684 = vmatpush1.bf16.msra.mxu1 %v7966_v57  ;;  %v7987_v57 = vld [vmem:[#allocation91_spill] sm:$0xff] }
 0x2a5   : > { %4750 = vmatpush1.bf16.msra.mxu0 %v7967_v40  ;;  %4686 = vmatprep.subr.bf16.mxu1 %v7968_v45  ;;  %v7989_v40 = vld [vmem:[#allocation93_spill] sm:$0xff]  ;;  %v7990_v45 = vld [vmem:[#allocation94_spill] sm:$0xff] }
 0x2a6   : > { %4751 = vmatprep.subr.bf16.mxu0 %v7837_v44 }
 0x2a8   : > { %4688 = vmatpush1.bf16.msra.mxu1 %v7969_v62 }
 0x2a9   : > { %4753 = vmatpush1.bf16.msra.mxu0 %v7970_v3  ;;  %4755 = vmatprep.subr.bf16.mxu1 %v6577_v30  ;;  %v1820_v30 = vsel %vm1135_vm2, %v1810_v50, %v1819_v22  ;;  %v7992_v50 = vld [vmem:[#allocation96_spill] sm:$0xff]  ;;  %v7995_v3 = vld [vmem:[#allocation99_spill] sm:$0xff] }
 0x2aa   : > { %4863 = vmatprep.subr.bf16.mxu0 %v7971_v15  ;;  %v7996_v22 = vld [vmem:[#allocation100_spill] sm:$0xff] }
 0x2ab   : > { %1975 = vmatmul.mubr.f32.vlgmr.msra.gmra.mrb[24].mxu1 %v1811_v10 }
 0x2ac   : > { %2127 = vmatmul.mubr.f32.vlgmr.msra.gmra.mrb[16].mxu0 %v1811_v10  ;;  %3815 = vmatprep.mubr.msk.f32.mxu1 %vm717_vm5, %v1822_v49 }
 0x2ad   : > { %3817 = vmatprep.mubr.msk.f32.mxu0 %vm717_vm5, %v1822_v49  ;;  %4757 = vmatpush1.bf16.msra.mxu1 %v6594_v21  ;;  %v7978_v21 = vld [vmem:[#allocation82_spill] sm:$0xff]  ;;  %v7997_v49 = vld [vmem:[#allocation101_spill] sm:$0xff] }
 0x2ae   : > { %4865 = vmatpush3.bf16.msra.mxu0 %v7972_v2  ;;  %4759 = vmatprep.subr.bf16.mxu1 %v7973_v11  ;;  %v7998_v2 = vld [vmem:[#allocation102_spill] sm:$0xff]  ;;  %v7999_v11 = vld [vmem:[#allocation103_spill] sm:$0xff] }
 0x2af   : > { %1981 = vmatmul.mubr.f32.gmra.mrb[26].mxu1 %v1820_v30  ;;  %4867 = vmatprep.subr.bf16.mxu0 %v7974_v8 }
 0x2b0   : > { %2132 = vmatmul.mubr.f32.gmra.mrb[18].mxu0 %v1820_v30  ;;  %2207 = vmatprep.mubr.f32.mxu1 %v945_v4 }
 0x2b1   : > { %4761 = vmatpush1.bf16.msra.mxu1 %v7975_v18  ;;  %2361 = vmatprep.mubr.f32.mxu0 %v945_v4  ;;  %v8000_v18 = vld [vmem:[#allocation104_spill] sm:$0xff] }
 0x2b2   : > { %4869 = vmatpush3.bf16.msra.mxu0 %v7976_v52  ;;  %4763 = vmatprep.subr.bf16.mxu1 %v7977_v59  ;;  %v7050_v52 = vld [vmem:[#allocation2 + $0x88] sm:$0xff]  ;;  %v8004_v59 = vld [vmem:[#allocation108_spill] sm:$0xff] }
 0x2b3   : > { %4871 = vmatprep.subr.bf16.mxu0 %v7978_v21  ;;  %v8005_v21 = vld [vmem:[#allocation109_spill] sm:$0xff] }
 0x2b5   : > { %4765 = vmatpush1.bf16.msra.mxu1 %v7979_v24  ;;  %v8007_v24 = vld [vmem:[#allocation111_spill] sm:$0xff] }
 0x2b6   : > { %4873 = vmatpush3.bf16.msra.mxu0 %v7980_v58  ;;  %4767 = vmatprep.subr.bf16.mxu1 %v7981_v7  ;;  %v8009_v58 = vld [vmem:[#allocation113_spill] sm:$0xff]  ;;  %v8010_v7 = vld [vmem:[#allocation114_spill] sm:$0xff] }
 0x2b7   : > { %4875 = vmatprep.subr.bf16.mxu0 %v7982_v9  ;;  %v8011_v9 = vld [vmem:[#allocation115_spill] sm:$0xff] }
 0x2b9   : > { %4769 = vmatpush1.bf16.msra.mxu1 %v7983_v26  ;;  %v8012_v26 = vld [vmem:[#allocation116_spill] sm:$0xff] }
 0x2ba   : > { %4877 = vmatpush3.bf16.msra.mxu0 %v7984_v31  ;;  %4771 = vmatprep.subr.bf16.mxu1 %v7985_v32  ;;  %v8013_v31 = vld [vmem:[#allocation117_spill] sm:$0xff]  ;;  %v8014_v32 = vld [vmem:[#allocation118_spill] sm:$0xff] }
 0x2bb   : > { %4879 = vmatprep.subr.bf16.mxu0 %v7986_v1 }
 0x2bd   : > { %4773 = vmatpush1.bf16.msra.mxu1 %v7987_v57  ;;  %v8015_v57 = vld [vmem:[#allocation119_spill] sm:$0xff] }
 0x2be   : > { %4881 = vmatpush3.bf16.msra.mxu0 %v7988_v39  ;;  %4775 = vmatprep.subr.bf16.mxu1 %v7989_v40  ;;  %v8016_v40 = vld [vmem:[#allocation120_spill] sm:$0xff] }
 0x2bf   : > { %4883 = vmatprep.subr.bf16.mxu0 %v7990_v45 }
 0x2c1   : > { %4777 = vmatpush1.bf16.msra.mxu1 %v7991_v46  ;;  %v8017_v46 = vld [vmem:[#allocation121_spill] sm:$0xff] }
 0x2c2   : > { %4885 = vmatpush3.bf16.msra.mxu0 %v7992_v50  ;;  %4779 = vmatprep.subr.bf16.mxu1 %v7993_v55 }
 0x2c3   : > { %4887 = vmatprep.subr.bf16.mxu0 %v7994_v61  ;;  %v8018_v61 = vld [vmem:[#allocation122_spill] sm:$0xff] }
 0x2c4   : > { %v1461_v62 = vpop.f32.mrb[12].mxu1 }
 0x2c5   : > { %4781 = vmatpush1.bf16.msra.mxu1 %v7995_v3  ;;  %v1462_v10 = vadd.f32 %v6987_v6, %v1461_v62  ;;  %v1463_v15 = vpop.f32.mrb[13].mxu1  ;;  %v944_v6 = vld [vmem:[#allocation2 + $0x60] sm:$0xff]  ;;  %v8019_v3 = vld [vmem:[#allocation123_spill] sm:$0xff] }
 0x2c6   : > { %4889 = vmatpush3.bf16.msra.mxu0 %v7996_v22  ;;  %4783 = vmatprep.subr.bf16.mxu1 %v7997_v49  ;;  %v2452_v49 = vld [vmem:[#allocation9 + $0xa40] sm:$0xff] }
 0x2c7   : > { %4891 = vmatprep.subr.bf16.mxu0 %v7998_v2  ;;  %v8020_v2 = vld [vmem:[#allocation125_spill] sm:$0xff] }
 0x2c8   : > { %v1466_v30 = vpop.f32.mrb[14].mxu1 }
 0x2c9   : > { %4785 = vmatpush1.bf16.msra.mxu1 %v7999_v11  ;;  %v1467_v8 = vadd.f32 %v6993_v17, %v1466_v30  ;;  %v1468_v4 = vpop.f32.mrb[15].mxu1  ;;  %v7056_v17 = vld [vmem:[#allocation2 + $0x80] sm:$0xff] }
 0x2ca   : > { %4893 = vmatpush3.bf16.msra.mxu0 %v8000_v18  ;;  %4787 = vmatprep.subr.bf16.mxu1 %v6689_v33  ;;  %v947_v33 = vld [vmem:[#allocation2 + $0x78] sm:$0xff]  ;;  %v8021_v30 = vld [vmem:[#allocation126_spill] sm:$0xff]  ;;  %v8022_v4 = vld [vmem:[#allocation127_spill] sm:$0xff] }
 0x2cb   : > { %4894 = vmatprep.subr.bf16.mxu0 %v7837_v44  ;;  %v2455_v11 = vld [vmem:[#allocation9 + $0xa58] sm:$0xff] }
 0x2cd   : > { %2362 = vmatmul.mubr.f32.vlgmr.msra.gmra.mrb[20].mxu0 %v944_v6  ;;  %4789 = vmatpush1.bf16.msra.mxu1 %v6696_v13  ;;  %v8001_v13 = vld [vmem:[#allocation105_spill] sm:$0xff] }
 0x2ce   : > { %2366 = vmatprep.mubr.f32.mxu0 %v7050_v52  ;;  %4896 = vmatpush1.bf16.msra.mxu0 %v6701_v34  ;;  %v8002_v34 = vld [vmem:[#allocation106_spill] sm:$0xff] }
 0x2cf   : > { %4791 = vmatprep.subr.bf16.mxu1 %v6703_v36  ;;  %4897 = vmatprep.subr.bf16.mxu0 %v7837_v44  ;;  %v8003_v36 = vld [vmem:[#allocation107_spill] sm:$0xff] }
 0x2d1   : > { %2367 = vmatmul.mubr.f32.gmra.mrb[22].mxu0 %v7056_v17  ;;  %4793 = vmatpush1.bf16.msra.mxu1 %v6710_v23  ;;  %v8006_v23 = vld [vmem:[#allocation110_spill] sm:$0xff] }
 0x2d2   : > { %4899 = vmatpush1.bf16.msra.mxu0 %v6714_v5  ;;  %3820 = vmatprep.mubr.msk.f32.mxu0 %vm717_vm5, %v947_v33  ;;  %v8008_v5 = vld [vmem:[#allocation112_spill] sm:$0xff] }
 0x2d3   : > { %4795 = vmatprep.subr.bf16.mxu1 %v8001_v13  ;;  %4900 = vmatprep.subr.bf16.mxu0 %v7837_v44  ;;  %v2457_v13 = vld [vmem:[#allocation9 + $0xa68] sm:$0xff] }
 0x2d5   : > { %4797 = vmatpush1.bf16.msra.mxu1 %v8002_v34  ;;  %v7113_v34 = vld [vmem:[#allocation2 + $0x70] sm:$0xff] }
 0x2d6   : > { %4902 = vmatpush1.bf16.msra.mxu0 %v8003_v36  ;;  %4799 = vmatprep.subr.bf16.mxu1 %v8004_v59  ;;  %v2461_v36 = vld [vmem:[#allocation9 + $0xa88] sm:$0xff]  ;;  %v2464_v59 = vld [vmem:[#allocation9 + $0xaa0] sm:$0xff] }
 0x2d7   : > { %4903 = vmatprep.subr.bf16.mxu0 %v7837_v44 }
 0x2d9   : > { %4801 = vmatpush1.bf16.msra.mxu1 %v8005_v21  ;;  %v8023_v21 = vld [vmem:[#allocation124_spill] sm:$0xff] }
 0x2da   : > { %4905 = vmatpush1.bf16.msra.mxu0 %v8006_v23  ;;  %4803 = vmatprep.subr.bf16.mxu1 %v8007_v24  ;;  %v7757_v23 = vrot.slane %v8023_v21, 2  ;;  %v7125_v24 = vpack.c.bf16 %v2464_v59, %v2461_v36 }
 0x2db   : > { %4906 = vmatprep.subr.bf16.mxu0 %v7837_v44 }
 0x2dd   : > { %4805 = vmatpush1.bf16.msra.mxu1 %v8008_v5  ;;  %v2460_v5 = vld [vmem:[#allocation9 + $0xa80] sm:$0xff] }
 0x2de   : > { %4908 = vmatpush1.bf16.msra.mxu0 %v8009_v58  ;;  %4807 = vmatprep.subr.bf16.mxu1 %v8010_v7  ;;  %v2463_v58 = vld [vmem:[#allocation9 + $0xa98] sm:$0xff]  ;;  %v2470_v7 = vld [vmem:[#allocation9 + $0xad0] sm:$0xff] }
 0x2df   : > { %4909 = vmatprep.subr.bf16.mxu0 %v7837_v44 }
 0x2e1   : > { %4809 = vmatpush1.bf16.msra.mxu1 %v8011_v9 }
 0x2e2   : > { %4911 = vmatpush1.bf16.msra.mxu0 %v8012_v26  ;;  %4811 = vmatprep.subr.bf16.mxu1 %v8013_v31  ;;  %v2469_v31 = vld [vmem:[#allocation9 + $0xac8] sm:$0xff] }
 0x2e3   : > { %4912 = vmatprep.subr.bf16.mxu0 %v7837_v44 }
 0x2e5   : > { %4813 = vmatpush1.bf16.msra.mxu1 %v8014_v32  ;;  %v3911_v1 = vpop.f32.mrb[16].mxu1  ;;  %v2476_v32 = vld [vmem:[#allocation9 + $0xb00] sm:$0xff] }
 0x2e6   : > { %4914 = vmatpush1.bf16.msra.mxu0 %v8015_v57  ;;  %v3912_v39 = vpop.f32.mrb[17].mxu1  ;;  %4815 = vmatprep.subr.bf16.mxu1 %v8016_v40  ;;  %v2479_v40 = vld [vmem:[#allocation9 + $0xb18] sm:$0xff] }
 0x2e7   : > { %v3913_v45 = vadd.f32 %v3912_v39, %v3911_v1  ;;  %4915 = vmatprep.subr.bf16.mxu0 %v7837_v44  ;;  %v2475_v39 = vld [vmem:[#allocation9 + $0xaf8] sm:$0xff] }
 0x2e9   : > { %4817 = vmatpush1.bf16.msra.mxu1 %v8017_v46  ;;  %v3914_v50 = vpop.f32.mrb[18].mxu1  ;;  %v7085_v55 = vadd.f32 %v3913_v45, %v1462_v10  ;;  %v2449_v10 = vld [vmem:[#allocation9 + $0xa28] sm:$0xff]  ;;  %v2482_v45 = vld [vmem:[#allocation9 + $0xb30] sm:$0xff] }
 0x2ea   : > { %4917 = vmatpush1.bf16.msra.mxu0 %v8018_v61  ;;  %v3915_v62 = vpop.f32.mrb[19].mxu1  ;;  %4819 = vmatprep.subr.bf16.mxu1 %v8019_v3  ;;  %v2478_v46 = vld [vmem:[#allocation9 + $0xb10] sm:$0xff]  ;;  %v2485_v61 = vld [vmem:[#allocation9 + $0xb48] sm:$0xff]  ;;  %v2484_v3 = vld [vmem:[#allocation9 + $0xb40] sm:$0xff] }
 0x2eb   : > { %v3916_v15 = vadd.f32 %v3915_v62, %v3914_v50  ;;  %4918 = vmatprep.subr.bf16.mxu0 %v7837_v44  ;;  %v2481_v50 = vld [vmem:[#allocation9 + $0xb28] sm:$0xff]  ;;  %v2488_v62 = vld [vmem:[#allocation9 + $0xb60] sm:$0xff] }
 0x2ec   : > { %2208 = vmatmul.mubr.f32.vlgmr.msra.gmra.mrb[24].mxu1 %v944_v6  ;;  %v2611_v6 = vld [vmem:[#allocation2 + $0x8] sm:$0xfc] }
 0x2ed   : > { %2213 = vmatprep.mubr.f32.mxu1 %v7050_v52  ;;  %4821 = vmatpush1.bf16.msra.mxu1 %v6793_v42  ;;  %v7092_v22 = vadd.f32 %v3916_v15, %v1467_v8  ;;  %v7103_v42 = vpack.c.bf16 %v2452_v49, %v2449_v10  ;;  %v2458_v8 = vld [vmem:[#allocation9 + $0xa70] sm:$0xff]  ;;  %v2487_v15 = vld [vmem:[#allocation9 + $0xb58] sm:$0xff] }
 0x2ee   : > { %4920 = vmatpush1.bf16.msra.mxu0 %v6797_v54  ;;  %4823 = vmatprep.subr.bf16.mxu1 %v6799_v27  ;;  %v2448_v54 = vld [vmem:[#allocation9 + $0xa20] sm:$0xff]  ;;  %v2451_v27 = vld [vmem:[#allocation9 + $0xa38] sm:$0xff]  ;;  %v2494_v49 = vld [vmem:[#allocation9 + $0xb90] sm:$0xff] }
 0x2ef   : > { %4921 = vmatprep.subr.bf16.mxu0 %v7837_v44  ;;  %v7108_v18 = vpack.c.bf16 %v2451_v27, %v2448_v54  ;;  %v2491_v10 = vld [vmem:[#allocation9 + $0xb78] sm:$0xff]  ;;  %v2498_v54 = vld [vmem:[#allocation9 + $0xbb0] sm:$0xff]  ;;  %v2501_v27 = vld [vmem:[#allocation9 + $0xbc8] sm:$0xff] }
 0x2f0   : > { %2214 = vmatmul.mubr.f32.gmra.mrb[26].mxu1 %v7056_v17 }
 0x2f1   : > { %4825 = vmatpush1.bf16.msra.mxu1 %v8020_v2  ;;  %3818 = vmatprep.mubr.msk.f32.mxu1 %vm717_vm5, %v947_v33  ;;  %v2454_v33 = vld [vmem:[#allocation9 + $0xa50] sm:$0xff] }
 0x2f2   : > { %4923 = vmatpush1.bf16.msra.mxu0 %v6811_v56  ;;  %4827 = vmatprep.subr.bf16.mxu1 %v8021_v30  ;;  %v7111_v56 = vpack.c.bf16 %v2458_v8, %v2455_v11  ;;  %v2490_v2 = vld [vmem:[#allocation9 + $0xb70] sm:$0xff]  ;;  %v2493_v30 = vld [vmem:[#allocation9 + $0xb88] sm:$0xff]  ;;  %v2500_v8 = vld [vmem:[#allocation9 + $0xbc0] sm:$0xff] }
 0x2f3   : > { %4924 = vmatprep.subr.bf16.mxu0 %v7837_v44  ;;  %v2497_v11 = vld [vmem:[#allocation9 + $0xba8] sm:$0xff] }
 0x2f5   : > { %4829 = vmatpush1.bf16.msra.mxu1 %v8022_v4  ;;  %v7179_v4 = vpack.c.bf16 %v2501_v27, %v2498_v54  ;;  %v2519_v54 = vld [vmem:[#allocation9 + $0xc58] sm:$0xff]  ;;  %v7217_v27 = vld [vmem:[#allocation2 + $0x90] sm:$0xff] }
 0x2f6   : > { %4926 = vmatpush1.bf16.msra.mxu0 %v6823_v41  ;;  %4831 = vmatprep.subr.bf16.mxu1 %v6825_v14  ;;  %v2630_v41 = vrot.slane %v2611_v6, 2  ;;  %v7120_v14 = vpack.c.bf16 %v2457_v13, %v2454_v33  ;;  %v2496_v6 = vld [vmem:[#allocation9 + $0xba0] sm:$0xff]  ;;  %v2450_v33 = vld [vmem:[#allocation9 + $0xa30] sm:$0xff]  ;;  %v2453_v13 = vld [vmem:[#allocation9 + $0xa48] sm:$0xff]  ;;  %8028 = vst [vmem:[#allocation24_spill] sm:$0xff] %v7217_v27 }
 0x2f7   : > { %4928 = vmatprep.subr.bf16.mxu0 %v7103_v42 }
 0x2f8   : > { %v7132_v9 = vsel %vm2626_vm6, %v2630_v41, %v7757_v23  ;;  %v7185_v41 = vpack.c.bf16 %v2500_v8, %v2497_v11  ;;  %v2515_v11 = vld [vmem:[#allocation9 + $0xc38] sm:$0xff]  ;;  %v2518_v8 = vld [vmem:[#allocation9 + $0xc50] sm:$0xff] }
 0x2f9   : > { %2437 = vmatmul.mubr.f32.vlgmr.msra.gmra.mrb[24].mxu0 %v7113_v34  ;;  %4833 = vmatpush1.bf16.msra.mxu1 %v6829_v28  ;;  %v2467_v28 = vld [vmem:[#allocation9 + $0xab8] sm:$0xff] }
 0x2fa   : > { %3821 = vmatprep.mubr.msk.f32.mxu0 %vm717_vm5, %v6942_v53  ;;  %4930 = vmatpush1.bf16.msra.mxu0 %v7108_v18  ;;  %v7140_v26 = vpack.c.bf16 %v2470_v7, %v2467_v28  ;;  %v2503_v28 = vld [vmem:[#allocation9 + $0xbd8] sm:$0xff]  ;;  %v7188_v7 = vpack.c.bf16 %v2453_v13, %v2450_v33  ;;  %v2514_v13 = vld [vmem:[#allocation9 + $0xc30] sm:$0xff] }
 0x2fb   : > { %4835 = vmatprep.subr.bf16.mxu1 %v6834_v29  ;;  %4932 = vmatprep.subr.bf16.mxu0 %v7111_v56  ;;  %v7136_v29 = vpack.c.bf16 %v2463_v58, %v2460_v5  ;;  %v2504_v5 = vld [vmem:[#allocation9 + $0xbe0] sm:$0xff]  ;;  %v2507_v58 = vld [vmem:[#allocation9 + $0xbf8] sm:$0xff] }
 0x2fc   : > { %v2543_v23 = vld [vmem:[#allocation9 + $0xd18] sm:$0xff] }
 0x2fd   : > { %2442 = vmatmul.mubr.f32.gmra.mrb[26].mxu0 %v6719_v47  ;;  %4837 = vmatpush1.bf16.msra.mxu1 %v6841_v0  ;;  %v2466_v47 = vld [vmem:[#allocation9 + $0xab0] sm:$0xff]  ;;  %v2473_v0 = vld [vmem:[#allocation9 + $0xae8] sm:$0xff] }
 0x2fe   : > { %4934 = vmatpush1.bf16.msra.mxu0 %v7120_v14  ;;  %2721 = vmatprep.mubr.f32.mxu0 %v7132_v9  ;;  %v7145_v1 = vpack.c.bf16 %v2469_v31, %v2466_v47  ;;  %v7148_v57 = vpack.c.bf16 %v2476_v32, %v2473_v0  ;;  %v7194_v31 = vpack.c.bf16 %v2507_v58, %v2504_v5  ;;  %v2502_v0 = vld [vmem:[#allocation9 + $0xbd0] sm:$0xff]  ;;  %v2456_v32 = vld [vmem:[#allocation9 + $0xa60] sm:$0xff]  ;;  %v2517_v58 = vld [vmem:[#allocation9 + $0xc48] sm:$0xff] }
 0x2ff   : > { %4839 = vmatprep.subr.bf16.mxu1 %v6846_v25  ;;  %4936 = vmatprep.subr.bf16.mxu0 %v7125_v24  ;;  %v2472_v25 = vld [vmem:[#allocation9 + $0xae0] sm:$0xff]  ;;  %v7231_v5 = vpack.c.bf16 %v2518_v8, %v2515_v11  ;;  %v2526_v11 = vld [vmem:[#allocation9 + $0xc90] sm:$0xff] }
 0x300   : > { %v2480_v8 = vld [vmem:[#allocation9 + $0xb20] sm:$0xff] }
 0x301   : > { %4841 = vmatpush1.bf16.msra.mxu1 %v6857_v37  ;;  %v7153_v37 = vpack.c.bf16 %v2475_v39, %v2472_v25  ;;  %v2459_v25 = vld [vmem:[#allocation9 + $0xa78] sm:$0xff]  ;;  %8030 = vst [vmem:[#allocation26_spill] sm:$0xff] %v7231_v5 }
 0x302   : > { %4938 = vmatpush1.bf16.msra.mxu0 %v7136_v29  ;;  %4843 = vmatprep.subr.bf16.mxu1 %v6861_v16  ;;  %v7156_v16 = vpack.c.bf16 %v2482_v45, %v2479_v40  ;;  %v2505_v45 = vld [vmem:[#allocation9 + $0xbe8] sm:$0xff] }
 0x303   : > { %4940 = vmatprep.subr.bf16.mxu0 %v7140_v26 }
 0x305   : > { %4845 = vmatpush1.bf16.msra.mxu1 %v6866_v20  ;;  %v7161_v20 = vpack.c.bf16 %v2481_v50, %v2478_v46  ;;  %v2510_v46 = vld [vmem:[#allocation9 + $0xc10] sm:$0xff]  ;;  %v2513_v50 = vld [vmem:[#allocation9 + $0xc28] sm:$0xff] }
 0x306   : > { %4942 = vmatpush1.bf16.msra.mxu0 %v7145_v1  ;;  %4847 = vmatprep.subr.bf16.mxu1 %v6870_v48  ;;  %v7164_v48 = vpack.c.bf16 %v2488_v62, %v2485_v61  ;;  %v2509_v61 = vld [vmem:[#allocation9 + $0xc08] sm:$0xff]  ;;  %v2512_v62 = vld [vmem:[#allocation9 + $0xc20] sm:$0xff] }
 0x307   : > { %4944 = vmatprep.subr.bf16.mxu0 %v7148_v57 }
 0x309   : > { %4849 = vmatpush1.bf16.msra.mxu1 %v6874_v60  ;;  %v7169_v60 = vpack.c.bf16 %v2487_v15, %v2484_v3  ;;  %v7206_v3 = vpack.c.bf16 %v2459_v25, %v2456_v32  ;;  %v7212_v15 = vpack.c.bf16 %v2513_v50, %v2510_v46  ;;  %v7238_v32 = vpack.c.bf16 %v2517_v58, %v2514_v13  ;;  %v2477_v46 = vld [vmem:[#allocation9 + $0xb08] sm:$0xff]  ;;  %v2483_v13 = vld [vmem:[#allocation9 + $0xb38] sm:$0xff]  ;;  %v2534_v58 = vld [vmem:[#allocation9 + $0xcd0] sm:$0xff] }
 0x30a   : > { %4946 = vmatpush1.bf16.msra.mxu0 %v7153_v37  ;;  %4851 = vmatprep.subr.bf16.mxu1 %v6878_v43  ;;  %v7172_v43 = vpack.c.bf16 %v2494_v49, %v2491_v10  ;;  %v2508_v10 = vld [vmem:[#allocation9 + $0xc00] sm:$0xff]  ;;  %v2462_v49 = vld [vmem:[#allocation9 + $0xa90] sm:$0xff] }
 0x30b   : > { %4948 = vmatprep.subr.bf16.mxu0 %v7156_v16  ;;  %8031 = vst [vmem:[#allocation29_spill] sm:$0xff] %v7238_v32 }
 0x30d   : > { %4853 = vmatpush1.bf16.msra.mxu1 %v6882_v63 }
 0x30e   : > { %4950 = vmatpush1.bf16.msra.mxu0 %v7161_v20  ;;  %4855 = vmatprep.subr.bf16.mxu1 %v6886_v35  ;;  %v7177_v35 = vpack.c.bf16 %v2493_v30, %v2490_v2  ;;  %v7215_v2 = vpack.c.bf16 %v2512_v62, %v2509_v61  ;;  %v2516_v30 = vld [vmem:[#allocation9 + $0xc40] sm:$0xff]  ;;  %v2523_v61 = vld [vmem:[#allocation9 + $0xc78] sm:$0xff] }
 0x30f   : > { %4952 = vmatprep.subr.bf16.mxu0 %v7164_v48  ;;  %v7228_v33 = vpack.c.bf16 %v2519_v54, %v2516_v30  ;;  %v2528_v62 = vld [vmem:[#allocation9 + $0xca0] sm:$0xff] }
 0x310   : > { %8027 = vst [vmem:[#allocation25_spill] sm:$0xff] %v7215_v2 }
 0x311   : > { %4857 = vmatpush1.bf16.msra.mxu1 %v6890_v12  ;;  %v2499_v12 = vld [vmem:[#allocation9 + $0xbb8] sm:$0xff] }
 0x312   : > { %4954 = vmatpush1.bf16.msra.mxu0 %v7169_v60  ;;  %v1770_v63 = vpop.f32.mrb[20].mxu1  ;;  %4859 = vmatprep.subr.bf16.mxu1 %v6894_v51  ;;  %v2506_v51 = vld [vmem:[#allocation9 + $0xbf0] sm:$0xff] }
 0x313   : > { %v7182_v36 = vadd.f32 %v1770_v63, %v7085_v55  ;;  %v1772_v59 = vpop.f32.mrb[21].mxu1  ;;  %4956 = vmatprep.subr.bf16.mxu0 %v7172_v43  ;;  %v7192_v55 = vpack.c.bf16 %v2499_v12, %v2496_v6  ;;  %v2471_v12 = vld [vmem:[#allocation9 + $0xad8] sm:$0xff] }
 0x314   : > { %v2468_v59 = vld [vmem:[#allocation9 + $0xac0] sm:$0xff] }
 0x315   : > { %8024 = vst [vmem:[#allocation21_spill] sm:$0xff] %v7182_v36  ;;  %4861 = vmatpush1.bf16.msra.mxu1 %v6898_v38  ;;  %v7200_v38 = vpack.c.bf16 %v2506_v51, %v2503_v28  ;;  %v2522_v28 = vld [vmem:[#allocation9 + $0xc70] sm:$0xff]  ;;  %v2521_v51 = vld [vmem:[#allocation9 + $0xc68] sm:$0xff] }
 0x316   : > { %4958 = vmatpush1.bf16.msra.mxu0 %v7177_v35  ;;  %v1775_v47 = vpop.f32.mrb[22].mxu1  ;;  %5036 = vmatprep.subr.bf16.mxu1 %v7179_v4  ;;  %v2541_v36 = vld [vmem:[#allocation9 + $0xd08] sm:$0xff] }
 0x317   : > { %v7197_v39 = vadd.f32 %v1775_v47, %v7092_v22  ;;  %v1777_v40 = vpop.f32.mrb[23].mxu1  ;;  %4960 = vmatprep.subr.bf16.mxu0 %v7185_v41  ;;  %v7210_v22 = vpack.c.bf16 %v2505_v45, %v2502_v0  ;;  %v2524_v47 = vld [vmem:[#allocation9 + $0xc80] sm:$0xff]  ;;  %v7234_v0 = vpack.c.bf16 %v2471_v12, %v2468_v59  ;;  %v2474_v45 = vld [vmem:[#allocation9 + $0xaf0] sm:$0xff]  ;;  %v2529_v12 = vld [vmem:[#allocation9 + $0xca8] sm:$0xff] }
 0x318   : > { %2285 = vmatmul.mubr.f32.vlgmr.msra.gmra.mrb[24].mxu1 %v7113_v34  ;;  %v2465_v34 = vld [vmem:[#allocation9 + $0xaa8] sm:$0xff]  ;;  %v2520_v40 = vld [vmem:[#allocation9 + $0xc60] sm:$0xff]  ;;  %v7243_v50 = vpack.c.bf16 %v2524_v47, %v2521_v51  ;;  %v7258_v47 = vpack.c.bf16 %v2483_v13, %v2480_v8  ;;  %v2539_v8 = vld [vmem:[#allocation9 + $0xcf8] sm:$0xff] }
 0x319   : > { %8025 = vst [vmem:[#allocation23_spill] sm:$0xff] %v7197_v39  ;;  %3819 = vmatprep.mubr.msk.f32.mxu1 %vm717_vm5, %v6942_v53  ;;  %5038 = vmatpush3.bf16.msra.mxu1 %v7188_v7  ;;  %8026 = vst [vmem:[#allocation22_spill] sm:$0xff] %v7210_v22  ;;  %v2511_v53 = vld [vmem:[#allocation9 + $0xc18] sm:$0xff]  ;;  %v7222_v63 = vpack.c.bf16 %v2465_v34, %v2462_v49  ;;  %v2530_v34 = vld [vmem:[#allocation9 + $0xcb0] sm:$0xff]  ;;  %v7250_v30 = vpack.c.bf16 %v2523_v61, %v2520_v40 }
 0x31a   : > { %4962 = vmatpush1.bf16.msra.mxu0 %v7192_v55  ;;  %5040 = vmatprep.subr.bf16.mxu1 %v7194_v31  ;;  %v7226_v6 = vpack.c.bf16 %v2511_v53, %v2508_v10  ;;  %8032 = vst [vmem:[#allocation28_spill] sm:$0xff] %v7243_v50  ;;  %v2531_v10 = vld [vmem:[#allocation9 + $0xcb8] sm:$0xff]  ;;  %v7246_v53 = vpack.c.bf16 %v2477_v46, %v2474_v45  ;;  %v2536_v51 = vld [vmem:[#allocation9 + $0xce0] sm:$0xff]  ;;  %v2486_v61 = vld [vmem:[#allocation9 + $0xb50] sm:$0xff] }
 0x31b   : > { %4964 = vmatprep.subr.bf16.mxu0 %v7200_v38  ;;  %v2527_v49 = vld [vmem:[#allocation9 + $0xc98] sm:$0xff]  ;;  %8033 = vst [vmem:[#allocation31_spill] sm:$0xff] %v7250_v30  ;;  %v7252_v54 = vpack.c.bf16 %v2531_v10, %v2528_v62  ;;  %v7262_v40 = vpack.c.bf16 %v2529_v12, %v2526_v11  ;;  %v2532_v46 = vld [vmem:[#allocation9 + $0xcc0] sm:$0xff]  ;;  %v2489_v62 = vld [vmem:[#allocation9 + $0xb68] sm:$0xff] }
 0x31c   : > { %2291 = vmatmul.mubr.f32.gmra.mrb[26].mxu1 %v7217_v27  ;;  %8029 = vst [vmem:[#allocation27_spill] sm:$0xff] %v7226_v6  ;;  %v7255_v59 = vpack.c.bf16 %v2530_v34, %v2527_v49  ;;  %v2535_v49 = vld [vmem:[#allocation9 + $0xcd8] sm:$0xff]  ;;  %v2540_v34 = vld [vmem:[#allocation9 + $0xd00] sm:$0xff]  ;;  %v2542_v13 = vld [vmem:[#allocation9 + $0xd10] sm:$0xff]  ;;  %v7270_v39 = vpack.c.bf16 %v2489_v62, %v2486_v61 }
 0x31d   : > { %5042 = vmatpush3.bf16.msra.mxu1 %v7206_v3  ;;  %2875 = vmatprep.mubr.f32.mxu1 %v7132_v9  ;;  %v2525_v9 = vld [vmem:[#allocation9 + $0xc88] sm:$0xff]  ;;  %8035 = vst [vmem:[#allocation33_spill] sm:$0xff] %v7262_v40  ;;  %v7274_v11 = vpack.c.bf16 %v2535_v49, %v2532_v46  ;;  %v7276_v12 = vpack.c.bf16 %v2543_v23, %v2540_v34  ;;  %v2610_v27 = vld [vmem:[#allocation2] sm:$0xfc]  ;;  %v2614_v46 = vld [vmem:[#allocation2 + $0x40] sm:$0x3] }
 0x31e   : > { %4966 = vmatpush1.bf16.msra.mxu0 %v7210_v22  ;;  %5044 = vmatprep.subr.bf16.mxu1 %v7212_v15  ;;  %v7240_v25 = vpack.c.bf16 %v2525_v9, %v2522_v28  ;;  %8034 = vst [vmem:[#allocation30_spill] sm:$0xff] %v7255_v59  ;;  %v2537_v28 = vld [vmem:[#allocation9 + $0xce8] sm:$0xff]  ;;  %v2548_v61 = vld [vmem:[#allocation9 + $0xd40] sm:$0xff]  ;;  %v2627_v49 = vrot.slane %v2610_v27, 2 }
 0x31f   : > { %4968 = vmatprep.subr.bf16.mxu0 %v7215_v2  ;;  %v2533_v9 = vld [vmem:[#allocation9 + $0xcc8] sm:$0xff]  ;;  %v7264_v45 = vpack.c.bf16 %v2537_v28, %v2534_v58  ;;  %8037 = vst [vmem:[#allocation35_spill] sm:$0xff] %v7274_v11  ;;  %v2492_v58 = vld [vmem:[#allocation9 + $0xb80] sm:$0xff]  ;;  %v2495_v28 = vld [vmem:[#allocation9 + $0xb98] sm:$0xff] }
 0x320   : > { %v7267_v10 = vpack.c.bf16 %v2536_v51, %v2533_v9  ;;  %v7279_v9 = vpack.c.bf16 %v2542_v13, %v2539_v8  ;;  %v2538_v51 = vld [vmem:[#allocation9 + $0xcf0] sm:$0xff]  ;;  %v7282_v62 = vpack.c.bf16 %v2495_v28, %v2492_v58  ;;  %v2544_v8 = vld [vmem:[#allocation9 + $0xd20] sm:$0xff]  ;;  %v2547_v13 = vld [vmem:[#allocation9 + $0xd38] sm:$0xff] }
 0x321   : > { %5046 = vmatpush3.bf16.msra.mxu1 %v7222_v63  ;;  %v7286_v23 = vpack.c.bf16 %v2541_v36, %v2538_v51  ;;  %v2551_v58 = vld [vmem:[#allocation9 + $0xd58] sm:$0xff]  ;;  %v2554_v28 = vld [vmem:[#allocation9 + $0xd70] sm:$0xff]  ;;  %v7294_v36 = vpack.c.bf16 %v2547_v13, %v2544_v8  ;;  %v7772_v8 = vrot.slane %v6908_v19, 2  ;;  %v2560_v22 = vld [vmem:[#allocation9 + $0xda0] sm:$0xff] }
 0x322   : > { %4970 = vmatpush1.bf16.msra.mxu0 %v7226_v6  ;;  %5048 = vmatprep.subr.bf16.mxu1 %v7228_v33  ;;  %8036 = vst [vmem:[#allocation32_spill] sm:$0xff] %v7267_v10  ;;  %8038 = vst [vmem:[#allocation34_spill] sm:$0xff] %v7279_v9  ;;  %v7300_v51 = vpack.c.bf16 %v2554_v28, %v2551_v58  ;;  %v2552_v6 = vld [vmem:[#allocation9 + $0xd60] sm:$0xff]  ;;  %v2555_v13 = vld [vmem:[#allocation9 + $0xd78] sm:$0xff] }
 0x323   : > { %4972 = vmatprep.subr.bf16.mxu0 %v7231_v5  ;;  %8039 = vst [vmem:[#allocation75_spill] sm:$0xff] %v7286_v23  ;;  %v2613_v5 = vld [vmem:[#allocation2 + $0x18] sm:$0xfc]  ;;  %8041 = vst [vmem:[#allocation36_spill] sm:$0xff] %v7294_v36 }
 0x324   : > { %8042 = vst [vmem:[#allocation38_spill] sm:$0xff] %v7300_v51  ;;  %v2636_v2 = vrot.slane %v2613_v5, 2  ;;  %v2558_v58 = vld [vmem:[#allocation9 + $0xd90] sm:$0xff]  ;;  %v2563_v28 = vld [vmem:[#allocation9 + $0xdb8] sm:$0xff] }
 0x325   : > { %5050 = vmatpush3.bf16.msra.mxu1 %v7234_v0 }
 0x326   : > { %4974 = vmatpush1.bf16.msra.mxu0 %v7238_v32  ;;  %5052 = vmatprep.subr.bf16.mxu1 %v7240_v25 }
 0x327   : > { %4976 = vmatprep.subr.bf16.mxu0 %v7243_v50  ;;  %v2549_v50 = vld [vmem:[#allocation9 + $0xd48] sm:$0xff] }
 0x329   : > { %5054 = vmatpush3.bf16.msra.mxu1 %v7246_v53 }
 0x32a   : > { %4978 = vmatpush1.bf16.msra.mxu0 %v7250_v30  ;;  %5056 = vmatprep.subr.bf16.mxu1 %v7252_v54 }
 0x32b   : > { %4980 = vmatprep.subr.bf16.mxu0 %v7255_v59  ;;  %v2545_v59 = vld [vmem:[#allocation9 + $0xd28] sm:$0xff] }
 0x32c   : > { %v7289_v34 = vpack.c.bf16 %v2548_v61, %v2545_v59  ;;  %v2550_v61 = vld [vmem:[#allocation9 + $0xd50] sm:$0xff] }
 0x32d   : > { %5058 = vmatpush3.bf16.msra.mxu1 %v7258_v47 }
 0x32e   : > { %4982 = vmatpush1.bf16.msra.mxu0 %v7262_v40  ;;  %5060 = vmatprep.subr.bf16.mxu1 %v7264_v45  ;;  %v2615_v40 = vld [vmem:[#allocation2 + $0x48] sm:$0x3]  ;;  %8040 = vst [vmem:[#allocation37_spill] sm:$0xff] %v7289_v34 }
 0x32f   : > { %4984 = vmatprep.subr.bf16.mxu0 %v7267_v10  ;;  %v2546_v10 = vld [vmem:[#allocation9 + $0xd30] sm:$0xff]  ;;  %v2641_v30 = vrot.slane %v2615_v40, 2  ;;  %v2639_v40 = vrot.slane %v2614_v46, 2  ;;  %v2559_v46 = vld [vmem:[#allocation9 + $0xd98] sm:$0xff] }
 0x330   : > { %v7298_v59 = vpack.c.bf16 %v2549_v50, %v2546_v10 }
 0x331   : > { %5062 = vmatpush3.bf16.msra.mxu1 %v7270_v39 }
 0x332   : > { %4986 = vmatpush1.bf16.msra.mxu0 %v7274_v11  ;;  %5064 = vmatprep.subr.bf16.mxu1 %v7276_v12  ;;  %v5489_v11 = vld [vmem:[#allocation2 + $0x20] sm:$0xff] }
 0x333   : > { %4988 = vmatprep.subr.bf16.mxu0 %v7279_v9  ;;  %v2628_v32 = vrot.slane %v5489_v11, 2  ;;  %v2553_v9 = vld [vmem:[#allocation9 + $0xd68] sm:$0xff]  ;;  %v8043_v11 = vrot.slane %v8023_v21, 2  ;;  %v7312_v21 = vpack.c.bf16 %v2555_v13, %v2552_v6 }
 0x334   : > { %v7307_v50 = vpack.c.bf16 %v2553_v9, %v2550_v61  ;;  %v2638_v9 = vsel %vm2626_vm6, %v2636_v2, %v7772_v8  ;;  %v2562_v2 = vld [vmem:[#allocation9 + $0xdb0] sm:$0xff]  ;;  %v2564_v61 = vld [vmem:[#allocation9 + $0xdc0] sm:$0xff]  ;;  %v2569_v13 = vld [vmem:[#allocation9 + $0xde8] sm:$0xff] }
 0x335   : > { %5066 = vmatpush3.bf16.msra.mxu1 %v7282_v62  ;;  %v2629_v27 = vsel %vm2626_vm6, %v2627_v49, %v2628_v32  ;;  %v2557_v49 = vld [vmem:[#allocation9 + $0xd88] sm:$0xff]  ;;  %v2640_v10 = vsel %vm2626_vm6, %v2628_v32, %v2639_v40  ;;  %v2578_v8 = vld [vmem:[#allocation9 + $0xe30] sm:$0xff] }
 0x336   : > { %4990 = vmatpush1.bf16.msra.mxu0 %v7286_v23  ;;  %5067 = vmatprep.subr.bf16.mxu1 %v7837_v44  ;;  %v2642_v23 = vsel %vm2626_vm6, %v8043_v11, %v2641_v30  ;;  %8044 = vst [vmem:[#allocation42_spill] sm:$0xff] %v7307_v50  ;;  %v7314_v5 = vpack.c.bf16 %v2560_v22, %v2557_v49  ;;  %v2556_v30 = vld [vmem:[#allocation9 + $0xd80] sm:$0xff]  ;;  %v2565_v40 = vld [vmem:[#allocation9 + $0xdc8] sm:$0xff]  ;;  %v2567_v11 = vld [vmem:[#allocation9 + $0xdd8] sm:$0xff] }
 0x337   : > { %4992 = vmatprep.subr.bf16.mxu0 %v7289_v34  ;;  %v7323_v22 = vpack.c.bf16 %v2559_v46, %v2556_v30  ;;  %v2572_v49 = vld [vmem:[#allocation9 + $0xe00] sm:$0xff]  ;;  %v7337_v30 = vpack.c.bf16 %v2567_v11, %v2564_v61  ;;  %v2574_v11 = vld [vmem:[#allocation9 + $0xe10] sm:$0xff]  ;;  %v2597_v34 = vld [vmem:[#allocation9 + $0xec8] sm:$0xff] }
 0x338   : > { %2876 = vmatmul.mubr.f32.vlgmr.msra.gmra.mrb[28].mxu1 %v2629_v27  ;;  %8045 = vst [vmem:[#allocation43_spill] sm:$0xff] %v7314_v5  ;;  %v7339_v46 = vpack.c.bf16 %v2572_v49, %v2569_v13  ;;  %v2577_v13 = vld [vmem:[#allocation9 + $0xe28] sm:$0xff]  ;;  %v2576_v49 = vld [vmem:[#allocation9 + $0xe20] sm:$0xff] }
 0x339   : > { %2722 = vmatmul.mubr.f32.vlgmr.msra.gmra.mrb[8].mxu0 %v2629_v27  ;;  %2880 = vmatprep.mubr.f32.mxu1 %v2642_v23  ;;  %v2566_v27 = vld [vmem:[#allocation9 + $0xdd0] sm:$0xff]  ;;  %8046 = vst [vmem:[#allocation44_spill] sm:$0xff] %v7323_v22 }
 0x33a   : > { %2727 = vmatprep.mubr.f32.mxu0 %v2642_v23  ;;  %4994 = vmatpush1.bf16.msra.mxu0 %v7294_v36  ;;  %v2561_v23 = vld [vmem:[#allocation9 + $0xda8] sm:$0xff]  ;;  %v7329_v32 = vpack.c.bf16 %v2566_v27, %v2563_v28  ;;  %8049 = vst [vmem:[#allocation47_spill] sm:$0xff] %v7339_v46  ;;  %v2575_v27 = vld [vmem:[#allocation9 + $0xe18] sm:$0xff] }
 0x33b   : > { %5069 = vmatpush1.bf16.msra.mxu1 %v7298_v59  ;;  %4996 = vmatprep.subr.bf16.mxu0 %v7300_v51  ;;  %v7327_v6 = vpack.c.bf16 %v2561_v23, %v2558_v58  ;;  %v2568_v58 = vld [vmem:[#allocation9 + $0xde0] sm:$0xff]  ;;  %v2570_v23 = vld [vmem:[#allocation9 + $0xdf0] sm:$0xff]  ;;  %v2573_v28 = vld [vmem:[#allocation9 + $0xe08] sm:$0xff]  ;;  %v7349_v61 = vpack.c.bf16 %v2578_v8, %v2575_v27 }
 0x33c   : > { %2881 = vmatmul.mubr.f32.gmra.mrb[30].mxu1 %v2640_v10  ;;  %5070 = vmatprep.subr.bf16.mxu1 %v7837_v44  ;;  %8047 = vst [vmem:[#allocation45_spill] sm:$0xff] %v7329_v32  ;;  %v2582_v27 = vld [vmem:[#allocation9 + $0xe50] sm:$0xff]  ;;  %v2596_v51 = vld [vmem:[#allocation9 + $0xec0] sm:$0xff] }
 0x33d   : > { %2728 = vmatmul.mubr.f32.gmra.mrb[10].mxu0 %v2640_v10  ;;  %3824 = vmatprep.mubr.msk.f32.mxu1 %vm717_vm5, %v2638_v9  ;;  %v7333_v10 = vpack.c.bf16 %v2565_v40, %v2562_v2  ;;  %v7347_v40 = vpack.c.bf16 %v2573_v28, %v2570_v23  ;;  %8052 = vst [vmem:[#allocation50_spill] sm:$0xff] %v7349_v61  ;;  %v2580_v23 = vld [vmem:[#allocation9 + $0xe40] sm:$0xff]  ;;  %v2583_v28 = vld [vmem:[#allocation9 + $0xe58] sm:$0xff] }
 0x33e   : > { %4998 = vmatpush1.bf16.msra.mxu0 %v7307_v50  ;;  %3822 = vmatprep.mubr.msk.f32.mxu0 %vm717_vm5, %v2638_v9  ;;  %v2571_v9 = vld [vmem:[#allocation9 + $0xdf8] sm:$0xff]  ;;  %v2590_v50 = vld [vmem:[#allocation9 + $0xe90] sm:$0xff] }
 0x33f   : > { %5072 = vmatpush1.bf16.msra.mxu1 %v7312_v21  ;;  %5000 = vmatprep.subr.bf16.mxu0 %v7314_v5  ;;  %8048 = vst [vmem:[#allocation46_spill] sm:$0xff] %v7333_v10  ;;  %v7343_v2 = vpack.c.bf16 %v2571_v9, %v2568_v58  ;;  %8051 = vst [vmem:[#allocation49_spill] sm:$0xff] %v7347_v40  ;;  %v2584_v5 = vld [vmem:[#allocation9 + $0xe60] sm:$0xff]  ;;  %v7353_v58 = vpack.c.bf16 %v2577_v13, %v2574_v11  ;;  %v2589_v13 = vld [vmem:[#allocation9 + $0xe88] sm:$0xff] }
 0x340   : > { %5073 = vmatprep.subr.bf16.mxu1 %v7837_v44  ;;  %v7363_v11 = vpack.c.bf16 %v2583_v28, %v2580_v23 }
 0x341   : > { %8050 = vst [vmem:[#allocation48_spill] sm:$0xff] %v7343_v2  ;;  %8053 = vst [vmem:[#allocation51_spill] sm:$0xff] %v7353_v58 }
 0x342   : > { %5002 = vmatpush1.bf16.msra.mxu0 %v7323_v22  ;;  %v2581_v22 = vld [vmem:[#allocation9 + $0xe48] sm:$0xff]  ;;  %8056 = vst [vmem:[#allocation54_spill] sm:$0xff] %v7363_v11 }
 0x343   : > { %5075 = vmatpush1.bf16.msra.mxu1 %v7327_v6  ;;  %5004 = vmatprep.subr.bf16.mxu0 %v7329_v32  ;;  %v2579_v32 = vld [vmem:[#allocation9 + $0xe38] sm:$0xff]  ;;  %v7359_v8 = vpack.c.bf16 %v2584_v5, %v2581_v22  ;;  %v2586_v22 = vld [vmem:[#allocation9 + $0xe70] sm:$0xff] }
 0x344   : > { %5076 = vmatprep.subr.bf16.mxu1 %v7837_v44  ;;  %v7357_v9 = vpack.c.bf16 %v2579_v32, %v2576_v49  ;;  %v2588_v49 = vld [vmem:[#allocation9 + $0xe80] sm:$0xff]  ;;  %v7373_v28 = vpack.c.bf16 %v2589_v13, %v2586_v22 }
 0x345   : > { %8055 = vst [vmem:[#allocation53_spill] sm:$0xff] %v7359_v8 }
 0x346   : > { %5006 = vmatpush1.bf16.msra.mxu0 %v7333_v10  ;;  %8054 = vst [vmem:[#allocation52_spill] sm:$0xff] %v7357_v9  ;;  %v2587_v10 = vld [vmem:[#allocation9 + $0xe78] sm:$0xff]  ;;  %8059 = vst [vmem:[#allocation57_spill] sm:$0xff] %v7373_v28 }
 0x347   : > { %5078 = vmatpush1.bf16.msra.mxu1 %v7337_v30  ;;  %5008 = vmatprep.subr.bf16.mxu0 %v7339_v46  ;;  %v2585_v46 = vld [vmem:[#allocation9 + $0xe68] sm:$0xff]  ;;  %v7369_v5 = vpack.c.bf16 %v2590_v50, %v2587_v10 }
 0x348   : > { %5079 = vmatprep.subr.bf16.mxu1 %v7837_v44  ;;  %v7367_v32 = vpack.c.bf16 %v2585_v46, %v2582_v27  ;;  %v2592_v27 = vld [vmem:[#allocation9 + $0xea0] sm:$0xff] }
 0x349   : > { %8058 = vst [vmem:[#allocation56_spill] sm:$0xff] %v7369_v5 }
 0x34a   : > { %5010 = vmatpush1.bf16.msra.mxu0 %v7343_v2  ;;  %8057 = vst [vmem:[#allocation55_spill] sm:$0xff] %v7367_v32  ;;  %v2593_v2 = vld [vmem:[#allocation9 + $0xea8] sm:$0xff] }
 0x34b   : > { %5081 = vmatpush1.bf16.msra.mxu1 %v7347_v40  ;;  %5012 = vmatprep.subr.bf16.mxu0 %v7349_v61  ;;  %v2591_v61 = vld [vmem:[#allocation9 + $0xe98] sm:$0xff]  ;;  %v7381_v10 = vpack.c.bf16 %v2596_v51, %v2593_v2  ;;  %v2608_v40 = vld [vmem:[#allocation9 + $0xf20] sm:$0xff] }
 0x34c   : > { %5082 = vmatprep.subr.bf16.mxu1 %v7837_v44  ;;  %v7379_v50 = vpack.c.bf16 %v2591_v61, %v2588_v49  ;;  %v2598_v49 = vld [vmem:[#allocation9 + $0xed0] sm:$0xff] }
 0x34d   : > { %8060 = vst [vmem:[#allocation58_spill] sm:$0xff] %v7381_v10 }
 0x34e   : > { %5014 = vmatpush1.bf16.msra.mxu0 %v7353_v58  ;;  %v2594_v58 = vld [vmem:[#allocation9 + $0xeb0] sm:$0xff] }
 0x34f   : > { %5084 = vmatpush1.bf16.msra.mxu1 %v7357_v9  ;;  %5016 = vmatprep.subr.bf16.mxu0 %v7359_v8  ;;  %v2595_v8 = vld [vmem:[#allocation9 + $0xeb8] sm:$0xff]  ;;  %v2602_v9 = vld [vmem:[#allocation9 + $0xef0] sm:$0xff]  ;;  %v7391_v51 = vpack.c.bf16 %v2597_v34, %v2594_v58 }
 0x350   : > { %5085 = vmatprep.subr.bf16.mxu1 %v7837_v44 }
 0x351   : > { %v3949_v36 = vpop.f32.mrb[12].mxu0 }
 0x352   : > { %5018 = vmatpush1.bf16.msra.mxu0 %v7363_v11  ;;  %v3950_v23 = vpop.f32.mrb[13].mxu0  ;;  %v2599_v11 = vld [vmem:[#allocation9 + $0xed8] sm:$0xff] }
 0x353   : > { %5087 = vmatpush1.bf16.msra.mxu1 %v7367_v32  ;;  %v7376_v46 = vadd.f32 %v3950_v23, %v3949_v36  ;;  %5020 = vmatprep.subr.bf16.mxu0 %v7369_v5  ;;  %v7385_v36 = vpack.c.bf16 %v2595_v8, %v2592_v27  ;;  %v7393_v2 = vpack.c.bf16 %v2602_v9, %v2599_v11  ;;  %v2601_v23 = vld [vmem:[#allocation9 + $0xee8] sm:$0xff]  ;;  %v2600_v5 = vld [vmem:[#allocation9 + $0xee0] sm:$0xff]  ;;  %v2603_v32 = vld [vmem:[#allocation9 + $0xef8] sm:$0xff] }
 0x354   : > { %5088 = vmatprep.subr.bf16.mxu1 %v7837_v44  ;;  %v7397_v8 = vpack.c.bf16 %v2601_v23, %v2598_v49  ;;  %v7401_v34 = vpack.c.bf16 %v2603_v32, %v2600_v5  ;;  %v2604_v9 = vld [vmem:[#allocation9 + $0xf00] sm:$0xff]  ;;  %v2607_v11 = vld [vmem:[#allocation9 + $0xf18] sm:$0xff]  ;;  %v2606_v27 = vld [vmem:[#allocation9 + $0xf10] sm:$0xff] }
 0x355   : > { %v3952_v22 = vpop.f32.mrb[14].mxu0  ;;  %8061 = vst [vmem:[#allocation59_spill] sm:$0xff] %v7385_v36  ;;  %8062 = vst [vmem:[#allocation60_spill] sm:$0xff] %v7393_v2  ;;  %v2617_v49 = vld [vmem:[#allocation2 + $0x58] sm:$0x3]  ;;  %v5490_v5 = vld [vmem:[#allocation2 + $0x30] sm:$0xff] }
 0x356   : > { %5022 = vmatpush1.bf16.msra.mxu0 %v7373_v28  ;;  %v3953_v13 = vpop.f32.mrb[15].mxu0  ;;  %v2605_v28 = vld [vmem:[#allocation9 + $0xf08] sm:$0xff]  ;;  %v2645_v23 = vrot.slane %v2617_v49, 2  ;;  %v2987_v49 = vrot.slane %v7050_v52, 2 }
 0x357   : > { %5090 = vmatpush1.bf16.msra.mxu1 %v7379_v50  ;;  %v7388_v61 = vadd.f32 %v3953_v13, %v3952_v22  ;;  %5024 = vmatprep.subr.bf16.mxu0 %v7381_v10  ;;  %v7403_v58 = vpack.c.bf16 %v2608_v40, %v2605_v28  ;;  %v2609_v22 = vld [vmem:[#allocation9 + $0xf28] sm:$0xff]  ;;  %v2634_v28 = vrot.slane %v5490_v5, 2 }
 0x358   : > { %5091 = vmatprep.subr.bf16.mxu1 %v7837_v44  ;;  %v2612_v13 = vld [vmem:[#allocation2 + $0x10] sm:$0xfc]  ;;  %v7411_v32 = vpack.c.bf16 %v2609_v22, %v2606_v27  ;;  %v2968_v10 = vld [vmem:[#allocation2 + $0x68] sm:$0xfc]  ;;  %v8063_v27 = vrot.slane %v6908_v19, 2 }
 0x359   : > { %v2633_v40 = vrot.slane %v2612_v13, 2  ;;  %v2986_v13 = vrot.slane %v2968_v10, 2  ;;  %v8080_v10 = vld [vmem:[#allocation37_spill] sm:$0xff]  ;;  %v8081_v5 = vld [vmem:[#allocation36_spill] sm:$0xff] }
 0x35a   : > { %5026 = vmatpush1.bf16.msra.mxu0 %v7385_v36  ;;  %v7407_v36 = vpack.c.bf16 %v2607_v11, %v2604_v9  ;;  %v2646_v22 = vsel %vm2626_vm6, %v8063_v27, %v2645_v23  ;;  %v2969_v27 = vld [vmem:[#allocation2 + $0x70] sm:$0xfc] }
 0x35b   : > { %5093 = vmatpush1.bf16.msra.mxu1 %v7391_v51  ;;  %5028 = vmatprep.subr.bf16.mxu0 %v7393_v2  ;;  %v2616_v2 = vld [vmem:[#allocation2 + $0x50] sm:$0x3]  ;;  %v2635_v9 = vsel %vm2626_vm6, %v2633_v40, %v2634_v28  ;;  %v2988_v19 = vsel %vm2626_vm6, %v2986_v13, %v2987_v49  ;;  %v2974_v13 = vld [vmem:[#allocation2 + $0xb8] sm:$0x3] }
 0x35c   : > { %5094 = vmatprep.subr.bf16.mxu1 %v7837_v44  ;;  %v2643_v11 = vrot.slane %v2616_v2, 2 }
 0x35e   : > { %5030 = vmatpush1.bf16.msra.mxu0 %v7397_v8 }
 0x35f   : > { %5096 = vmatpush1.bf16.msra.mxu1 %v7401_v34  ;;  %5032 = vmatprep.subr.bf16.mxu0 %v7403_v58 }
 0x360   : > { %5097 = vmatprep.subr.bf16.mxu1 %v7837_v44 }
 0x362   : > { %5034 = vmatpush1.bf16.msra.mxu0 %v7407_v36 }
 0x363   : > { %5099 = vmatpush1.bf16.msra.mxu1 %v7411_v32  ;;  %5209 = vmatprep.subr.bf16.mxu0 %v7179_v4  ;;  %v7467_v4 = vld [vmem:[#allocation2 + $0x98] sm:$0xff] }
 0x364   : > { %5101 = vmatprep.subr.bf16.mxu1 %v7103_v42  ;;  %v2644_v42 = vsel %vm2626_vm6, %v2634_v28, %v2643_v11  ;;  %v8082_v28 = vld [vmem:[#allocation38_spill] sm:$0xff] }
 0x365   : > { %2799 = vmatmul.mubr.f32.vlgmr.msra.gmra.mrb[8].mxu0 %v2635_v9  ;;  %v8083_v11 = vld [vmem:[#allocation42_spill] sm:$0xff] }
 0x366   : > { %2951 = vmatmul.mubr.f32.vlgmr.msra.gmra.mrb[32].mxu1 %v2635_v9  ;;  %3823 = vmatprep.mubr.msk.f32.mxu0 %vm717_vm5, %v2646_v22  ;;  %v3434_v9 = vld [vmem:[#allocation12 + $0x88] sm:$0xff] }
 0x367   : > { %3825 = vmatprep.mubr.msk.f32.mxu1 %vm717_vm5, %v2646_v22  ;;  %5103 = vmatpush1.bf16.msra.mxu1 %v7108_v18  ;;  %v2967_v18 = vld [vmem:[#allocation2 + $0x60] sm:$0xfc]  ;;  %v8084_v22 = vld [vmem:[#allocation43_spill] sm:$0xff] }
 0x368   : > { %5211 = vmatpush3.bf16.msra.mxu0 %v7188_v7  ;;  %5105 = vmatprep.subr.bf16.mxu1 %v7111_v56  ;;  %v2993_v7 = vrot.slane %v7467_v4, 2  ;;  %v8090_v4 = vld [vmem:[#allocation48_spill] sm:$0xff] }
 0x369   : > { %2805 = vmatmul.mubr.f32.gmra.mrb[10].mxu0 %v2644_v42  ;;  %5213 = vmatprep.subr.bf16.mxu0 %v7194_v31  ;;  %v8064_v31 = vld [vmem:[#allocation22_spill] sm:$0xff] }
 0x36a   : > { %2956 = vmatmul.mubr.f32.gmra.mrb[34].mxu1 %v2644_v42  ;;  %3231 = vmatprep.mubr.f32.mxu0 %v2988_v19  ;;  %v8085_v42 = vld [vmem:[#allocation24_spill] sm:$0xff] }
 0x36b   : > { %5107 = vmatpush1.bf16.msra.mxu1 %v7120_v14  ;;  %3077 = vmatprep.mubr.f32.mxu1 %v2988_v19  ;;  %v2990_v19 = vrot.slane %v8085_v42, 2  ;;  %v3447_v42 = vld [vmem:[#allocation12 + $0xf0] sm:$0xff] }
 0x36c   : > { %5215 = vmatpush3.bf16.msra.mxu0 %v7206_v3  ;;  %5109 = vmatprep.subr.bf16.mxu1 %v7125_v24  ;;  %v2972_v24 = vld [vmem:[#allocation2 + $0xa8] sm:$0x3] }
 0x36d   : > { %5217 = vmatprep.subr.bf16.mxu0 %v7212_v15  ;;  %v8067_v3 = vld [vmem:[#allocation26_spill] sm:$0xff]  ;;  %v8068_v15 = vld [vmem:[#allocation29_spill] sm:$0xff] }
 0x36f   : > { %5111 = vmatpush1.bf16.msra.mxu1 %v7136_v29  ;;  %v2983_v29 = vrot.slane %v2967_v18, 2  ;;  %v3418_v18 = vld [vmem:[#allocation12 + $0x8] sm:$0xff] }
 0x370   : > { %5219 = vmatpush3.bf16.msra.mxu0 %v7222_v63  ;;  %5113 = vmatprep.subr.bf16.mxu1 %v7140_v26  ;;  %v2984_v26 = vrot.slane %v7056_v17, 2  ;;  %v8069_v63 = vld [vmem:[#allocation28_spill] sm:$0xff] }
 0x371   : > { %5221 = vmatprep.subr.bf16.mxu0 %v7228_v33  ;;  %v8070_v33 = vld [vmem:[#allocation31_spill] sm:$0xff] }
 0x373   : > { %5115 = vmatpush1.bf16.msra.mxu1 %v7145_v1 }
 0x374   : > { %5223 = vmatpush3.bf16.msra.mxu0 %v7234_v0  ;;  %5117 = vmatprep.subr.bf16.mxu1 %v7148_v57  ;;  %v2997_v57 = vrot.slane %v2972_v24, 2  ;;  %v8071_v0 = vld [vmem:[#allocation49_spill] sm:$0xff]  ;;  %v2973_v24 = vld [vmem:[#allocation2 + $0xb0] sm:$0x3] }
 0x375   : > { %5225 = vmatprep.subr.bf16.mxu0 %v7240_v25  ;;  %v8072_v25 = vld [vmem:[#allocation30_spill] sm:$0xff] }
 0x376   : > { %v2998_v17 = vsel %vm2626_vm6, %v2987_v49, %v2997_v57  ;;  %v2989_v49 = vrot.slane %v2969_v27, 2  ;;  %v2999_v57 = vrot.slane %v2973_v24, 2 }
 0x377   : > { %5119 = vmatpush1.bf16.msra.mxu1 %v7153_v37  ;;  %v2971_v37 = vld [vmem:[#allocation2 + $0xa0] sm:$0x3] }
 0x378   : > { %5227 = vmatpush3.bf16.msra.mxu0 %v7246_v53  ;;  %5121 = vmatprep.subr.bf16.mxu1 %v7156_v16  ;;  %v8073_v53 = vld [vmem:[#allocation33_spill] sm:$0xff] }
 0x379   : > { %5229 = vmatprep.subr.bf16.mxu0 %v7252_v54  ;;  %v8074_v54 = vld [vmem:[#allocation52_spill] sm:$0xff] }
 0x37b   : > { %5123 = vmatpush1.bf16.msra.mxu1 %v7161_v20 }
 0x37c   : > { %5231 = vmatpush3.bf16.msra.mxu0 %v7258_v47  ;;  %5125 = vmatprep.subr.bf16.mxu1 %v7164_v48  ;;  %v2970_v48 = vld [vmem:[#allocation2 + $0x78] sm:$0xfc]  ;;  %v8075_v47 = vld [vmem:[#allocation32_spill] sm:$0xff] }
 0x37d   : > { %5233 = vmatprep.subr.bf16.mxu0 %v7264_v45  ;;  %v8076_v45 = vld [vmem:[#allocation35_spill] sm:$0xff] }
 0x37f   : > { %5127 = vmatpush1.bf16.msra.mxu1 %v7169_v60  ;;  %v2128_v52 = vpop.f32.mrb[16].mxu0  ;;  %v2985_v60 = vsel %vm2626_vm6, %v2983_v29, %v2984_v26  ;;  %v3435_v29 = vld [vmem:[#allocation12 + $0x90] sm:$0xff] }
 0x380   : > { %5235 = vmatpush3.bf16.msra.mxu0 %v7270_v39  ;;  %v7454_v56 = vadd.f32 %v7376_v46, %v2128_v52  ;;  %v2130_v14 = vpop.f32.mrb[17].mxu0  ;;  %5129 = vmatprep.subr.bf16.mxu1 %v7172_v43  ;;  %v2995_v43 = vrot.slane %v2971_v37, 2  ;;  %v8065_v39 = vld [vmem:[#allocation25_spill] sm:$0xff] }
 0x381   : > { %5237 = vmatprep.subr.bf16.mxu0 %v7276_v12  ;;  %v8077_v12 = vld [vmem:[#allocation55_spill] sm:$0xff]  ;;  %v3417_v52 = vld [vmem:[#allocation12] sm:$0xff]  ;;  %v3001_v14 = vrot.slane %v2974_v13, 2 }
 0x382   : > { %v3429_v13 = vld [vmem:[#allocation12 + $0x60] sm:$0xff] }
 0x383   : > { %5131 = vmatpush1.bf16.msra.mxu1 %v7177_v35  ;;  %v2133_v1 = vpop.f32.mrb[18].mxu0  ;;  %v2992_v35 = vrot.slane %v2970_v48, 2  ;;  %v8088_v48 = vld [vmem:[#allocation46_spill] sm:$0xff] }
 0x384   : > { %5239 = vmatpush3.bf16.msra.mxu0 %v7282_v62  ;;  %v2134_v16 = vadd.f32 %v7388_v61, %v2133_v1  ;;  %v2135_v20 = vpop.f32.mrb[19].mxu0  ;;  %5133 = vmatprep.subr.bf16.mxu1 %v7185_v41  ;;  %v2996_v41 = vsel %vm2626_vm6, %v2984_v26, %v2995_v43  ;;  %v3436_v26 = vld [vmem:[#allocation12 + $0x98] sm:$0xff]  ;;  %v5275_v1 = vpack.c.bf16 %v3418_v18, %v3417_v52  ;;  %v3438_v43 = vld [vmem:[#allocation12 + $0xa8] sm:$0xff]  ;;  %v3449_v18 = vld [vmem:[#allocation12 + $0x100] sm:$0xff] }
 0x385   : > { %5240 = vmatprep.subr.bf16.mxu0 %v7837_v44  ;;  %v5277_v37 = vpack.c.bf16 %v3436_v26, %v3435_v29  ;;  %v3420_v20 = vld [vmem:[#allocation12 + $0x18] sm:$0xff]  ;;  %v3431_v29 = vld [vmem:[#allocation12 + $0x70] sm:$0xff] }
 0x386   : > { %v8099_v52 = vld [vmem:[#allocation60_spill] sm:$0xff] }
 0x387   : > { %3232 = vmatmul.mubr.f32.vlgmr.msra.gmra.mrb[28].mxu0 %v2985_v60  ;;  %5135 = vmatpush1.bf16.msra.mxu1 %v7192_v55  ;;  %v2994_v55 = vsel %vm2626_vm6, %v2992_v35, %v2993_v7  ;;  %v3432_v26 = vld [vmem:[#allocation12 + $0x78] sm:$0xff] }
 0x388   : > { %3236 = vmatprep.mubr.f32.mxu0 %v2998_v17  ;;  %5242 = vmatpush1.bf16.msra.mxu0 %v7298_v59  ;;  %v8078_v59 = vld [vmem:[#allocation34_spill] sm:$0xff] }
 0x389   : > { %5137 = vmatprep.subr.bf16.mxu1 %v7200_v38  ;;  %5243 = vmatprep.subr.bf16.mxu0 %v7837_v44  ;;  %v8066_v38 = vld [vmem:[#allocation27_spill] sm:$0xff] }
 0x38b   : > { %3237 = vmatmul.mubr.f32.gmra.mrb[30].mxu0 %v2996_v41  ;;  %5139 = vmatpush1.bf16.msra.mxu1 %v8064_v31 }
 0x38c   : > { %5245 = vmatpush1.bf16.msra.mxu0 %v7312_v21  ;;  %3828 = vmatprep.mubr.msk.f32.mxu0 %vm717_vm5, %v2994_v55 }
 0x38d   : > { %5141 = vmatprep.subr.bf16.mxu1 %v8065_v39  ;;  %5246 = vmatprep.subr.bf16.mxu0 %v7837_v44  ;;  %v3422_v39 = vld [vmem:[#allocation12 + $0x28] sm:$0xff] }
 0x38f   : > { %5143 = vmatpush1.bf16.msra.mxu1 %v8066_v38  ;;  %v3440_v38 = vld [vmem:[#allocation12 + $0xb8] sm:$0xff] }
 0x390   : > { %5248 = vmatpush1.bf16.msra.mxu0 %v7327_v6  ;;  %5145 = vmatprep.subr.bf16.mxu1 %v8067_v3  ;;  %v8091_v3 = vld [vmem:[#allocation50_spill] sm:$0xff] }
 0x391   : > { %5249 = vmatprep.subr.bf16.mxu0 %v7837_v44 }
 0x393   : > { %5147 = vmatpush1.bf16.msra.mxu1 %v8068_v15 }
 0x394   : > { %5251 = vmatpush1.bf16.msra.mxu0 %v7337_v30  ;;  %5149 = vmatprep.subr.bf16.mxu1 %v8069_v63  ;;  %v8079_v30 = vld [vmem:[#allocation75_spill] sm:$0xff] }
 0x395   : > { %5252 = vmatprep.subr.bf16.mxu0 %v7837_v44 }
 0x397   : > { %5151 = vmatpush1.bf16.msra.mxu1 %v8070_v33  ;;  %v3423_v33 = vld [vmem:[#allocation12 + $0x30] sm:$0xff] }
 0x398   : > { %5254 = vmatpush1.bf16.msra.mxu0 %v8071_v0  ;;  %5153 = vmatprep.subr.bf16.mxu1 %v8072_v25  ;;  %v3424_v0 = vld [vmem:[#allocation12 + $0x38] sm:$0xff] }
 0x399   : > { %5255 = vmatprep.subr.bf16.mxu0 %v7837_v44  ;;  %v8092_v25 = vld [vmem:[#allocation51_spill] sm:$0xff] }
 0x39b   : > { %5155 = vmatpush1.bf16.msra.mxu1 %v8073_v53  ;;  %v3441_v53 = vld [vmem:[#allocation12 + $0xc0] sm:$0xff] }
 0x39c   : > { %5257 = vmatpush1.bf16.msra.mxu0 %v8074_v54  ;;  %5157 = vmatprep.subr.bf16.mxu1 %v8075_v47  ;;  %v3442_v54 = vld [vmem:[#allocation12 + $0xc8] sm:$0xff] }
 0x39d   : > { %5258 = vmatprep.subr.bf16.mxu0 %v7837_v44  ;;  %v8093_v47 = vld [vmem:[#allocation53_spill] sm:$0xff] }
 0x39f   : > { %5159 = vmatpush1.bf16.msra.mxu1 %v8076_v45  ;;  %v5287_v45 = vpack.c.bf16 %v3424_v0, %v3423_v33 }
 0x3a0   : > { %5260 = vmatpush1.bf16.msra.mxu0 %v8077_v12  ;;  %v3987_v62 = vpop.f32.mrb[20].mxu0  ;;  %5161 = vmatprep.subr.bf16.mxu1 %v8078_v59  ;;  %v5289_v12 = vpack.c.bf16 %v3442_v54, %v3441_v53  ;;  %v3426_v59 = vld [vmem:[#allocation12 + $0x48] sm:$0xff] }
 0x3a1   : > { %v3988_v21 = vpop.f32.mrb[21].mxu0  ;;  %5261 = vmatprep.subr.bf16.mxu0 %v7837_v44 }
 0x3a2   : > { %v3989_v6 = vadd.f32 %v3988_v21, %v3987_v62  ;;  %v3425_v62 = vld [vmem:[#allocation12 + $0x40] sm:$0xff]  ;;  %v8094_v21 = vld [vmem:[#allocation54_spill] sm:$0xff] }
 0x3a3   : > { %5163 = vmatpush1.bf16.msra.mxu1 %v8079_v30  ;;  %v3444_v30 = vld [vmem:[#allocation12 + $0xd8] sm:$0xff] }
 0x3a4   : > { %5263 = vmatpush1.bf16.msra.mxu0 %v7379_v50  ;;  %v3990_v46 = vpop.f32.mrb[22].mxu0  ;;  %5165 = vmatprep.subr.bf16.mxu1 %v8080_v10  ;;  %v7506_v61 = vadd.f32 %v3989_v6, %v7454_v56  ;;  %v3433_v50 = vld [vmem:[#allocation12 + $0x80] sm:$0xff]  ;;  %v3443_v6 = vld [vmem:[#allocation12 + $0xd0] sm:$0xff]  ;;  %v5291_v10 = vpack.c.bf16 %v3426_v59, %v3425_v62 }
 0x3a5   : > { %v3991_v2 = vpop.f32.mrb[23].mxu0  ;;  %5264 = vmatprep.subr.bf16.mxu0 %v7837_v44  ;;  %v8086_v56 = vld [vmem:[#allocation44_spill] sm:$0xff]  ;;  %v8100_v62 = vld [vmem:[#allocation39_spill] sm:$0xff] }
 0x3a6   : > { %v3992_v40 = vadd.f32 %v3991_v2, %v3990_v46  ;;  %3078 = vmatmul.mubr.f32.vlgmr.msra.gmra.mrb[24].mxu1 %v2985_v60  ;;  %v7532_v60 = vsel %vm2626_vm6, %v2993_v7, %v3001_v14  ;;  %v3439_v7 = vld [vmem:[#allocation12 + $0xb0] sm:$0xff]  ;;  %v8095_v46 = vld [vmem:[#allocation56_spill] sm:$0xff]  ;;  %v5293_v2 = vpack.c.bf16 %v3444_v30, %v3443_v6 }
 0x3a7   : > { %3083 = vmatprep.mubr.f32.mxu1 %v2998_v17  ;;  %5167 = vmatpush1.bf16.msra.mxu1 %v8081_v5  ;;  %v8089_v17 = vld [vmem:[#allocation47_spill] sm:$0xff]  ;;  %v5285_v63 = vpack.c.bf16 %v3440_v38, %v3439_v7  ;;  %v3461_v38 = vld [vmem:[#allocation12 + $0x160] sm:$0xff] }
 0x3a8   : > { %5266 = vmatpush1.bf16.msra.mxu0 %v7391_v51  ;;  %5169 = vmatprep.subr.bf16.mxu1 %v8082_v28  ;;  %v7512_v23 = vadd.f32 %v3992_v40, %v2134_v16  ;;  %v5273_v51 = vpack.c.bf16 %v3434_v9, %v3433_v50  ;;  %v3419_v16 = vld [vmem:[#allocation12 + $0x10] sm:$0xff]  ;;  %v3428_v5 = vld [vmem:[#allocation12 + $0x58] sm:$0xff]  ;;  %v8096_v28 = vld [vmem:[#allocation57_spill] sm:$0xff] }
 0x3a9   : > { %5267 = vmatprep.subr.bf16.mxu0 %v7837_v44  ;;  %v5279_v35 = vpack.c.bf16 %v3420_v20, %v3419_v16  ;;  %v3427_v40 = vld [vmem:[#allocation12 + $0x50] sm:$0xff]  ;;  %v3445_v50 = vld [vmem:[#allocation12 + $0xe0] sm:$0xff]  ;;  %v3446_v9 = vld [vmem:[#allocation12 + $0xe8] sm:$0xff] }
 0x3aa   : > { %3084 = vmatmul.mubr.f32.gmra.mrb[26].mxu1 %v2996_v41  ;;  %v7538_v41 = vsel %vm2626_vm6, %v2990_v19, %v2999_v57  ;;  %v5295_v27 = vpack.c.bf16 %v3428_v5, %v3427_v40  ;;  %v3451_v16 = vld [vmem:[#allocation12 + $0x110] sm:$0xff]  ;;  %v3452_v20 = vld [vmem:[#allocation12 + $0x118] sm:$0xff]  ;;  %v8102_v5 = vld [vmem:[#allocation41_spill] sm:$0xff] }
 0x3ab   : > { %5171 = vmatpush1.bf16.msra.mxu1 %v8083_v11  ;;  %3826 = vmatprep.mubr.msk.f32.mxu1 %vm717_vm5, %v2994_v55  ;;  %v3421_v55 = vld [vmem:[#allocation12 + $0x20] sm:$0xff]  ;;  %v8097_v11 = vld [vmem:[#allocation58_spill] sm:$0xff] }
 0x3ac   : > { %5269 = vmatpush1.bf16.msra.mxu0 %v7401_v34  ;;  %5173 = vmatprep.subr.bf16.mxu1 %v8084_v22  ;;  %v8087_v34 = vld [vmem:[#allocation45_spill] sm:$0xff]  ;;  %v5283_v15 = vpack.c.bf16 %v3422_v39, %v3421_v55  ;;  %v5297_v22 = vpack.c.bf16 %v3446_v9, %v3445_v50  ;;  %v3459_v7 = vld [vmem:[#allocation12 + $0x150] sm:$0xff] }
 0x3ad   : > { %5270 = vmatprep.subr.bf16.mxu0 %v7837_v44  ;;  %v7525_v44 = vsel %vm2626_vm6, %v2989_v49, %v2990_v19  ;;  %v8098_v49 = vld [vmem:[#allocation59_spill] sm:$0xff]  ;;  %v3457_v55 = vld [vmem:[#allocation12 + $0x140] sm:$0xff]  ;;  %v3458_v39 = vld [vmem:[#allocation12 + $0x148] sm:$0xff] }
 0x3ae   : > { %v3448_v19 = vld [vmem:[#allocation12 + $0xf8] sm:$0xff] }
 0x3af   : > { %5175 = vmatpush1.bf16.msra.mxu1 %v8086_v56  ;;  %v3450_v56 = vld [vmem:[#allocation12 + $0x108] sm:$0xff]  ;;  %v5301_v24 = vpack.c.bf16 %v3448_v19, %v3447_v42 }
 0x3b0   : > { %5272 = vmatpush1.bf16.msra.mxu0 %v7411_v32  ;;  %5177 = vmatprep.subr.bf16.mxu1 %v8087_v34  ;;  %v3437_v32 = vld [vmem:[#allocation12 + $0xa0] sm:$0xff] }
 0x3b1   : > { %5274 = vmatprep.subr.bf16.mxu0 %v5273_v51  ;;  %v5281_v31 = vpack.c.bf16 %v3438_v43, %v3437_v32  ;;  %v3430_v51 = vld [vmem:[#allocation12 + $0x68] sm:$0xff]  ;;  %v5309_v43 = vpack.c.bf16 %v3452_v20, %v3451_v16 }
 0x3b2   : > { %v5299_v14 = vpack.c.bf16 %v3430_v51, %v3429_v13 }
 0x3b3   : > { %3307 = vmatmul.mubr.f32.vlgmr.msra.gmra.mrb[32].mxu0 %v7525_v44  ;;  %5179 = vmatpush1.bf16.msra.mxu1 %v8088_v48  ;;  %v5303_v48 = vpack.c.bf16 %v3432_v26, %v3431_v29 }
 0x3b4   : > { %3829 = vmatprep.mubr.msk.f32.mxu0 %vm717_vm5, %v7532_v60  ;;  %5181 = vmatprep.subr.bf16.mxu1 %v8089_v17 }
 0x3b5   : > { %5276 = vmatpush3.bf16.msra.mxu0 %v5275_v1  ;;  %v5305_v1 = vpack.c.bf16 %v3450_v56, %v3449_v18 }
 0x3b6   : > { %5278 = vmatprep.subr.bf16.mxu0 %v5277_v37 }
 0x3b7   : > { %3312 = vmatmul.mubr.f32.gmra.mrb[34].mxu0 %v7538_v41  ;;  %5183 = vmatpush1.bf16.msra.mxu1 %v8090_v4  ;;  %v5321_v4 = vpack.c.bf16 %v3458_v39, %v3457_v55  ;;  %v3364_v39 = vld [vmem:[#allocation10] sm:$0x7] }
 0x3b8   : > { %5185 = vmatprep.subr.bf16.mxu1 %v8091_v3  ;;  %v3462_v3 = vld [vmem:[#allocation12 + $0x168] sm:$0xff] }
 0x3b9   : > { %5280 = vmatpush3.bf16.msra.mxu0 %v5279_v35  ;;  %v3454_v35 = vld [vmem:[#allocation12 + $0x128] sm:$0xff] }
 0x3ba   : > { %5282 = vmatprep.subr.bf16.mxu0 %v5281_v31  ;;  %v3455_v31 = vld [vmem:[#allocation12 + $0x130] sm:$0xff] }
 0x3bb   : > { %5187 = vmatpush1.bf16.msra.mxu1 %v8092_v25 }
 0x3bc   : > { %5189 = vmatprep.subr.bf16.mxu1 %v8093_v47 }
 0x3bd   : > { %5284 = vmatpush3.bf16.msra.mxu0 %v5283_v15  ;;  %v5329_v15 = vpack.c.bf16 %v3462_v3, %v3461_v38 }
 0x3be   : > { %5286 = vmatprep.subr.bf16.mxu0 %v5285_v63  ;;  %v3463_v63 = vld [vmem:[#allocation12 + $0x170] sm:$0xff] }
 0x3bf   : > { %5191 = vmatpush1.bf16.msra.mxu1 %v8094_v21  ;;  %v8101_v21 = vld [vmem:[#allocation40_spill] sm:$0xff] }
 0x3c0   : > { %5193 = vmatprep.subr.bf16.mxu1 %v8095_v46 }
 0x3c1   : > { %5288 = vmatpush3.bf16.msra.mxu0 %v5287_v45 }
 0x3c2   : > { %5290 = vmatprep.subr.bf16.mxu0 %v5289_v12  ;;  %v3323_v12 = vld [vmem:[#allocation10] sm:$0x7] }
 0x3c3   : > { %5195 = vmatpush1.bf16.msra.mxu1 %v8096_v28  ;;  %v3328_v59 = vrot.slane %v3323_v12, %v8100_v62  ;;  %v3332_v6 = vrot.slane %v3323_v12, %v8101_v21  ;;  %v3336_v28 = vrot.slane %v3323_v12, %v8102_v5  ;;  %v3373_v12 = vrot.slane %v3364_v39, %v8101_v21 }
 0x3c4   : > { %5197 = vmatprep.subr.bf16.mxu1 %v8097_v11 }
 0x3c5   : > { %5292 = vmatpush3.bf16.msra.mxu0 %v5291_v10 }
 0x3c6   : > { %5294 = vmatprep.subr.bf16.mxu0 %v5293_v2 }
 0x3c7   : > { %5199 = vmatpush1.bf16.msra.mxu1 %v8098_v49 }
 0x3c8   : > { %5201 = vmatprep.subr.bf16.mxu1 %v8099_v52 }
 0x3c9   : > { %5296 = vmatpush3.bf16.msra.mxu0 %v5295_v27  ;;  %v8103_v27 = vld [vmem:[#allocation21_spill] sm:$0xff] }
 0x3ca   : > { %5298 = vmatprep.subr.bf16.mxu0 %v5297_v22 }
 0x3cb   : > { %5203 = vmatpush1.bf16.msra.mxu1 %v7397_v8 }
 0x3cc   : > { %v2438_v34 = vpop.f32.mrb[24].mxu0  ;;  %5205 = vmatprep.subr.bf16.mxu1 %v7403_v58  ;;  %v3453_v58 = vld [vmem:[#allocation12 + $0x120] sm:$0xff] }
 0x3cd   : > { %v7554_v57 = vadd.f32 %v2438_v34, %v7506_v61  ;;  %v2440_v37 = vpop.f32.mrb[25].mxu0  ;;  %5300 = vmatpush3.bf16.msra.mxu0 %v5299_v14  ;;  %v5313_v61 = vpack.c.bf16 %v3454_v35, %v3453_v58  ;;  %v8104_v34 = vld [vmem:[#allocation23_spill] sm:$0xff] }
 0x3ce   : > { %5302 = vmatprep.subr.bf16.mxu0 %v5301_v24 }
 0x3cf   : > { %5207 = vmatpush1.bf16.msra.mxu1 %v7407_v36  ;;  %v3456_v36 = vld [vmem:[#allocation12 + $0x138] sm:$0xff] }
 0x3d0   : > { %v2443_v32 = vpop.f32.mrb[26].mxu0  ;;  %5306 = vmatprep.subr.bf16.mxu1 %v5305_v1 }
 0x3d1   : > { %v7558_v8 = vadd.f32 %v2443_v32, %v7512_v23  ;;  %v2445_v17 = vpop.f32.mrb[27].mxu0  ;;  %5304 = vmatpush3.bf16.msra.mxu0 %v5303_v48  ;;  %v5317_v23 = vpack.c.bf16 %v3456_v36, %v3455_v31 }
 0x3d2   : > { %3155 = vmatmul.mubr.f32.vlgmr.msra.gmra.mrb[24].mxu1 %v7525_v44  ;;  %v3460_v44 = vld [vmem:[#allocation12 + $0x158] sm:$0xff] }
 0x3d3   : > { %3827 = vmatprep.mubr.msk.f32.mxu1 %vm717_vm5, %v7532_v60  ;;  %5308 = vmatpush3.bf16.msra.mxu1 %v5305_v1  ;;  %v5325_v60 = vpack.c.bf16 %v3460_v44, %v3459_v7  ;;  %v3377_v44 = vrot.slane %v3364_v39, %v8102_v5 }
 0x3d4   : > { %5310 = vmatprep.subr.bf16.mxu1 %v5309_v43 }
 0x3d6   : > { %3161 = vmatmul.mubr.f32.gmra.mrb[26].mxu1 %v7538_v41  ;;  %v3464_v41 = vld [vmem:[#allocation12 + $0x178] sm:$0xff] }
 0x3d7   : > { %5312 = vmatpush3.bf16.msra.mxu1 %v5309_v43  ;;  %v5333_v33 = vpack.c.bf16 %v3464_v41, %v3463_v63 }
 0x3d8   : > { %5314 = vmatprep.subr.bf16.mxu1 %v5313_v61 }
 0x3db   : > { %5316 = vmatpush3.bf16.msra.mxu1 %v5313_v61 }
 0x3dc   : > { %5318 = vmatprep.subr.bf16.mxu1 %v5317_v23 }
 0x3df   : > { %5320 = vmatpush3.bf16.msra.mxu1 %v5317_v23 }
 0x3e0   : > { %5322 = vmatprep.subr.bf16.mxu1 %v5321_v4 }
 0x3e3   : > { %5324 = vmatpush3.bf16.msra.mxu1 %v5321_v4 }
 0x3e4   : > { %5326 = vmatprep.subr.bf16.mxu1 %v5325_v60 }
 0x3e7   : > { %5328 = vmatpush3.bf16.msra.mxu1 %v5325_v60 }
 0x3e8   : > { %5330 = vmatprep.subr.bf16.mxu1 %v5329_v15 }
 0x3eb   : > { %5332 = vmatpush3.bf16.msra.mxu1 %v5329_v15 }
 0x3ec   : > { %5334 = vmatprep.subr.bf16.mxu1 %v5333_v33 }
 0x3ef   : > { %5336 = vmatpush3.bf16.msra.mxu1 %v5333_v33 }
 0x40b   : > { %v4025_v0 = vpop.f32.mrb[28].mxu1 }
 0x40c   : > { %v4026_v25 = vpop.f32.mrb[29].mxu1 }
 0x40d   : > { %v4027_v53 = vadd.f32 %v4026_v25, %v4025_v0 }
 0x40f   : > { %v4028_v54 = vpop.f32.mrb[30].mxu1 }
 0x410   : > { %v4029_v47 = vpop.f32.mrb[31].mxu1 }
 0x411   : > { %v4030_v45 = vadd.f32 %v4029_v47, %v4028_v54 }
 0x438   : > { %v2800_v30 = vpop.f32.mrb[8].mxu0 }
 0x439   : > { %v3340_v46 = vadd.f32 %v3328_v59, %v2800_v30  ;;  %v2952_v10 = vpop.f32.mrb[32].mxu1  ;;  %v2802_v2 = vpop.f32.mrb[9].mxu0 }
 0x43a   : > { %v2953_v40 = vadd.f32 %v4027_v53, %v2952_v10  ;;  %v3341_v50 = vadd.f32 %v3332_v6, %v2802_v2  ;;  %v2954_v9 = vpop.f32.mrb[33].mxu1 }
 0x43b   : > { %v3346_v11 = vmax.f32 %v3340_v46, 0.0 }
 0x43c   : > { %v2963_v22 = vadd.f32 %v2953_v40, %v8103_v27  ;;  %v3347_v13 = vmax.f32 %v3341_v50, 0.0  ;;  %v2806_v51 = vpop.f32.mrb[10].mxu0 }
 0x43d   : > { %v3343_v49 = vadd.f32 %v3328_v59, %v2806_v51  ;;  %v2957_v42 = vpop.f32.mrb[34].mxu1  ;;  %v2808_v19 = vpop.f32.mrb[11].mxu0  ;;  %v3352_v29 = vmin.f32 %v3346_v11, 6.0 }
 0x43e   : > { %v3342_v52 = vadd.f32 %v3336_v28, %v2963_v22  ;;  %v3353_v18 = vmin.f32 %v3347_v13, 6.0  ;;  %v2958_v56 = vadd.f32 %v4030_v45, %v2957_v42  ;;  %v3344_v14 = vadd.f32 %v3332_v6, %v2808_v19  ;;  %v2959_v24 = vpop.f32.mrb[35].mxu1 }
 0x43f   : > { %v3349_v26 = vmax.f32 %v3343_v49, 0.0  ;;  %v3369_v45 = vrot.slane %v3364_v39, %v8100_v62  ;;  %v3830_v49 = vld [vmem:[#allocation13] ss:$0 sm:$0xff] }
 0x440   : > { %v2966_v1 = vadd.f32 %v2958_v56, %v8104_v34  ;;  %v3350_v37 = vmax.f32 %v3344_v14, 0.0  ;;  %3536 = vmatprep.mubr.f32.mxu0 %v3353_v18  ;;  %v3348_v16 = vmax.f32 %v3342_v52, 0.0 }
 0x441   : > { %3537 = vmatmul.mubr.f32.vlgmr.msra.gmra.mrb[36].mxu0 %v3352_v29  ;;  %v3355_v43 = vmin.f32 %v3349_v26, 6.0  ;;  %v5492_v26 = vld [vmem:[%s6038_s19] sm:$0xff] }
 0x442   : > { %v3345_v20 = vadd.f32 %v3336_v28, %v2966_v1  ;;  %v3356_v48 = vmin.f32 %v3350_v37, 6.0  ;;  %v3354_v32 = vmin.f32 %v3348_v16, 6.0  ;;  %v5493_v1 = vld [vmem:[%s6038_s19 + $0x8] sm:$0xff] }
 0x444   : > { %v3351_v17 = vmax.f32 %v3345_v20, 0.0  ;;  %4165 = vmatprep.mubr.f32.mxu1 %v3354_v32  ;;  %3541 = vmatprep.mubr.f32.mxu0 %v3356_v48 }
 0x445   : > { %3542 = vmatmul.mubr.f32.gmra.mrb[38].mxu0 %v3355_v43 }
 0x446   : > { %v3357_v58 = vmin.f32 %v3351_v17, 6.0 }
 0x448   : > { %4166 = vmatmul.mubr.f32.vlgmr.msra.gmra.mrb[36].mxu1 %v3357_v58 }
 0x45a   : > { %v4063_v35 = vpop.f32.mrb[28].mxu0 }
 0x45b   : > { %v4064_v61 = vpop.f32.mrb[29].mxu0 }
 0x45c   : > { %v4065_v31 = vadd.f32 %v4064_v61, %v4063_v35 }
 0x45e   : > { %v4066_v36 = vpop.f32.mrb[30].mxu0 }
 0x45f   : > { %v4067_v23 = vpop.f32.mrb[31].mxu0 }
 0x460   : > { %v4068_v55 = vadd.f32 %v4067_v23, %v4066_v36  ;;  %v5494_v36 = vld [vmem:[%s6038_s19 + $0x10] sm:$0xff] }
 0x486   : > { %v3308_v4 = vpop.f32.mrb[32].mxu0 }
 0x487   : > { %v3309_v7 = vadd.f32 %v4065_v31, %v3308_v4  ;;  %v3310_v60 = vpop.f32.mrb[33].mxu0  ;;  %v5495_v4 = vld [vmem:[%s6038_s19 + $0x18] sm:$0xff] }
 0x489   : > { %v3319_v38 = vadd.f32 %v3309_v7, %v7554_v57 }
 0x48a   : > { %v3313_v3 = vpop.f32.mrb[34].mxu0 }
 0x48b   : > { %v3383_v15 = vadd.f32 %v3377_v44, %v3319_v38  ;;  %v3314_v63 = vadd.f32 %v4068_v55, %v3313_v3  ;;  %v3315_v41 = vpop.f32.mrb[35].mxu0 }
 0x48d   : > { %v3322_v33 = vadd.f32 %v3314_v63, %v7558_v8  ;;  %v3389_v0 = vmax.f32 %v3383_v15, 0.0 }
 0x48f   : > { %v3386_v25 = vadd.f32 %v3377_v44, %v3322_v33  ;;  %v3395_v53 = vmin.f32 %v3389_v0, 6.0 }
 0x491   : > { %4168 = vmatprep.mubr.f32.mxu1 %v3395_v53  ;;  %v3392_v54 = vmax.f32 %v3386_v25, 0.0 }
 0x493   : > { %v3398_v47 = vmin.f32 %v3392_v54, 6.0 }
 0x495   : > { %4169 = vmatmul.mubr.f32.gmra.mrb[38].mxu1 %v3398_v47 }
 0x4a5   : > { %v3156_v59 = vpop.f32.mrb[24].mxu1 }
 0x4a6   : > { %v3381_v6 = vadd.f32 %v3369_v45, %v3156_v59  ;;  %v3158_v57 = vpop.f32.mrb[25].mxu1 }
 0x4a7   : > { %v3382_v30 = vadd.f32 %v3373_v12, %v3158_v57 }
 0x4a8   : > { %v3387_v46 = vmax.f32 %v3381_v6, 0.0 }
 0x4a9   : > { %v3388_v10 = vmax.f32 %v3382_v30, 0.0  ;;  %v3162_v2 = vpop.f32.mrb[26].mxu1 }
 0x4aa   : > { %v3384_v40 = vadd.f32 %v3369_v45, %v3162_v2  ;;  %v3164_v8 = vpop.f32.mrb[27].mxu1  ;;  %v3393_v50 = vmin.f32 %v3387_v46, 6.0 }
 0x4ab   : > { %v3394_v5 = vmin.f32 %v3388_v10, 6.0  ;;  %v3385_v28 = vadd.f32 %v3373_v12, %v3164_v8 }
 0x4ac   : > { %v3390_v9 = vmax.f32 %v3384_v40, 0.0 }
 0x4ad   : > { %v3391_v11 = vmax.f32 %v3385_v28, 0.0  ;;  %3546 = vmatprep.mubr.f32.mxu0 %v3394_v5 }
 0x4ae   : > { %3547 = vmatmul.mubr.f32.gmra.mrb[40].mxu0 %v3393_v50  ;;  %v3396_v62 = vmin.f32 %v3390_v9, 6.0 }
 0x4af   : > { %v3397_v27 = vmin.f32 %v3391_v11, 6.0 }
 0x4b1   : > { %3551 = vmatprep.mubr.f32.mxu0 %v3397_v27 }
 0x4b2   : > { %3552 = vmatmul.mubr.f32.gmra.mrb[42].mxu0 %v3396_v62 }
 0x514   : > { %v4101_v21 = vpop.f32.mrb[36].mxu0 }
 0x515   : > { %v4102_v22 = vpop.f32.mrb[37].mxu0 }
 0x516   : > { %v4103_v13 = vadd.f32 %v4102_v22, %v4101_v21 }
 0x518   : > { %v4104_v51 = vpop.f32.mrb[38].mxu0  ;;  %v3539_v18 = vadd.f32 %v4103_v13, %v3830_v49 }
 0x519   : > { %v4105_v42 = vpop.f32.mrb[39].mxu0 }
 0x51a   : > { %v4106_v19 = vadd.f32 %v4105_v42, %v4104_v51 }
 0x51b   : > { %v4167_v52 = vpop.f32.mrb[36].mxu1 }
 0x51c   : > { %v3544_v56 = vadd.f32 %v4106_v19, %v3830_v49  ;;  %v3623_v14 = vpop.f32.mrb[37].mxu1 }
 0x51d   : > { %v3624_v24 = vadd.f32 %v3623_v14, %v3539_v18 }
 0x51e   : > { %v3629_v29 = vadd.f32 %v4167_v52, %v3544_v56 }
 0x51f   : > { %v3642_v34 = vadd.f32 %v5492_v26, %v3624_v24 }
 0x520   : > { %v3643_v37 = vadd.f32 %v5493_v1, %v3629_v29 }
 0x521   : > { %3646 = vst [vmem:[%s364_s8] sm:$0xff] %v3642_v34 }
 0x522   : > { %3647 = vst [vmem:[%s364_s8 + $0x8] sm:$0xff] %v3643_v37 }
 0x568   : > { %v4170_v16 = vpop.f32.mrb[38].mxu1 }
 0x569   : > { %v3633_v20 = vpop.f32.mrb[39].mxu1 }
 0x581   : > { %v4107_v48 = vpop.f32.mrb[40].mxu0 }
 0x582   : > { %v4108_v32 = vpop.f32.mrb[41].mxu0 }
 0x583   : > { %v4109_v43 = vadd.f32 %v4108_v32, %v4107_v48 }
 0x585   : > { %v3549_v17 = vadd.f32 %v4109_v43, %v3830_v49  ;;  %v4110_v58 = vpop.f32.mrb[42].mxu0 }
 0x586   : > { %v4111_v35 = vpop.f32.mrb[43].mxu0 }
 0x587   : > { %v3634_v61 = vadd.f32 %v3633_v20, %v3549_v17  ;;  %v4112_v31 = vadd.f32 %v4111_v35, %v4110_v58 }
 0x589   : > { %v3644_v23 = vadd.f32 %v5494_v36, %v3634_v61  ;;  %v3554_v55 = vadd.f32 %v4112_v31, %v3830_v49 }
 0x58b   : > { %3648 = vst [vmem:[%s364_s8 + $0x10] sm:$0xff] %v3644_v23  ;;  %v3639_v39 = vadd.f32 %v4170_v16, %v3554_v55 }
 0x58d   : > { %v3645_v7 = vadd.f32 %v5495_v4, %v3639_v39 }
 0x58f   : > { %3649 = vst [vmem:[%s364_s8 + $0x18] sm:$0xff] %v3645_v7 }
 0x590   : > { %5679 = shalt.err (!%p5676_p8)
}
 0x591   : > { %s5680_s19 = scalar_lea.hbm %s7585_s20, 512  ;;  %s5684_s8 = scalar_lea.hbm %s7637_s7, 1024 }
 0x592   : > { %p5681_p6 = scmp.ne.s32.totalorder %s7585_s20, %s5680_s19  ;;  %p5685_p9 = scmp.lt.u32.totalorder %s7585_s20, %s7637_s7 }
 0x593   : > { %p5686_p10 = scmp.lt.u32.totalorder %s5684_s8, %s5680_s19  ;;  %p5688_p11 = scmp.lt.u32.totalorder %s5680_s19, %s7585_s20 }
 0x594   : > { %p5682_p0 = pnand %p5681_p6, %p8106_p13 }
 0x595   : > { %p5687_p12 = por %p5686_p10, %p5685_p9 }
 0x596   : > { %p5683_p2 = pneg %p5682_p0 }
 0x597   : > { %p5689_p5 = por %p5688_p11, %p5687_p12 }
 0x599   : > { %p5690_p7 = pnand %p5689_p5, %p5683_p2 }
 0x59b   : > { %5693 = shalt.err (!%p5690_p7)
}
 0x59c   : > { %s5759_s18 = smov 128   ;;  %s5760_s15 = smov 8  }
 0x59d   : > { %5399 = dma.vmem_to_hbm [thread:$0]  (%p8106_p13), %s7580_s17, 512, %s7585_s20, %s3651_s23, %s5759_s18, %s5759_s18, %s5760_s15  }
 0x59e PF: > { %s3680_s30 = sand.u32 1, %s5732_s24   ;;  %p8107_p4 = scmp.ne.s32.totalorder %s7801_s14, 0 }
 0x59f   : > { %p8108_p1 = scmp.ge.s32.totalorder %s5744_s27, 2  ;;  %s3681_s16 = scalar_lea.sflag [#allocation6], %s3680_s30 }
 0x5a1   : > { %p5422_p3 = pnand %p8108_p1, %p8107_p4 }
 0x5a3   : > { %5727 = dma.done.wait (!%p5422_p3), %s3681_s16, 512  }
 0x5a4   : > { %5729 = vsyncadd (!%p5422_p3), %s3681_s16, 4294966784  ;;  %p23_p8 = scmp.ge.s32.totalorder %s5956_s13, 4   ;;  %s8109_s24 = smov %s5736_s25 }
 0x5a5   : > { %s8110_s25 = smov %s5740_s26  ;;  %s8111_s26 = smov %s5968_s28 }
 0x5a6   : > { %s8112_s27 = smov %s5956_s13  ;;  %25 = sbr.rel (!%p23_p8) target bundleno = 8 (0x8), region = 118 }
 0x5ad   :  { %3686 = vsyncpa [#allocation5], 1 }
 0x5ae   :  { %3688 = vsyncpa [#allocation5 + $0x1], 1 }
 0x5af   :  { %3689 = vsyncpa [#allocation8], 1 }
 0x5b0   :  { %3690 = vsyncpa [#allocation11], 1 }
 0x5b1   :  { %3691 = vsyncpa [#allocation14], 1 }
 0x5b2   :  { %3692 = vsyncpa [#allocation6], 1 }
 0x5b3   :  { %3694 = vsyncpa [#allocation6 + $0x1], 1 }

</bundles_post_ra>
